<compile_context>
chip_gen: v7x
topology: tpu7x:2x2x1
jax: 0.10.0
libtpu: 0.0.40
codegen_flags: <defaults>
</compile_context>

<pallas_src>
import functools

import jax
import jax.numpy as jnp
from jax.experimental import pallas as pl
from jax.experimental.pallas import tpu as pltpu  # noqa: F401  (kept for TPU-specific knobs)


# ----------------------------------------------------------------------------
# Pallas kernels
# ----------------------------------------------------------------------------
def _linear_kernel(act, x_ref, w_ref, b_ref, o_ref):
    """Single-block fused linear: out = act(x @ w + b); act in {none, relu}."""
    y = jnp.dot(x_ref[...], w_ref[...], preferred_element_type=jnp.float32)
    y = y + b_ref[...]  # b is (1, N), broadcasts over rows
    if act == "relu":
        y = jnp.maximum(y, 0.0)
    o_ref[...] = y.astype(o_ref.dtype)


def linear_pallas(x, w, b, act="none"):
    """Fused small linear (+bias, +activation). x: (M, K), w: (K, N), b: (N,)."""
    M, K = x.shape
    N = w.shape[1]
    kern = functools.partial(_linear_kernel, act)
    return pl.pallas_call(
        kern,
        out_shape=jax.ShapeDtypeStruct((M, N), jnp.float32),
        grid=(1,),
        in_specs=[
            pl.BlockSpec((M, K), lambda i: (0, 0)),
            pl.BlockSpec((K, N), lambda i: (0, 0)),
            pl.BlockSpec((1, N), lambda i: (0, 0)),
        ],
        out_specs=pl.BlockSpec((M, N), lambda i: (0, 0)),
    )(x, w, b.reshape(1, N))


def _fc1_heads_kernel(x_ref, w1_ref, b1_ref,
                      wg_ref, bg_ref, wv_ref, bv_ref, wc_ref, bc_ref,
                      og_ref, ov_ref, oc_ref):
    """Fused classifier tail: fc1 + ReLU, then three softmax heads, one launch.

    h = relu(x @ w1 + b1)                        (B, 128)
    grapheme_root      = softmax(h @ wg + bg)    (B, 168)  [precomposed branch]
    vowel_diacritic    = softmax(h @ wv + bv)    (B, 11)
    consonant_diacritic= softmax(h @ wc + bc)    (B, 7)
    dropout2 is identity at inference.
    """
    h = jnp.dot(x_ref[...], w1_ref[...], preferred_element_type=jnp.float32)
    h = jnp.maximum(h + b1_ref[...], 0.0)

    def head(w_ref, b_ref, o_ref):
        y = jnp.dot(h, w_ref[...], preferred_element_type=jnp.float32) + b_ref[...]
        y = y - jnp.max(y, axis=1, keepdims=True)
        e = jnp.exp(y)
        o_ref[...] = (e * pl.reciprocal(jnp.sum(e, axis=1, keepdims=True),
                                        approx=False)).astype(o_ref.dtype)

    head(wg_ref, bg_ref, og_ref)
    head(wv_ref, bv_ref, ov_ref)
    head(wc_ref, bc_ref, oc_ref)


def fc1_heads_pallas(flat, p):
    """flat: (B, fc1_in). Returns (grapheme_root, vowel_diacritic, consonant_diacritic)."""
    M, K = flat.shape
    N1 = p["fc1_w"].shape[1]
    Ng = p["gr_w"].shape[1]
    Nv = p["vd_w"].shape[1]
    Nc = p["cd_w"].shape[1]

    def full(shp):
        return pl.BlockSpec(shp, lambda i, n=len(shp): (0,) * n)

    return pl.pallas_call(
        _fc1_heads_kernel,
        out_shape=(
            jax.ShapeDtypeStruct((M, Ng), jnp.float32),
            jax.ShapeDtypeStruct((M, Nv), jnp.float32),
            jax.ShapeDtypeStruct((M, Nc), jnp.float32),
        ),
        grid=(1,),
        in_specs=[
            full((M, K)),
            full((K, N1)), full((1, N1)),
            full((N1, Ng)), full((1, Ng)),
            full((N1, Nv)), full((1, Nv)),
            full((N1, Nc)), full((1, Nc)),
        ],
        out_specs=(full((M, Ng)), full((M, Nv)), full((M, Nc))),
    )(flat,
      p["fc1_w"], p["fc1_b"].reshape(1, N1),
      p["gr_w"], p["gr_b"].reshape(1, Ng),
      p["vd_w"], p["vd_b"].reshape(1, Nv),
      p["cd_w"], p["cd_b"].reshape(1, Nc))


# ----------------------------------------------------------------------------
# Glue (plain JAX): im2col patch extraction
# ----------------------------------------------------------------------------
def im2col(x_nhwc, kh, kw):
    """Extract valid (stride 1) kh x kw patches. Returns ((B*OH*OW, kh*kw*C), (B, OH, OW))."""
    B, H, W, C = x_nhwc.shape
    OH, OW = H - kh + 1, W - kw + 1
    cols = []
    for di in range(kh):
        for dj in range(kw):
            cols.append(x_nhwc[:, di: di + OH, dj: dj + OW, :])
    patches = jnp.stack(cols, axis=3)  # (B, OH, OW, kh*kw, C) — (di,dj) major, C minor
    return patches.reshape(B * OH * OW, kh * kw * C), (B, OH, OW)


# ----------------------------------------------------------------------------
# Parameters (deterministic, synthetic — no checkpoint loading).
# All weights are stored in their final matmul (K, N) layout.  The grapheme
# branch (128 -> 10000 -> 1024 -> 168, no activations in between) is
# precomposed here into a single 128 -> 168 linear: the forward pass never
# touches the 23 MB of intermediate weights.
# ----------------------------------------------------------------------------
def init_params(key, fc1_in):
    ks = jax.random.split(key, 8)

    def lin(k, fan_in, fan_out):
        kw, kb = jax.random.split(k)
        s = 1.0 / jnp.sqrt(jnp.float32(fan_in))
        w = jax.random.uniform(kw, (fan_in, fan_out), jnp.float32, -s, s)
        b = jax.random.uniform(kb, (fan_out,), jnp.float32, -s, s)
        return w, b

    p = {}
    # conv weights already in im2col-matmul layout (kh*kw*Cin, Cout)
    # (equivalent to PyTorch (Cout, Cin, kh, kw) permuted to (kh, kw, Cin, Cout)).
    p["conv1_w"], p["conv1_b"] = lin(ks[0], 9, 32)
    p["conv2_w"], p["conv2_b"] = lin(ks[1], 288, 64)

    # fc1 weight rows are laid out for the NHWC-flattened pooled tensor
    # (equivalent to permuting the PyTorch NCHW-flatten weight rows once at init),
    # so the forward pass needs no transpose before the flatten.
    p["fc1_w"], p["fc1_b"] = lin(ks[2], fc1_in, 128)

    # grapheme_root branch: Linear(128,10000) -> Linear(10000,1024) -> Linear(1024,168)
    # with NO activation between them in the original forward, hence algebraically
    # collapsible.  Composition happens once here, at init.
    p1_w, p1_b = lin(ks[3], 128, 10000)
    p2_w, p2_b = lin(ks[4], 10000, 1024)
    g_w, g_b = lin(ks[5], 1024, 168)
    p["gr_w"] = p1_w @ p2_w @ g_w                       # (128, 168)
    p["gr_b"] = (p1_b @ p2_w + p2_b) @ g_w + g_b        # (168,)

    p["vd_w"], p["vd_b"] = lin(ks[6], 128, 11)   # vowel_diacritic
    p["cd_w"], p["cd_b"] = lin(ks[7], 128, 7)    # consonant_diacritic
    return p


# ----------------------------------------------------------------------------
# Forward pass
# ----------------------------------------------------------------------------
def cnn_forward(x_nchw, p):
    B = x_nchw.shape[0]
    x = jnp.transpose(x_nchw, (0, 2, 3, 1))  # NCHW -> NHWC (C=1: effectively a reshape)

    # conv1 + ReLU  (im2col glue + Pallas matmul)
    cols1, (_, oh1, ow1) = im2col(x, 3, 3)
    y1 = linear_pallas(cols1, p["conv1_w"], p["conv1_b"], act="relu")
    y1 = y1.reshape(B, oh1, ow1, 32)

    # conv2 + ReLU
    cols2, (_, oh2, ow2) = im2col(y1, 3, 3)
    y2 = linear_pallas(cols2, p["conv2_w"], p["conv2_b"], act="relu")
    y2 = y2.reshape(B, oh2, ow2, 64)

    # 2x2 max-pool (stride 2) in plain jnp: the tensor is a few hundred KB, so a
    # dedicated pallas_call + 4 strided HBM views costs more than letting XLA fuse it.
    pooled = jnp.maximum(
        jnp.maximum(y2[:, 0::2, 0::2, :], y2[:, 0::2, 1::2, :]),
        jnp.maximum(y2[:, 1::2, 0::2, :], y2[:, 1::2, 1::2, :]),
    )  # (B, oh2//2, ow2//2, 64)

    # dropout1: identity at inference

    # NHWC flatten (fc1 weight rows were permuted at init to match), then a single
    # fused kernel: fc1 + ReLU + all three softmax heads (grapheme branch already
    # precomposed into a 128->168 linear at init).
    flat = pooled.reshape(B, -1)
    grapheme_root, vowel_diacritic, consonant_diacritic = fc1_heads_pallas(flat, p)
    return grapheme_root, vowel_diacritic, consonant_diacritic


# ----------------------------------------------------------------------------
# Main
# ----------------------------------------------------------------------------
if __name__ == "__main__":
    B, C, H, W = 2, 1, 16, 16  # small input; conv1 expects 1 input channel
    x = jax.random.normal(jax.random.PRNGKey(0), (B, C, H, W), jnp.float32)

    # flattened feature size after conv1 -> conv2 -> 2x2 pool for a 16x16 input
    fc1_in = 64 * ((H - 4) // 2) * ((W - 4) // 2)  # 64 * 6 * 6 = 2304
    params = init_params(jax.random.PRNGKey(42), fc1_in)

    fwd = jax.jit(cnn_forward)
    gr, vd, cd = jax.block_until_ready(fwd(x, params))

    assert gr.shape == (B, 168) and vd.shape == (B, 11) and cd.shape == (B, 7)
    # softmax outputs must sum to 1 along axis 1
    assert jnp.allclose(jnp.sum(gr, axis=1), 1.0, atol=1e-4)
    assert jnp.allclose(jnp.sum(vd, axis=1), 1.0, atol=1e-4)
    assert jnp.allclose(jnp.sum(cd, axis=1), 1.0, atol=1e-4)

    print("KERNEL_OK")
</pallas_src>

<mosaic_0001>
module attributes {stable_mosaic.version = 11 : i64} {
  func.func @_linear_kernel(%arg0: i32, %arg1: memref<392x9xf32, #tpu.memory_space<vmem>>, %arg2: memref<9x32xf32, #tpu.memory_space<vmem>>, %arg3: memref<1x32xf32, #tpu.memory_space<vmem>>, %arg4: memref<392x32xf32, #tpu.memory_space<vmem>>) attributes {dimension_semantics = [#tpu.dimension_semantics<arbitrary>], iteration_bounds = array<i64: 1>, scalar_prefetch = 0 : i64, scratch_operands = 0 : i64, tpu.core_type = #tpu.core_type<tc>, window_params = [{pipeline_mode = #tpu.pipeline_mode<synchronous>, transform_indices = @transform_0, window_bounds = array<i64: 392, 9>}, {pipeline_mode = #tpu.pipeline_mode<synchronous>, transform_indices = @transform_1, window_bounds = array<i64: 9, 32>}, {pipeline_mode = #tpu.pipeline_mode<synchronous>, transform_indices = @transform_2, window_bounds = array<i64: 1, 32>}, {pipeline_mode = #tpu.pipeline_mode<synchronous>, transform_indices = @transform_3, window_bounds = array<i64: 392, 32>}]} {
    %c0 = arith.constant 0 : index
    %c0_0 = arith.constant 0 : index
    %0 = vector.load %arg1[%c0, %c0_0] : memref<392x9xf32, #tpu.memory_space<vmem>>, vector<392x9xf32>
    %c0_1 = arith.constant 0 : index
    %c0_2 = arith.constant 0 : index
    %1 = vector.load %arg2[%c0_1, %c0_2] : memref<9x32xf32, #tpu.memory_space<vmem>>, vector<9x32xf32>
    %cst = arith.constant dense<0.000000e+00> : vector<392x32xf32>
    %2 = tpu.matmul %0, %1, %cst {dimension_numbers = #tpu.dot_dimension_numbers<[1], [0], [0], [1], [0, 0, 1, 1], [], []>} : vector<392x9xf32>, vector<9x32xf32>, vector<392x32xf32> -> vector<392x32xf32>
    %c0_3 = arith.constant 0 : index
    %c0_4 = arith.constant 0 : index
    %3 = vector.load %arg3[%c0_3, %c0_4] : memref<1x32xf32, #tpu.memory_space<vmem>>, vector<1x32xf32>
    %4 = vector.broadcast %3 : vector<1x32xf32> to vector<392x32xf32>
    %5 = arith.addf %2, %4 : vector<392x32xf32>
    %cst_5 = arith.constant 0.000000e+00 : f32
    %6 = vector.broadcast %cst_5 : f32 to vector<392x32xf32>
    %7 = arith.maximumf %5, %6 : vector<392x32xf32>
    %c0_6 = arith.constant 0 : index
    %c0_7 = arith.constant 0 : index
    %8 = vector.load %arg4[%c0_6, %c0_7] : memref<392x32xf32, #tpu.memory_space<vmem>>, vector<392x32xf32>
    tpu.vector_store %arg4[%c0_6, %c0_7], %7 {strides = array<i32>} : memref<392x32xf32, #tpu.memory_space<vmem>>, vector<392x32xf32>,
    return
  }
  func.func @transform_0(%arg0: i32) -> (i32, i32) {
    %c0_i32 = arith.constant 0 : i32
    %c0_i32_0 = arith.constant 0 : i32
    %c0_i32_1 = arith.constant 0 : i32
    return %c0_i32, %c0_i32_0 : i32, i32
  }
  func.func @transform_1(%arg0: i32) -> (i32, i32) {
    %c0_i32 = arith.constant 0 : i32
    %c0_i32_0 = arith.constant 0 : i32
    %c0_i32_1 = arith.constant 0 : i32
    return %c0_i32, %c0_i32_0 : i32, i32
  }
  func.func @transform_2(%arg0: i32) -> (i32, i32) {
    %c0_i32 = arith.constant 0 : i32
    %c0_i32_0 = arith.constant 0 : i32
    %c0_i32_1 = arith.constant 0 : i32
    return %c0_i32, %c0_i32_0 : i32, i32
  }
  func.func @transform_3(%arg0: i32) -> (i32, i32) {
    %c0_i32 = arith.constant 0 : i32
    %c0_i32_0 = arith.constant 0 : i32
    %c0_i32_1 = arith.constant 0 : i32
    return %c0_i32, %c0_i32_0 : i32, i32
  }
}

module attributes {stable_mosaic.version = 11 : i64} {
  func.func @_linear_kernel(%arg0: i32, %arg1: memref<288x288xf32, #tpu.memory_space<vmem>>, %arg2: memref<288x64xf32, #tpu.memory_space<vmem>>, %arg3: memref<1x64xf32, #tpu.memory_space<vmem>>, %arg4: memref<288x64xf32, #tpu.memory_space<vmem>>) attributes {dimension_semantics = [#tpu.dimension_semantics<arbitrary>], iteration_bounds = array<i64: 1>, scalar_prefetch = 0 : i64, scratch_operands = 0 : i64, tpu.core_type = #tpu.core_type<tc>, window_params = [{pipeline_mode = #tpu.pipeline_mode<synchronous>, transform_indices = @transform_0, window_bounds = array<i64: 288, 288>}, {pipeline_mode = #tpu.pipeline_mode<synchronous>, transform_indices = @transform_1, window_bounds = array<i64: 288, 64>}, {pipeline_mode = #tpu.pipeline_mode<synchronous>, transform_indices = @transform_2, window_bounds = array<i64: 1, 64>}, {pipeline_mode = #tpu.pipeline_mode<synchronous>, transform_indices = @transform_3, window_bounds = array<i64: 288, 64>}]} {
    %c0 = arith.constant 0 : index
    %c0_0 = arith.constant 0 : index
    %0 = vector.load %arg1[%c0, %c0_0] : memref<288x288xf32, #tpu.memory_space<vmem>>, vector<288x288xf32>
    %c0_1 = arith.constant 0 : index
    %c0_2 = arith.constant 0 : index
    %1 = vector.load %arg2[%c0_1, %c0_2] : memref<288x64xf32, #tpu.memory_space<vmem>>, vector<288x64xf32>
    %cst = arith.constant dense<0.000000e+00> : vector<288x64xf32>
    %2 = tpu.matmul %0, %1, %cst {dimension_numbers = #tpu.dot_dimension_numbers<[1], [0], [0], [1], [0, 0, 1, 1], [], []>} : vector<288x288xf32>, vector<288x64xf32>, vector<288x64xf32> -> vector<288x64xf32>
    %c0_3 = arith.constant 0 : index
    %c0_4 = arith.constant 0 : index
    %3 = vector.load %arg3[%c0_3, %c0_4] : memref<1x64xf32, #tpu.memory_space<vmem>>, vector<1x64xf32>
    %4 = vector.broadcast %3 : vector<1x64xf32> to vector<288x64xf32>
    %5 = arith.addf %2, %4 : vector<288x64xf32>
    %cst_5 = arith.constant 0.000000e+00 : f32
    %6 = vector.broadcast %cst_5 : f32 to vector<288x64xf32>
    %7 = arith.maximumf %5, %6 : vector<288x64xf32>
    %c0_6 = arith.constant 0 : index
    %c0_7 = arith.constant 0 : index
    %8 = vector.load %arg4[%c0_6, %c0_7] : memref<288x64xf32, #tpu.memory_space<vmem>>, vector<288x64xf32>
    tpu.vector_store %arg4[%c0_6, %c0_7], %7 {strides = array<i32>} : memref<288x64xf32, #tpu.memory_space<vmem>>, vector<288x64xf32>,
    return
  }
  func.func @transform_0(%arg0: i32) -> (i32, i32) {
    %c0_i32 = arith.constant 0 : i32
    %c0_i32_0 = arith.constant 0 : i32
    %c0_i32_1 = arith.constant 0 : i32
    return %c0_i32, %c0_i32_0 : i32, i32
  }
  func.func @transform_1(%arg0: i32) -> (i32, i32) {
    %c0_i32 = arith.constant 0 : i32
    %c0_i32_0 = arith.constant 0 : i32
    %c0_i32_1 = arith.constant 0 : i32
    return %c0_i32, %c0_i32_0 : i32, i32
  }
  func.func @transform_2(%arg0: i32) -> (i32, i32) {
    %c0_i32 = arith.constant 0 : i32
    %c0_i32_0 = arith.constant 0 : i32
    %c0_i32_1 = arith.constant 0 : i32
    return %c0_i32, %c0_i32_0 : i32, i32
  }
  func.func @transform_3(%arg0: i32) -> (i32, i32) {
    %c0_i32 = arith.constant 0 : i32
    %c0_i32_0 = arith.constant 0 : i32
    %c0_i32_1 = arith.constant 0 : i32
    return %c0_i32, %c0_i32_0 : i32, i32
  }
}

module attributes {stable_mosaic.version = 11 : i64} {
  func.func @_fc1_heads_kernel(%arg0: i32, %arg1: memref<2x2304xf32, #tpu.memory_space<vmem>>, %arg2: memref<2304x128xf32, #tpu.memory_space<vmem>>, %arg3: memref<1x128xf32, #tpu.memory_space<vmem>>, %arg4: memref<128x168xf32, #tpu.memory_space<vmem>>, %arg5: memref<1x168xf32, #tpu.memory_space<vmem>>, %arg6: memref<128x11xf32, #tpu.memory_space<vmem>>, %arg7: memref<1x11xf32, #tpu.memory_space<vmem>>, %arg8: memref<128x7xf32, #tpu.memory_space<vmem>>, %arg9: memref<1x7xf32, #tpu.memory_space<vmem>>, %arg10: memref<2x168xf32, #tpu.memory_space<vmem>>, %arg11: memref<2x11xf32, #tpu.memory_space<vmem>>, %arg12: memref<2x7xf32, #tpu.memory_space<vmem>>) attributes {dimension_semantics = [#tpu.dimension_semantics<arbitrary>], iteration_bounds = array<i64: 1>, scalar_prefetch = 0 : i64, scratch_operands = 0 : i64, tpu.core_type = #tpu.core_type<tc>, window_params = [{pipeline_mode = #tpu.pipeline_mode<synchronous>, transform_indices = @transform_0, window_bounds = array<i64: 2, 2304>}, {pipeline_mode = #tpu.pipeline_mode<synchronous>, transform_indices = @transform_1, window_bounds = array<i64: 2304, 128>}, {pipeline_mode = #tpu.pipeline_mode<synchronous>, transform_indices = @transform_2, window_bounds = array<i64: 1, 128>}, {pipeline_mode = #tpu.pipeline_mode<synchronous>, transform_indices = @transform_3, window_bounds = array<i64: 128, 168>}, {pipeline_mode = #tpu.pipeline_mode<synchronous>, transform_indices = @transform_4, window_bounds = array<i64: 1, 168>}, {pipeline_mode = #tpu.pipeline_mode<synchronous>, transform_indices = @transform_5, window_bounds = array<i64: 128, 11>}, {pipeline_mode = #tpu.pipeline_mode<synchronous>, transform_indices = @transform_6, window_bounds = array<i64: 1, 11>}, {pipeline_mode = #tpu.pipeline_mode<synchronous>, transform_indices = @transform_7, window_bounds = array<i64: 128, 7>}, {pipeline_mode = #tpu.pipeline_mode<synchronous>, transform_indices = @transform_8, window_bounds = array<i64: 1, 7>}, {pipeline_mode = #tpu.pipeline_mode<synchronous>, transform_indices = @transform_9, window_bounds = array<i64: 2, 168>}, {pipeline_mode = #tpu.pipeline_mode<synchronous>, transform_indices = @transform_10, window_bounds = array<i64: 2, 11>}, {pipeline_mode = #tpu.pipeline_mode<synchronous>, transform_indices = @transform_11, window_bounds = array<i64: 2, 7>}]} {
    %c0 = arith.constant 0 : index
    %c0_0 = arith.constant 0 : index
    %0 = vector.load %arg1[%c0, %c0_0] : memref<2x2304xf32, #tpu.memory_space<vmem>>, vector<2x2304xf32>
    %c0_1 = arith.constant 0 : index
    %c0_2 = arith.constant 0 : index
    %1 = vector.load %arg2[%c0_1, %c0_2] : memref<2304x128xf32, #tpu.memory_space<vmem>>, vector<2304x128xf32>
    %cst = arith.constant dense<0.000000e+00> : vector<2x128xf32>
    %2 = tpu.matmul %0, %1, %cst {dimension_numbers = #tpu.dot_dimension_numbers<[1], [0], [0], [1], [0, 0, 1, 1], [], []>} : vector<2x2304xf32>, vector<2304x128xf32>, vector<2x128xf32> -> vector<2x128xf32>
    %c0_3 = arith.constant 0 : index
    %c0_4 = arith.constant 0 : index
    %3 = vector.load %arg3[%c0_3, %c0_4] : memref<1x128xf32, #tpu.memory_space<vmem>>, vector<1x128xf32>
    %4 = vector.broadcast %3 : vector<1x128xf32> to vector<2x128xf32>
    %5 = arith.addf %2, %4 : vector<2x128xf32>
    %cst_5 = arith.constant 0.000000e+00 : f32
    %6 = vector.broadcast %cst_5 : f32 to vector<2x128xf32>
    %7 = arith.maximumf %5, %6 : vector<2x128xf32>
    %c0_6 = arith.constant 0 : index
    %c0_7 = arith.constant 0 : index
    %8 = vector.load %arg4[%c0_6, %c0_7] : memref<128x168xf32, #tpu.memory_space<vmem>>, vector<128x168xf32>
    %cst_8 = arith.constant dense<0.000000e+00> : vector<2x168xf32>
    %9 = tpu.matmul %7, %8, %cst_8 {dimension_numbers = #tpu.dot_dimension_numbers<[1], [0], [0], [1], [0, 0, 1, 1], [], []>} : vector<2x128xf32>, vector<128x168xf32>, vector<2x168xf32> -> vector<2x168xf32>
    %c0_9 = arith.constant 0 : index
    %c0_10 = arith.constant 0 : index
    %10 = vector.load %arg5[%c0_9, %c0_10] : memref<1x168xf32, #tpu.memory_space<vmem>>, vector<1x168xf32>
    %11 = vector.broadcast %10 : vector<1x168xf32> to vector<2x168xf32>
    %12 = arith.addf %9, %11 : vector<2x168xf32>
    %cst_11 = arith.constant dense<0xFF800000> : vector<2xf32>
    %13 = vector.multi_reduction <maximumf>, %12, %cst_11 [1] : vector<2x168xf32> to vector<2xf32>
    %14 = vector.shape_cast %13 : vector<2xf32> to vector<2x1xf32>
    %15 = vector.broadcast %14 : vector<2x1xf32> to vector<2x168xf32>
    %16 = arith.subf %12, %15 : vector<2x168xf32>
    %17 = math.exp %16 : vector<2x168xf32>
    %cst_12 = arith.constant dense<0.000000e+00> : vector<2xf32>
    %18 = vector.multi_reduction <add>, %17, %cst_12 [1] : vector<2x168xf32> to vector<2xf32>
    %19 = vector.shape_cast %18 : vector<2xf32> to vector<2x1xf32>
    %20 = tpu.reciprocal %19 : vector<2x1xf32> -> vector<2x1xf32>
    %21 = vector.broadcast %20 : vector<2x1xf32> to vector<2x168xf32>
    %22 = arith.mulf %17, %21 : vector<2x168xf32>
    %c0_13 = arith.constant 0 : index
    %c0_14 = arith.constant 0 : index
    %23 = vector.load %arg10[%c0_13, %c0_14] : memref<2x168xf32, #tpu.memory_space<vmem>>, vector<2x168xf32>
    tpu.vector_store %arg10[%c0_13, %c0_14], %22 {strides = array<i32>} : memref<2x168xf32, #tpu.memory_space<vmem>>, vector<2x168xf32>,
    %c0_15 = arith.constant 0 : index
    %c0_16 = arith.constant 0 : index
    %24 = vector.load %arg6[%c0_15, %c0_16] : memref<128x11xf32, #tpu.memory_space<vmem>>, vector<128x11xf32>
    %cst_17 = arith.constant dense<0.000000e+00> : vector<2x11xf32>
    %25 = tpu.matmul %7, %24, %cst_17 {dimension_numbers = #tpu.dot_dimension_numbers<[1], [0], [0], [1], [0, 0, 1, 1], [], []>} : vector<2x128xf32>, vector<128x11xf32>, vector<2x11xf32> -> vector<2x11xf32>
    %c0_18 = arith.constant 0 : index
    %c0_19 = arith.constant 0 : index
    %26 = vector.load %arg7[%c0_18, %c0_19] : memref<1x11xf32, #tpu.memory_space<vmem>>, vector<1x11xf32>
    %27 = vector.broadcast %26 : vector<1x11xf32> to vector<2x11xf32>
    %28 = arith.addf %25, %27 : vector<2x11xf32>
    %cst_20 = arith.constant dense<0xFF800000> : vector<2xf32>
    %29 = vector.multi_reduction <maximumf>, %28, %cst_20 [1] : vector<2x11xf32> to vector<2xf32>
    %30 = vector.shape_cast %29 : vector<2xf32> to vector<2x1xf32>
    %31 = vector.broadcast %30 : vector<2x1xf32> to vector<2x11xf32>
    %32 = arith.subf %28, %31 : vector<2x11xf32>
    %33 = math.exp %32 : vector<2x11xf32>
    %cst_21 = arith.constant dense<0.000000e+00> : vector<2xf32>
    %34 = vector.multi_reduction <add>, %33, %cst_21 [1] : vector<2x11xf32> to vector<2xf32>
    %35 = vector.shape_cast %34 : vector<2xf32> to vector<2x1xf32>
    %36 = tpu.reciprocal %35 : vector<2x1xf32> -> vector<2x1xf32>
    %37 = vector.broadcast %36 : vector<2x1xf32> to vector<2x11xf32>
    %38 = arith.mulf %33, %37 : vector<2x11xf32>
    %c0_22 = arith.constant 0 : index
    %c0_23 = arith.constant 0 : index
    %39 = vector.load %arg11[%c0_22, %c0_23] : memref<2x11xf32, #tpu.memory_space<vmem>>, vector<2x11xf32>
    tpu.vector_store %arg11[%c0_22, %c0_23], %38 {strides = array<i32>} : memref<2x11xf32, #tpu.memory_space<vmem>>, vector<2x11xf32>,
    %c0_24 = arith.constant 0 : index
    %c0_25 = arith.constant 0 : index
    %40 = vector.load %arg8[%c0_24, %c0_25] : memref<128x7xf32, #tpu.memory_space<vmem>>, vector<128x7xf32>
    %cst_26 = arith.constant dense<0.000000e+00> : vector<2x7xf32>
    %41 = tpu.matmul %7, %40, %cst_26 {dimension_numbers = #tpu.dot_dimension_numbers<[1], [0], [0], [1], [0, 0, 1, 1], [], []>} : vector<2x128xf32>, vector<128x7xf32>, vector<2x7xf32> -> vector<2x7xf32>
    %c0_27 = arith.constant 0 : index
    %c0_28 = arith.constant 0 : index
    %42 = vector.load %arg9[%c0_27, %c0_28] : memref<1x7xf32, #tpu.memory_space<vmem>>, vector<1x7xf32>
    %43 = vector.broadcast %42 : vector<1x7xf32> to vector<2x7xf32>
    %44 = arith.addf %41, %43 : vector<2x7xf32>
    %cst_29 = arith.constant dense<0xFF800000> : vector<2xf32>
    %45 = vector.multi_reduction <maximumf>, %44, %cst_29 [1] : vector<2x7xf32> to vector<2xf32>
    %46 = vector.shape_cast %45 : vector<2xf32> to vector<2x1xf32>
    %47 = vector.broadcast %46 : vector<2x1xf32> to vector<2x7xf32>
    %48 = arith.subf %44, %47 : vector<2x7xf32>
    %49 = math.exp %48 : vector<2x7xf32>
    %cst_30 = arith.constant dense<0.000000e+00> : vector<2xf32>
    %50 = vector.multi_reduction <add>, %49, %cst_30 [1] : vector<2x7xf32> to vector<2xf32>
    %51 = vector.shape_cast %50 : vector<2xf32> to vector<2x1xf32>
    %52 = tpu.reciprocal %51 : vector<2x1xf32> -> vector<2x1xf32>
    %53 = vector.broadcast %52 : vector<2x1xf32> to vector<2x7xf32>
    %54 = arith.mulf %49, %53 : vector<2x7xf32>
    %c0_31 = arith.constant 0 : index
    %c0_32 = arith.constant 0 : index
    %55 = vector.load %arg12[%c0_31, %c0_32] : memref<2x7xf32, #tpu.memory_space<vmem>>, vector<2x7xf32>
    tpu.vector_store %arg12[%c0_31, %c0_32], %54 {strides = array<i32>} : memref<2x7xf32, #tpu.memory_space<vmem>>, vector<2x7xf32>,
    return
  }
  func.func @transform_0(%arg0: i32) -> (i32, i32) {
    %c0_i32 = arith.constant 0 : i32
    %c0_i32_0 = arith.constant 0 : i32
    %c0_i32_1 = arith.constant 0 : i32
    return %c0_i32, %c0_i32_0 : i32, i32
  }
  func.func @transform_1(%arg0: i32) -> (i32, i32) {
    %c0_i32 = arith.constant 0 : i32
    %c0_i32_0 = arith.constant 0 : i32
    %c0_i32_1 = arith.constant 0 : i32
    return %c0_i32, %c0_i32_0 : i32, i32
  }
  func.func @transform_2(%arg0: i32) -> (i32, i32) {
    %c0_i32 = arith.constant 0 : i32
    %c0_i32_0 = arith.constant 0 : i32
    %c0_i32_1 = arith.constant 0 : i32
    return %c0_i32, %c0_i32_0 : i32, i32
  }
  func.func @transform_3(%arg0: i32) -> (i32, i32) {
    %c0_i32 = arith.constant 0 : i32
    %c0_i32_0 = arith.constant 0 : i32
    %c0_i32_1 = arith.constant 0 : i32
    return %c0_i32, %c0_i32_0 : i32, i32
  }
  func.func @transform_4(%arg0: i32) -> (i32, i32) {
    %c0_i32 = arith.constant 0 : i32
    %c0_i32_0 = arith.constant 0 : i32
    %c0_i32_1 = arith.constant 0 : i32
    return %c0_i32, %c0_i32_0 : i32, i32
  }
  func.func @transform_5(%arg0: i32) -> (i32, i32) {
    %c0_i32 = arith.constant 0 : i32
    %c0_i32_0 = arith.constant 0 : i32
    %c0_i32_1 = arith.constant 0 : i32
    return %c0_i32, %c0_i32_0 : i32, i32
  }
  func.func @transform_6(%arg0: i32) -> (i32, i32) {
    %c0_i32 = arith.constant 0 : i32
    %c0_i32_0 = arith.constant 0 : i32
    %c0_i32_1 = arith.constant 0 : i32
    return %c0_i32, %c0_i32_0 : i32, i32
  }
  func.func @transform_7(%arg0: i32) -> (i32, i32) {
    %c0_i32 = arith.constant 0 : i32
    %c0_i32_0 = arith.constant 0 : i32
    %c0_i32_1 = arith.constant 0 : i32
    return %c0_i32, %c0_i32_0 : i32, i32
  }
  func.func @transform_8(%arg0: i32) -> (i32, i32) {
    %c0_i32 = arith.constant 0 : i32
    %c0_i32_0 = arith.constant 0 : i32
    %c0_i32_1 = arith.constant 0 : i32
    return %c0_i32, %c0_i32_0 : i32, i32
  }
  func.func @transform_9(%arg0: i32) -> (i32, i32) {
    %c0_i32 = arith.constant 0 : i32
    %c0_i32_0 = arith.constant 0 : i32
    %c0_i32_1 = arith.constant 0 : i32
    return %c0_i32, %c0_i32_0 : i32, i32
  }
  func.func @transform_10(%arg0: i32) -> (i32, i32) {
    %c0_i32 = arith.constant 0 : i32
    %c0_i32_0 = arith.constant 0 : i32
    %c0_i32_1 = arith.constant 0 : i32
    return %c0_i32, %c0_i32_0 : i32, i32
  }
  func.func @transform_11(%arg0: i32) -> (i32, i32) {
    %c0_i32 = arith.constant 0 : i32
    %c0_i32_0 = arith.constant 0 : i32
    %c0_i32_1 = arith.constant 0 : i32
    return %c0_i32, %c0_i32_0 : i32, i32
  }
}

</mosaic_0001>

<bundles_post_ra>
// kernel: cnn_forward.3
= control target key start
LH: loop header
LB: loop body
LE: loop exit
PB: predicated region body
PF: predicated region fallthrough
CT: control target
= control target key end

     0   :  { %8 = vsyncpa [#allocation3], 0  ;;  %s1573_s0 = inlined_call_operand.vmem [shape: f32[392,9], index: 0, kind: input, shape index: {}]   ;;  %s1574_s1 = inlined_call_operand.hbm [shape: f32[9,32], index: 1, kind: input, shape index: {}]   ;;  %s1575_s2 = inlined_call_operand.hbm [shape: f32[1,32], index: 2, kind: input, shape index: {}]   ;;  %s1576_s3 = inlined_call_operand.vmem [shape: f32[392,32], index: 3, kind: output, shape index: {}]  }
   0x1   :  { %9 = vsyncpa [#allocation5], 0  ;;  %s980_s12 = smov [#allocation2]   ;;  %s932_s16 = scalar_lea.hbm %s1574_s1, 256 }
   0x2   :  { %s17_s13 = sshll.u32 %s980_s12, 4  ;;  %p933_p0 = scmp.ne.s32.totalorder %s1574_s1, %s932_s16  ;;  %s18_s13 = int_to_ptr.vmem [resolvable:$true] %s17_s13 }
   0x3   :  { %p936_p1 = scmp.lt.u32.totalorder %s932_s16, %s1574_s1 }
   0x5   :  { %p938_p2 = pnand %p936_p1, %p933_p0 }
   0x7   :  { %941 = shalt.err (!%p938_p2)
}
   0x8   :  { %s942_s21 = scalar_lea.vmem %s18_s13, 256  ;;  %p947_p4 = scmp.lt.s32.totalorder %s18_s13, %s18_s13 }
   0x9   :  { %p943_p3 = scmp.ne.s32.totalorder %s18_s13, %s942_s21  ;;  %p948_p5 = scmp.lt.s32.totalorder %s942_s21, %s942_s21 }
   0xb   :  { %p949_p6 = por %p948_p5, %p947_p4 }
   0xd   :  { %p950_p7 = pnand %p949_p6, %p943_p3 }
   0xf   :  { %953 = shalt.err (!%p950_p7)
}
  0x10   :  { %s981_s22 = smov 128   ;;  %s982_s23 = smov 8  }
  0x11   :  { %23 = dma.hbm_to_vmem [thread:$0]  %s1574_s1, 256, %s18_s13, [#allocation3], %s981_s22, %s981_s22, %s982_s23  }
  0x12   :  { %s983_s26 = smov [#allocation4]   ;;  %s954_s30 = scalar_lea.hbm %s1575_s2, 16 }
  0x13   :  { %s30_s27 = sshll.u32 %s983_s26, 4  ;;  %p955_p8 = scmp.ne.s32.totalorder %s1575_s2, %s954_s30  ;;  %s31_s27 = int_to_ptr.vmem [resolvable:$true] %s30_s27 }
  0x14   :  { %p958_p9 = scmp.lt.u32.totalorder %s954_s30, %s1575_s2 }
  0x16   :  { %p960_p10 = pnand %p958_p9, %p955_p8 }
  0x18   :  { %963 = shalt.err (!%p960_p10)
}
  0x19   :  { %s964_s8 = scalar_lea.vmem %s31_s27, 16  ;;  %s968_s1 = scalar_lea.vmem %s31_s27, 32 }
  0x1a   :  { %p965_p11 = scmp.ne.s32.totalorder %s31_s27, %s964_s8  ;;  %p969_p12 = scmp.lt.s32.totalorder %s31_s27, %s31_s27 }
  0x1b   :  { %p970_p13 = scmp.lt.s32.totalorder %s968_s1, %s964_s8 }
  0x1d   :  { %p971_p0 = por %p970_p13, %p969_p12 }
  0x1f   :  { %p972_p1 = pnand %p971_p0, %p965_p11 }
  0x21   :  { %975 = shalt.err (!%p972_p1)
}
  0x22   :  { %33 = dma.hbm_to_vmem [thread:$0]  %s1575_s2, 16, %s31_s27, [#allocation5]  }
  0x23   :  { %976 = dma.done.wait [#allocation3], 256  }
  0x24   :  { %977 = vsyncadd [#allocation3], 4294967040 }
  0x25   :  { %978 = dma.done.wait [#allocation5], 16  }
  0x26   :  { %979 = vsyncadd [#allocation5], 4294967280  ;;  %v984_v0 = vmov 0.0|0.0   ;;  %vm985_vm0 = vmmov 0   ;;  %v986_v1 = vmov 0.0   ;;  %vm246_vm1 = vcmask 1040384  }
  0x27   :  { %918 = vmatprep.subr.bf16.mxu0 %v984_v0  ;;  %922 = vmatprep.subr.bf16.mxu1 %v984_v0  ;;  %v89_v2 = vld [vmem:[#allocation2] sm:$0xff]  ;;  %v90_v3 = vld [vmem:[#allocation2 + $0x8] sm:$0x1]  ;;  %vm987_vm2 = vmmov 1   ;;  %vm98_vm4 = vcmask 72704   ;;  %v66_v8 = vld [vmem:[%s1573_s0 + $0xd0] sm:$0xff] }
  0x28   :  { %771 = vmatprep.mubr.msk.f32.mxu0 %vm985_vm0, %v986_v1  ;;  %846 = vmatprep.mubr.msk.f32.mxu1 %vm985_vm0, %v986_v1  ;;  %vm920_vm3 = vmpackc.low %vm246_vm1, %vm987_vm2  ;;  %v919_v4 = vpack.c.bf16 %v90_v3, %v89_v2  ;;  %v40_v5 = vld [vmem:[%s1573_s0] sm:$0xff]  ;;  %v65_v6 = vld [vmem:[%s1573_s0 + $0xc8] sm:$0xff]  ;;  %vm609_vm5 = vcmask 261120  }
  0x29   :  { %v41_v7 = vld [vmem:[%s1573_s0 + $0x8] sm:$0xff]  ;;  %v42_v9 = vld [vmem:[%s1573_s0 + $0x10] sm:$0xff]  ;;  %v67_v10 = vld [vmem:[%s1573_s0 + $0xd8] sm:$0xff] }
  0x2a   :  { %921 = vmatpush3.bf16.msk.msra.mxu0 %vm920_vm3, %v919_v4  ;;  %923 = vmatpush3.bf16.msk.msra.mxu1 %vm920_vm3, %v919_v4  ;;  %v43_v11 = vld [vmem:[%s1573_s0 + $0x18] sm:$0xff]  ;;  %v68_v12 = vld [vmem:[%s1573_s0 + $0xe0] sm:$0xff]  ;;  %v69_v14 = vld [vmem:[%s1573_s0 + $0xe8] sm:$0xff] }
  0x2b   :  { %v44_v13 = vld [vmem:[%s1573_s0 + $0x20] sm:$0xff]  ;;  %v45_v15 = vld [vmem:[%s1573_s0 + $0x28] sm:$0xff]  ;;  %v70_v16 = vld [vmem:[%s1573_s0 + $0xf0] sm:$0xff] }
  0x2c   :  { %v46_v17 = vld [vmem:[%s1573_s0 + $0x30] sm:$0xff]  ;;  %v71_v18 = vld [vmem:[%s1573_s0 + $0xf8] sm:$0xff]  ;;  %v72_v20 = vld [vmem:[%s1573_s0 + $0x100] sm:$0xff] }
  0x2d   :  { %772 = vmatmul.mubr.msk.f32.vlgmr.msra.gmra.mrb[0].mxu0 %vm98_vm4, %v40_v5  ;;  %847 = vmatmul.mubr.msk.f32.vlgmr.msra.gmra.mrb[0].mxu1 %vm98_vm4, %v65_v6  ;;  %v47_v19 = vld [vmem:[%s1573_s0 + $0x38] sm:$0xff]  ;;  %v48_v21 = vld [vmem:[%s1573_s0 + $0x40] sm:$0xff]  ;;  %v73_v22 = vld [vmem:[%s1573_s0 + $0x108] sm:$0xff] }
  0x2e   :  { %774 = vmatprep.mubr.msk.f32.mxu0 %vm985_vm0, %v986_v1  ;;  %849 = vmatprep.mubr.msk.f32.mxu1 %vm985_vm0, %v986_v1  ;;  %v49_v23 = vld [vmem:[%s1573_s0 + $0x48] sm:$0xff]  ;;  %v74_v24 = vld [vmem:[%s1573_s0 + $0x110] sm:$0xff]  ;;  %v75_v26 = vld [vmem:[%s1573_s0 + $0x118] sm:$0xff] }
  0x2f   :  { %v50_v25 = vld [vmem:[%s1573_s0 + $0x50] sm:$0xff]  ;;  %v51_v27 = vld [vmem:[%s1573_s0 + $0x58] sm:$0xff]  ;;  %v76_v28 = vld [vmem:[%s1573_s0 + $0x120] sm:$0xff] }
  0x30   :  { %v52_v29 = vld [vmem:[%s1573_s0 + $0x60] sm:$0xff]  ;;  %v77_v30 = vld [vmem:[%s1573_s0 + $0x128] sm:$0xff]  ;;  %v78_v32 = vld [vmem:[%s1573_s0 + $0x130] sm:$0xff] }
  0x31   :  { %775 = vmatmul.mubr.msk.f32.gmra.mrb[2].mxu0 %vm98_vm4, %v41_v7  ;;  %850 = vmatmul.mubr.msk.f32.gmra.mrb[2].mxu1 %vm98_vm4, %v66_v8  ;;  %v53_v31 = vld [vmem:[%s1573_s0 + $0x68] sm:$0xff]  ;;  %v54_v33 = vld [vmem:[%s1573_s0 + $0x70] sm:$0xff]  ;;  %v79_v34 = vld [vmem:[%s1573_s0 + $0x138] sm:$0xff] }
  0x32   :  { %777 = vmatprep.mubr.msk.f32.mxu0 %vm985_vm0, %v986_v1  ;;  %852 = vmatprep.mubr.msk.f32.mxu1 %vm985_vm0, %v986_v1  ;;  %v55_v35 = vld [vmem:[%s1573_s0 + $0x78] sm:$0xff]  ;;  %v80_v36 = vld [vmem:[%s1573_s0 + $0x140] sm:$0xff]  ;;  %v81_v38 = vld [vmem:[%s1573_s0 + $0x148] sm:$0xff] }
  0x33   :  { %v56_v37 = vld [vmem:[%s1573_s0 + $0x80] sm:$0xff]  ;;  %v57_v39 = vld [vmem:[%s1573_s0 + $0x88] sm:$0xff]  ;;  %v82_v40 = vld [vmem:[%s1573_s0 + $0x150] sm:$0xff] }
  0x34   :  { %v58_v41 = vld [vmem:[%s1573_s0 + $0x90] sm:$0xff]  ;;  %v83_v42 = vld [vmem:[%s1573_s0 + $0x158] sm:$0xff]  ;;  %v84_v44 = vld [vmem:[%s1573_s0 + $0x160] sm:$0xff] }
  0x35   :  { %778 = vmatmul.mubr.msk.f32.gmra.mrb[4].mxu0 %vm98_vm4, %v42_v9  ;;  %853 = vmatmul.mubr.msk.f32.gmra.mrb[4].mxu1 %vm98_vm4, %v67_v10  ;;  %v59_v43 = vld [vmem:[%s1573_s0 + $0x98] sm:$0xff]  ;;  %v60_v45 = vld [vmem:[%s1573_s0 + $0xa0] sm:$0xff]  ;;  %v85_v46 = vld [vmem:[%s1573_s0 + $0x168] sm:$0xff] }
  0x36   :  { %780 = vmatprep.mubr.msk.f32.mxu0 %vm985_vm0, %v986_v1  ;;  %855 = vmatprep.mubr.msk.f32.mxu1 %vm985_vm0, %v986_v1  ;;  %v61_v47 = vld [vmem:[%s1573_s0 + $0xa8] sm:$0xff]  ;;  %v86_v48 = vld [vmem:[%s1573_s0 + $0x170] sm:$0xff]  ;;  %v87_v50 = vld [vmem:[%s1573_s0 + $0x178] sm:$0xff] }
  0x37   :  { %v62_v49 = vld [vmem:[%s1573_s0 + $0xb0] sm:$0xff]  ;;  %v63_v51 = vld [vmem:[%s1573_s0 + $0xb8] sm:$0xff]  ;;  %v88_v52 = vld [vmem:[%s1573_s0 + $0x180] sm:$0xff] }
  0x38   :  { %v64_v53 = vld [vmem:[%s1573_s0 + $0xc0] sm:$0xff]  ;;  %v1326_v54 = vld [vmem:[#allocation4] ss:$0 sm:$0xff] }
  0x39   :  { %781 = vmatmul.mubr.msk.f32.gmra.mrb[6].mxu0 %vm98_vm4, %v43_v11  ;;  %856 = vmatmul.mubr.msk.f32.gmra.mrb[6].mxu1 %vm98_vm4, %v68_v12 }
  0x3a   :  { %783 = vmatprep.mubr.msk.f32.mxu0 %vm985_vm0, %v986_v1  ;;  %858 = vmatprep.mubr.msk.f32.mxu1 %vm985_vm0, %v986_v1 }
  0x3d   :  { %784 = vmatmul.mubr.msk.f32.gmra.mrb[8].mxu0 %vm98_vm4, %v44_v13  ;;  %859 = vmatmul.mubr.msk.f32.gmra.mrb[8].mxu1 %vm98_vm4, %v69_v14 }
  0x3e   :  { %786 = vmatprep.mubr.msk.f32.mxu0 %vm985_vm0, %v986_v1  ;;  %861 = vmatprep.mubr.msk.f32.mxu1 %vm985_vm0, %v986_v1 }
  0x41   :  { %787 = vmatmul.mubr.msk.f32.gmra.mrb[10].mxu0 %vm98_vm4, %v45_v15  ;;  %862 = vmatmul.mubr.msk.f32.gmra.mrb[10].mxu1 %vm98_vm4, %v70_v16 }
  0x42   :  { %789 = vmatprep.mubr.msk.f32.mxu0 %vm985_vm0, %v986_v1  ;;  %864 = vmatprep.mubr.msk.f32.mxu1 %vm985_vm0, %v986_v1 }
  0x45   :  { %790 = vmatmul.mubr.msk.f32.gmra.mrb[12].mxu0 %vm98_vm4, %v46_v17  ;;  %865 = vmatmul.mubr.msk.f32.gmra.mrb[12].mxu1 %vm98_vm4, %v71_v18 }
  0x46   :  { %792 = vmatprep.mubr.msk.f32.mxu0 %vm985_vm0, %v986_v1  ;;  %867 = vmatprep.mubr.msk.f32.mxu1 %vm985_vm0, %v986_v1 }
  0x49   :  { %793 = vmatmul.mubr.msk.f32.gmra.mrb[14].mxu0 %vm98_vm4, %v47_v19  ;;  %868 = vmatmul.mubr.msk.f32.gmra.mrb[14].mxu1 %vm98_vm4, %v72_v20 }
  0x4a   :  { %795 = vmatprep.mubr.msk.f32.mxu0 %vm985_vm0, %v986_v1  ;;  %870 = vmatprep.mubr.msk.f32.mxu1 %vm985_vm0, %v986_v1 }
  0x4d   :  { %796 = vmatmul.mubr.msk.f32.gmra.mrb[16].mxu0 %vm98_vm4, %v48_v21  ;;  %871 = vmatmul.mubr.msk.f32.gmra.mrb[16].mxu1 %vm98_vm4, %v73_v22 }
  0x4e   :  { %798 = vmatprep.mubr.msk.f32.mxu0 %vm985_vm0, %v986_v1  ;;  %873 = vmatprep.mubr.msk.f32.mxu1 %vm985_vm0, %v986_v1 }
  0x51   :  { %799 = vmatmul.mubr.msk.f32.gmra.mrb[18].mxu0 %vm98_vm4, %v49_v23  ;;  %874 = vmatmul.mubr.msk.f32.gmra.mrb[18].mxu1 %vm98_vm4, %v74_v24 }
  0x52   :  { %801 = vmatprep.mubr.msk.f32.mxu0 %vm985_vm0, %v986_v1  ;;  %876 = vmatprep.mubr.msk.f32.mxu1 %vm985_vm0, %v986_v1 }
  0x55   :  { %802 = vmatmul.mubr.msk.f32.gmra.mrb[20].mxu0 %vm98_vm4, %v50_v25  ;;  %877 = vmatmul.mubr.msk.f32.gmra.mrb[20].mxu1 %vm98_vm4, %v75_v26 }
  0x56   :  { %804 = vmatprep.mubr.msk.f32.mxu0 %vm985_vm0, %v986_v1  ;;  %879 = vmatprep.mubr.msk.f32.mxu1 %vm985_vm0, %v986_v1 }
  0x59   :  { %805 = vmatmul.mubr.msk.f32.gmra.mrb[22].mxu0 %vm98_vm4, %v51_v27  ;;  %880 = vmatmul.mubr.msk.f32.gmra.mrb[22].mxu1 %vm98_vm4, %v76_v28 }
  0x5a   :  { %807 = vmatprep.mubr.msk.f32.mxu0 %vm985_vm0, %v986_v1  ;;  %882 = vmatprep.mubr.msk.f32.mxu1 %vm985_vm0, %v986_v1 }
  0x5d   :  { %808 = vmatmul.mubr.msk.f32.gmra.mrb[24].mxu0 %vm98_vm4, %v52_v29  ;;  %883 = vmatmul.mubr.msk.f32.gmra.mrb[24].mxu1 %vm98_vm4, %v77_v30 }
  0x5e   :  { %810 = vmatprep.mubr.msk.f32.mxu0 %vm985_vm0, %v986_v1  ;;  %885 = vmatprep.mubr.msk.f32.mxu1 %vm985_vm0, %v986_v1 }
  0x61   :  { %811 = vmatmul.mubr.msk.f32.gmra.mrb[26].mxu0 %vm98_vm4, %v53_v31  ;;  %886 = vmatmul.mubr.msk.f32.gmra.mrb[26].mxu1 %vm98_vm4, %v78_v32 }
  0x62   :  { %813 = vmatprep.mubr.msk.f32.mxu0 %vm985_vm0, %v986_v1  ;;  %888 = vmatprep.mubr.msk.f32.mxu1 %vm985_vm0, %v986_v1 }
  0x65   :  { %814 = vmatmul.mubr.msk.f32.gmra.mrb[28].mxu0 %vm98_vm4, %v54_v33  ;;  %889 = vmatmul.mubr.msk.f32.gmra.mrb[28].mxu1 %vm98_vm4, %v79_v34 }
  0x66   :  { %816 = vmatprep.mubr.msk.f32.mxu0 %vm985_vm0, %v986_v1  ;;  %891 = vmatprep.mubr.msk.f32.mxu1 %vm985_vm0, %v986_v1 }
  0x69   :  { %817 = vmatmul.mubr.msk.f32.gmra.mrb[30].mxu0 %vm98_vm4, %v55_v35  ;;  %892 = vmatmul.mubr.msk.f32.gmra.mrb[30].mxu1 %vm98_vm4, %v80_v36 }
  0x6a   :  { %819 = vmatprep.mubr.msk.f32.mxu0 %vm985_vm0, %v986_v1  ;;  %894 = vmatprep.mubr.msk.f32.mxu1 %vm985_vm0, %v986_v1 }
  0x6d   :  { %820 = vmatmul.mubr.msk.f32.gmra.mrb[32].mxu0 %vm98_vm4, %v56_v37  ;;  %895 = vmatmul.mubr.msk.f32.gmra.mrb[32].mxu1 %vm98_vm4, %v81_v38 }
  0x6e   :  { %822 = vmatprep.mubr.msk.f32.mxu0 %vm985_vm0, %v986_v1  ;;  %897 = vmatprep.mubr.msk.f32.mxu1 %vm985_vm0, %v986_v1 }
  0x71   :  { %823 = vmatmul.mubr.msk.f32.gmra.mrb[34].mxu0 %vm98_vm4, %v57_v39  ;;  %898 = vmatmul.mubr.msk.f32.gmra.mrb[34].mxu1 %vm98_vm4, %v82_v40 }
  0x72   :  { %825 = vmatprep.mubr.msk.f32.mxu0 %vm985_vm0, %v986_v1  ;;  %900 = vmatprep.mubr.msk.f32.mxu1 %vm985_vm0, %v986_v1 }
  0x75   :  { %826 = vmatmul.mubr.msk.f32.gmra.mrb[36].mxu0 %vm98_vm4, %v58_v41  ;;  %901 = vmatmul.mubr.msk.f32.gmra.mrb[36].mxu1 %vm98_vm4, %v83_v42 }
  0x76   :  { %828 = vmatprep.mubr.msk.f32.mxu0 %vm985_vm0, %v986_v1  ;;  %903 = vmatprep.mubr.msk.f32.mxu1 %vm985_vm0, %v986_v1 }
  0x79   :  { %829 = vmatmul.mubr.msk.f32.gmra.mrb[38].mxu0 %vm98_vm4, %v59_v43  ;;  %904 = vmatmul.mubr.msk.f32.gmra.mrb[38].mxu1 %vm98_vm4, %v84_v44 }
  0x7a   :  { %831 = vmatprep.mubr.msk.f32.mxu0 %vm985_vm0, %v986_v1  ;;  %906 = vmatprep.mubr.msk.f32.mxu1 %vm985_vm0, %v986_v1 }
  0x7d   :  { %832 = vmatmul.mubr.msk.f32.gmra.mrb[40].mxu0 %vm98_vm4, %v60_v45  ;;  %907 = vmatmul.mubr.msk.f32.gmra.mrb[40].mxu1 %vm98_vm4, %v85_v46 }
  0x7e   :  { %834 = vmatprep.mubr.msk.f32.mxu0 %vm985_vm0, %v986_v1  ;;  %909 = vmatprep.mubr.msk.f32.mxu1 %vm985_vm0, %v986_v1 }
  0x81   :  { %835 = vmatmul.mubr.msk.f32.gmra.mrb[42].mxu0 %vm98_vm4, %v61_v47  ;;  %910 = vmatmul.mubr.msk.f32.gmra.mrb[42].mxu1 %vm98_vm4, %v86_v48 }
  0x82   :  { %837 = vmatprep.mubr.msk.f32.mxu0 %vm985_vm0, %v986_v1  ;;  %912 = vmatprep.mubr.msk.f32.mxu1 %vm985_vm0, %v986_v1 }
  0x85   :  { %838 = vmatmul.mubr.msk.f32.gmra.mrb[44].mxu0 %vm98_vm4, %v62_v49  ;;  %913 = vmatmul.mubr.msk.f32.gmra.mrb[44].mxu1 %vm98_vm4, %v87_v50 }
  0x86   :  { %840 = vmatprep.mubr.msk.f32.mxu0 %vm985_vm0, %v986_v1  ;;  %915 = vmatprep.mubr.msk.f32.mxu1 %vm985_vm0, %v986_v1 }
  0x89   :  { %841 = vmatmul.mubr.msk.f32.gmra.mrb[46].mxu0 %vm98_vm4, %v63_v51  ;;  %916 = vmatmul.mubr.msk.f32.gmra.mrb[46].mxu1 %vm98_vm4, %v88_v52 }
  0x8a   :  { %843 = vmatprep.mubr.msk.f32.mxu0 %vm985_vm0, %v986_v1 }
  0x8d   :  { %844 = vmatmul.mubr.msk.f32.gmra.mrb[48].mxu0 %vm98_vm4, %v64_v53 }
 0x100   :  { %v316_v55 = vpop.f32.mrb[0].mxu0  ;;  %v441_v56 = vpop.f32.mrb[0].mxu1 }
 0x101   :  { %v317_v57 = vadd.f32 %v1326_v54, %v316_v55  ;;  %v773_v58 = vpop.f32.mrb[1].mxu0  ;;  %v442_v59 = vadd.f32 %v1326_v54, %v441_v56  ;;  %v848_v60 = vpop.f32.mrb[1].mxu1 }
 0x103   :  { %v560_v61 = vmax.f32 %v317_v57, 0.0  ;;  %v585_v62 = vmax.f32 %v442_v59, 0.0 }
 0x104   :  { %v321_v63 = vpop.f32.mrb[2].mxu0  ;;  %v446_v0 = vpop.f32.mrb[2].mxu1 }
 0x105   :  { %610 = vst.msk [vmem:[%s1576_s3] sm:$0xff] %vm609_vm5, %v560_v61  ;;  %635 = vst.msk [vmem:[%s1576_s3 + $0xc8] sm:$0xff] %vm609_vm5, %v585_v62  ;;  %v322_v1 = vadd.f32 %v1326_v54, %v321_v63  ;;  %v776_v2 = vpop.f32.mrb[3].mxu0  ;;  %v447_v3 = vadd.f32 %v1326_v54, %v446_v0  ;;  %v851_v4 = vpop.f32.mrb[3].mxu1 }
 0x107   :  { %v561_v5 = vmax.f32 %v322_v1, 0.0  ;;  %v586_v6 = vmax.f32 %v447_v3, 0.0 }
 0x108   :  { %v326_v7 = vpop.f32.mrb[4].mxu0  ;;  %v451_v8 = vpop.f32.mrb[4].mxu1 }
 0x109   :  { %611 = vst.msk [vmem:[%s1576_s3 + $0x8] sm:$0xff] %vm609_vm5, %v561_v5  ;;  %636 = vst.msk [vmem:[%s1576_s3 + $0xd0] sm:$0xff] %vm609_vm5, %v586_v6  ;;  %v327_v9 = vadd.f32 %v1326_v54, %v326_v7  ;;  %v779_v10 = vpop.f32.mrb[5].mxu0  ;;  %v452_v11 = vadd.f32 %v1326_v54, %v451_v8  ;;  %v854_v12 = vpop.f32.mrb[5].mxu1 }
 0x10b   :  { %v562_v13 = vmax.f32 %v327_v9, 0.0  ;;  %v587_v14 = vmax.f32 %v452_v11, 0.0 }
 0x10c   :  { %v331_v15 = vpop.f32.mrb[6].mxu0  ;;  %v456_v16 = vpop.f32.mrb[6].mxu1 }
 0x10d   :  { %612 = vst.msk [vmem:[%s1576_s3 + $0x10] sm:$0xff] %vm609_vm5, %v562_v13  ;;  %637 = vst.msk [vmem:[%s1576_s3 + $0xd8] sm:$0xff] %vm609_vm5, %v587_v14  ;;  %v332_v17 = vadd.f32 %v1326_v54, %v331_v15  ;;  %v782_v18 = vpop.f32.mrb[7].mxu0  ;;  %v457_v19 = vadd.f32 %v1326_v54, %v456_v16  ;;  %v857_v20 = vpop.f32.mrb[7].mxu1 }
 0x10f   :  { %v563_v21 = vmax.f32 %v332_v17, 0.0  ;;  %v588_v22 = vmax.f32 %v457_v19, 0.0 }
 0x110   :  { %v336_v23 = vpop.f32.mrb[8].mxu0  ;;  %v461_v24 = vpop.f32.mrb[8].mxu1 }
 0x111   :  { %613 = vst.msk [vmem:[%s1576_s3 + $0x18] sm:$0xff] %vm609_vm5, %v563_v21  ;;  %638 = vst.msk [vmem:[%s1576_s3 + $0xe0] sm:$0xff] %vm609_vm5, %v588_v22  ;;  %v337_v25 = vadd.f32 %v1326_v54, %v336_v23  ;;  %v785_v26 = vpop.f32.mrb[9].mxu0  ;;  %v462_v27 = vadd.f32 %v1326_v54, %v461_v24  ;;  %v860_v28 = vpop.f32.mrb[9].mxu1 }
 0x113   :  { %v564_v29 = vmax.f32 %v337_v25, 0.0  ;;  %v589_v30 = vmax.f32 %v462_v27, 0.0 }
 0x114   :  { %v341_v31 = vpop.f32.mrb[10].mxu0  ;;  %v466_v32 = vpop.f32.mrb[10].mxu1 }
 0x115   :  { %614 = vst.msk [vmem:[%s1576_s3 + $0x20] sm:$0xff] %vm609_vm5, %v564_v29  ;;  %639 = vst.msk [vmem:[%s1576_s3 + $0xe8] sm:$0xff] %vm609_vm5, %v589_v30  ;;  %v342_v33 = vadd.f32 %v1326_v54, %v341_v31  ;;  %v788_v34 = vpop.f32.mrb[11].mxu0  ;;  %v467_v35 = vadd.f32 %v1326_v54, %v466_v32  ;;  %v863_v36 = vpop.f32.mrb[11].mxu1 }
 0x117   :  { %v565_v37 = vmax.f32 %v342_v33, 0.0  ;;  %v590_v38 = vmax.f32 %v467_v35, 0.0 }
 0x118   :  { %v346_v39 = vpop.f32.mrb[12].mxu0  ;;  %v471_v40 = vpop.f32.mrb[12].mxu1 }
 0x119   :  { %615 = vst.msk [vmem:[%s1576_s3 + $0x28] sm:$0xff] %vm609_vm5, %v565_v37  ;;  %640 = vst.msk [vmem:[%s1576_s3 + $0xf0] sm:$0xff] %vm609_vm5, %v590_v38  ;;  %v347_v41 = vadd.f32 %v1326_v54, %v346_v39  ;;  %v791_v42 = vpop.f32.mrb[13].mxu0  ;;  %v472_v43 = vadd.f32 %v1326_v54, %v471_v40  ;;  %v866_v44 = vpop.f32.mrb[13].mxu1 }
 0x11b   :  { %v566_v45 = vmax.f32 %v347_v41, 0.0  ;;  %v591_v46 = vmax.f32 %v472_v43, 0.0 }
 0x11c   :  { %v351_v47 = vpop.f32.mrb[14].mxu0  ;;  %v476_v48 = vpop.f32.mrb[14].mxu1 }
 0x11d   :  { %616 = vst.msk [vmem:[%s1576_s3 + $0x30] sm:$0xff] %vm609_vm5, %v566_v45  ;;  %641 = vst.msk [vmem:[%s1576_s3 + $0xf8] sm:$0xff] %vm609_vm5, %v591_v46  ;;  %v352_v49 = vadd.f32 %v1326_v54, %v351_v47  ;;  %v794_v50 = vpop.f32.mrb[15].mxu0  ;;  %v477_v51 = vadd.f32 %v1326_v54, %v476_v48  ;;  %v869_v52 = vpop.f32.mrb[15].mxu1 }
 0x11f   :  { %v567_v53 = vmax.f32 %v352_v49, 0.0  ;;  %v592_v55 = vmax.f32 %v477_v51, 0.0 }
 0x120   :  { %v356_v56 = vpop.f32.mrb[16].mxu0  ;;  %v481_v57 = vpop.f32.mrb[16].mxu1 }
 0x121   :  { %617 = vst.msk [vmem:[%s1576_s3 + $0x38] sm:$0xff] %vm609_vm5, %v567_v53  ;;  %642 = vst.msk [vmem:[%s1576_s3 + $0x100] sm:$0xff] %vm609_vm5, %v592_v55  ;;  %v357_v58 = vadd.f32 %v1326_v54, %v356_v56  ;;  %v797_v59 = vpop.f32.mrb[17].mxu0  ;;  %v482_v60 = vadd.f32 %v1326_v54, %v481_v57  ;;  %v872_v61 = vpop.f32.mrb[17].mxu1 }
 0x123   :  { %v568_v62 = vmax.f32 %v357_v58, 0.0  ;;  %v593_v63 = vmax.f32 %v482_v60, 0.0 }
 0x124   :  { %v361_v0 = vpop.f32.mrb[18].mxu0  ;;  %v486_v1 = vpop.f32.mrb[18].mxu1 }
 0x125   :  { %618 = vst.msk [vmem:[%s1576_s3 + $0x40] sm:$0xff] %vm609_vm5, %v568_v62  ;;  %643 = vst.msk [vmem:[%s1576_s3 + $0x108] sm:$0xff] %vm609_vm5, %v593_v63  ;;  %v362_v2 = vadd.f32 %v1326_v54, %v361_v0  ;;  %v800_v3 = vpop.f32.mrb[19].mxu0  ;;  %v487_v4 = vadd.f32 %v1326_v54, %v486_v1  ;;  %v875_v5 = vpop.f32.mrb[19].mxu1 }
 0x127   :  { %v569_v6 = vmax.f32 %v362_v2, 0.0  ;;  %v594_v7 = vmax.f32 %v487_v4, 0.0 }
 0x128   :  { %v366_v8 = vpop.f32.mrb[20].mxu0  ;;  %v491_v9 = vpop.f32.mrb[20].mxu1 }
 0x129   :  { %619 = vst.msk [vmem:[%s1576_s3 + $0x48] sm:$0xff] %vm609_vm5, %v569_v6  ;;  %644 = vst.msk [vmem:[%s1576_s3 + $0x110] sm:$0xff] %vm609_vm5, %v594_v7  ;;  %v367_v10 = vadd.f32 %v1326_v54, %v366_v8  ;;  %v803_v11 = vpop.f32.mrb[21].mxu0  ;;  %v492_v12 = vadd.f32 %v1326_v54, %v491_v9  ;;  %v878_v13 = vpop.f32.mrb[21].mxu1 }
 0x12b   :  { %v570_v14 = vmax.f32 %v367_v10, 0.0  ;;  %v595_v15 = vmax.f32 %v492_v12, 0.0 }
 0x12c   :  { %v371_v16 = vpop.f32.mrb[22].mxu0  ;;  %v496_v17 = vpop.f32.mrb[22].mxu1 }
 0x12d   :  { %620 = vst.msk [vmem:[%s1576_s3 + $0x50] sm:$0xff] %vm609_vm5, %v570_v14  ;;  %645 = vst.msk [vmem:[%s1576_s3 + $0x118] sm:$0xff] %vm609_vm5, %v595_v15  ;;  %v372_v18 = vadd.f32 %v1326_v54, %v371_v16  ;;  %v806_v19 = vpop.f32.mrb[23].mxu0  ;;  %v497_v20 = vadd.f32 %v1326_v54, %v496_v17  ;;  %v881_v21 = vpop.f32.mrb[23].mxu1 }
 0x12f   :  { %v571_v22 = vmax.f32 %v372_v18, 0.0  ;;  %v596_v23 = vmax.f32 %v497_v20, 0.0 }
 0x130   :  { %v376_v24 = vpop.f32.mrb[24].mxu0  ;;  %v501_v25 = vpop.f32.mrb[24].mxu1 }
 0x131   :  { %621 = vst.msk [vmem:[%s1576_s3 + $0x58] sm:$0xff] %vm609_vm5, %v571_v22  ;;  %646 = vst.msk [vmem:[%s1576_s3 + $0x120] sm:$0xff] %vm609_vm5, %v596_v23  ;;  %v377_v26 = vadd.f32 %v1326_v54, %v376_v24  ;;  %v809_v27 = vpop.f32.mrb[25].mxu0  ;;  %v502_v28 = vadd.f32 %v1326_v54, %v501_v25  ;;  %v884_v29 = vpop.f32.mrb[25].mxu1 }
 0x133   :  { %v572_v30 = vmax.f32 %v377_v26, 0.0  ;;  %v597_v31 = vmax.f32 %v502_v28, 0.0 }
 0x134   :  { %v381_v32 = vpop.f32.mrb[26].mxu0  ;;  %v506_v33 = vpop.f32.mrb[26].mxu1 }
 0x135   :  { %622 = vst.msk [vmem:[%s1576_s3 + $0x60] sm:$0xff] %vm609_vm5, %v572_v30  ;;  %647 = vst.msk [vmem:[%s1576_s3 + $0x128] sm:$0xff] %vm609_vm5, %v597_v31  ;;  %v382_v34 = vadd.f32 %v1326_v54, %v381_v32  ;;  %v812_v35 = vpop.f32.mrb[27].mxu0  ;;  %v507_v36 = vadd.f32 %v1326_v54, %v506_v33  ;;  %v887_v37 = vpop.f32.mrb[27].mxu1 }
 0x137   :  { %v573_v38 = vmax.f32 %v382_v34, 0.0  ;;  %v598_v39 = vmax.f32 %v507_v36, 0.0 }
 0x138   :  { %v386_v40 = vpop.f32.mrb[28].mxu0  ;;  %v511_v41 = vpop.f32.mrb[28].mxu1 }
 0x139   :  { %623 = vst.msk [vmem:[%s1576_s3 + $0x68] sm:$0xff] %vm609_vm5, %v573_v38  ;;  %648 = vst.msk [vmem:[%s1576_s3 + $0x130] sm:$0xff] %vm609_vm5, %v598_v39  ;;  %v387_v42 = vadd.f32 %v1326_v54, %v386_v40  ;;  %v815_v43 = vpop.f32.mrb[29].mxu0  ;;  %v512_v44 = vadd.f32 %v1326_v54, %v511_v41  ;;  %v890_v45 = vpop.f32.mrb[29].mxu1 }
 0x13b   :  { %v574_v46 = vmax.f32 %v387_v42, 0.0  ;;  %v599_v47 = vmax.f32 %v512_v44, 0.0 }
 0x13c   :  { %v391_v48 = vpop.f32.mrb[30].mxu0  ;;  %v516_v49 = vpop.f32.mrb[30].mxu1 }
 0x13d   :  { %624 = vst.msk [vmem:[%s1576_s3 + $0x70] sm:$0xff] %vm609_vm5, %v574_v46  ;;  %649 = vst.msk [vmem:[%s1576_s3 + $0x138] sm:$0xff] %vm609_vm5, %v599_v47  ;;  %v392_v50 = vadd.f32 %v1326_v54, %v391_v48  ;;  %v818_v51 = vpop.f32.mrb[31].mxu0  ;;  %v517_v52 = vadd.f32 %v1326_v54, %v516_v49  ;;  %v893_v53 = vpop.f32.mrb[31].mxu1 }
 0x13f   :  { %v575_v55 = vmax.f32 %v392_v50, 0.0  ;;  %v600_v56 = vmax.f32 %v517_v52, 0.0 }
 0x140   :  { %v396_v57 = vpop.f32.mrb[32].mxu0  ;;  %v521_v58 = vpop.f32.mrb[32].mxu1 }
 0x141   :  { %625 = vst.msk [vmem:[%s1576_s3 + $0x78] sm:$0xff] %vm609_vm5, %v575_v55  ;;  %650 = vst.msk [vmem:[%s1576_s3 + $0x140] sm:$0xff] %vm609_vm5, %v600_v56  ;;  %v397_v59 = vadd.f32 %v1326_v54, %v396_v57  ;;  %v821_v60 = vpop.f32.mrb[33].mxu0  ;;  %v522_v61 = vadd.f32 %v1326_v54, %v521_v58  ;;  %v896_v62 = vpop.f32.mrb[33].mxu1 }
 0x143   :  { %v576_v63 = vmax.f32 %v397_v59, 0.0  ;;  %v601_v0 = vmax.f32 %v522_v61, 0.0 }
 0x144   :  { %v401_v1 = vpop.f32.mrb[34].mxu0  ;;  %v526_v2 = vpop.f32.mrb[34].mxu1 }
 0x145   :  { %626 = vst.msk [vmem:[%s1576_s3 + $0x80] sm:$0xff] %vm609_vm5, %v576_v63  ;;  %651 = vst.msk [vmem:[%s1576_s3 + $0x148] sm:$0xff] %vm609_vm5, %v601_v0  ;;  %v402_v3 = vadd.f32 %v1326_v54, %v401_v1  ;;  %v824_v4 = vpop.f32.mrb[35].mxu0  ;;  %v527_v5 = vadd.f32 %v1326_v54, %v526_v2  ;;  %v899_v6 = vpop.f32.mrb[35].mxu1 }
 0x147   :  { %v577_v7 = vmax.f32 %v402_v3, 0.0  ;;  %v602_v8 = vmax.f32 %v527_v5, 0.0 }
 0x148   :  { %v406_v9 = vpop.f32.mrb[36].mxu0  ;;  %v531_v10 = vpop.f32.mrb[36].mxu1 }
 0x149   :  { %627 = vst.msk [vmem:[%s1576_s3 + $0x88] sm:$0xff] %vm609_vm5, %v577_v7  ;;  %652 = vst.msk [vmem:[%s1576_s3 + $0x150] sm:$0xff] %vm609_vm5, %v602_v8  ;;  %v407_v11 = vadd.f32 %v1326_v54, %v406_v9  ;;  %v827_v12 = vpop.f32.mrb[37].mxu0  ;;  %v532_v13 = vadd.f32 %v1326_v54, %v531_v10  ;;  %v902_v14 = vpop.f32.mrb[37].mxu1 }
 0x14b   :  { %v578_v15 = vmax.f32 %v407_v11, 0.0  ;;  %v603_v16 = vmax.f32 %v532_v13, 0.0 }
 0x14c   :  { %v411_v17 = vpop.f32.mrb[38].mxu0  ;;  %v536_v18 = vpop.f32.mrb[38].mxu1 }
 0x14d   :  { %628 = vst.msk [vmem:[%s1576_s3 + $0x90] sm:$0xff] %vm609_vm5, %v578_v15  ;;  %653 = vst.msk [vmem:[%s1576_s3 + $0x158] sm:$0xff] %vm609_vm5, %v603_v16  ;;  %v412_v19 = vadd.f32 %v1326_v54, %v411_v17  ;;  %v830_v20 = vpop.f32.mrb[39].mxu0  ;;  %v537_v21 = vadd.f32 %v1326_v54, %v536_v18  ;;  %v905_v22 = vpop.f32.mrb[39].mxu1 }
 0x14f   :  { %v579_v23 = vmax.f32 %v412_v19, 0.0  ;;  %v604_v24 = vmax.f32 %v537_v21, 0.0 }
 0x150   :  { %v416_v25 = vpop.f32.mrb[40].mxu0  ;;  %v541_v26 = vpop.f32.mrb[40].mxu1 }
 0x151   :  { %629 = vst.msk [vmem:[%s1576_s3 + $0x98] sm:$0xff] %vm609_vm5, %v579_v23  ;;  %654 = vst.msk [vmem:[%s1576_s3 + $0x160] sm:$0xff] %vm609_vm5, %v604_v24  ;;  %v417_v27 = vadd.f32 %v1326_v54, %v416_v25  ;;  %v833_v28 = vpop.f32.mrb[41].mxu0  ;;  %v542_v29 = vadd.f32 %v1326_v54, %v541_v26  ;;  %v908_v30 = vpop.f32.mrb[41].mxu1 }
 0x153   :  { %v580_v31 = vmax.f32 %v417_v27, 0.0  ;;  %v605_v32 = vmax.f32 %v542_v29, 0.0 }
 0x154   :  { %v421_v33 = vpop.f32.mrb[42].mxu0  ;;  %v546_v34 = vpop.f32.mrb[42].mxu1 }
 0x155   :  { %630 = vst.msk [vmem:[%s1576_s3 + $0xa0] sm:$0xff] %vm609_vm5, %v580_v31  ;;  %655 = vst.msk [vmem:[%s1576_s3 + $0x168] sm:$0xff] %vm609_vm5, %v605_v32  ;;  %v422_v35 = vadd.f32 %v1326_v54, %v421_v33  ;;  %v836_v36 = vpop.f32.mrb[43].mxu0  ;;  %v547_v37 = vadd.f32 %v1326_v54, %v546_v34  ;;  %v911_v38 = vpop.f32.mrb[43].mxu1 }
 0x157   :  { %v581_v39 = vmax.f32 %v422_v35, 0.0  ;;  %v606_v40 = vmax.f32 %v547_v37, 0.0 }
 0x158   :  { %v426_v41 = vpop.f32.mrb[44].mxu0  ;;  %v551_v42 = vpop.f32.mrb[44].mxu1 }
 0x159   :  { %631 = vst.msk [vmem:[%s1576_s3 + $0xa8] sm:$0xff] %vm609_vm5, %v581_v39  ;;  %656 = vst.msk [vmem:[%s1576_s3 + $0x170] sm:$0xff] %vm609_vm5, %v606_v40  ;;  %v427_v43 = vadd.f32 %v1326_v54, %v426_v41  ;;  %v839_v44 = vpop.f32.mrb[45].mxu0  ;;  %v552_v45 = vadd.f32 %v1326_v54, %v551_v42  ;;  %v914_v46 = vpop.f32.mrb[45].mxu1 }
 0x15b   :  { %v582_v47 = vmax.f32 %v427_v43, 0.0  ;;  %v607_v48 = vmax.f32 %v552_v45, 0.0 }
 0x15c   :  { %v431_v49 = vpop.f32.mrb[46].mxu0  ;;  %v556_v50 = vpop.f32.mrb[46].mxu1 }
 0x15d   :  { %632 = vst.msk [vmem:[%s1576_s3 + $0xb0] sm:$0xff] %vm609_vm5, %v582_v47  ;;  %657 = vst.msk [vmem:[%s1576_s3 + $0x178] sm:$0xff] %vm609_vm5, %v607_v48  ;;  %v432_v51 = vadd.f32 %v1326_v54, %v431_v49  ;;  %v842_v52 = vpop.f32.mrb[47].mxu0  ;;  %v557_v53 = vadd.f32 %v1326_v54, %v556_v50  ;;  %v917_v55 = vpop.f32.mrb[47].mxu1 }
 0x15f   :  { %v583_v56 = vmax.f32 %v432_v51, 0.0  ;;  %v608_v57 = vmax.f32 %v557_v53, 0.0 }
 0x160   :  { %v436_v58 = vpop.f32.mrb[48].mxu0 }
 0x161   :  { %633 = vst.msk [vmem:[%s1576_s3 + $0xb8] sm:$0xff] %vm609_vm5, %v583_v56  ;;  %658 = vst.msk [vmem:[%s1576_s3 + $0x180] sm:$0xff] %vm609_vm5, %v608_v57  ;;  %v437_v59 = vadd.f32 %v1326_v54, %v436_v58  ;;  %v845_v60 = vpop.f32.mrb[49].mxu0 }
 0x163   :  { %v584_v61 = vmax.f32 %v437_v59, 0.0 }
 0x165   :  { %634 = vst.msk [vmem:[%s1576_s3 + $0xc0] sm:$0xff] %vm609_vm5, %v584_v61 }
 0x166   :  { %663 = vsyncpa [#allocation3], 1 }
 0x167   :  { %664 = vsyncpa [#allocation5], 1 }

// kernel: cnn_forward.4
= control target key start
LH: loop header
LB: loop body
LE: loop exit
PB: predicated region body
PF: predicated region fallthrough
CT: control target
= control target key end

     0   :  { %v1069_v0 = vmov 0.0|0.0   ;;  %vm165_vm0 = vcmask 261120   ;;  %vm800_vm1 = vcmask 523264   ;;  %s1808_s1 = inlined_call_operand.vmem [shape: f32[288,64], index: 1, kind: input, shape index: {}]   ;;  %s1809_s0 = inlined_call_operand.vmem [shape: f32[288,288], index: 0, kind: input, shape index: {}]   ;;  %s1810_s2 = inlined_call_operand.vmem [shape: f32[1,64], index: 2, kind: input, shape index: {}]   ;;  %s1811_s3 = inlined_call_operand.vmem [shape: f32[288,64], index: 3, kind: output, shape index: {}]  }
   0x1   :  { %980 = vmatprep.subr.bf16.mxu0 %v1069_v0  ;;  %1036 = vmatprep.subr.bf16.mxu1 %v1069_v0  ;;  %v122_v1 = vld [vmem:[%s1808_s1] sm:$0xff]  ;;  %v123_v2 = vld [vmem:[%s1808_s1 + $0x8] sm:$0xff]  ;;  %v124_v3 = vld [vmem:[%s1808_s1 + $0x10] sm:$0xff] }
   0x2   :  { %v981_v4 = vpack.c.bf16 %v123_v2, %v122_v1  ;;  %v125_v5 = vld [vmem:[%s1808_s1 + $0x18] sm:$0xff]  ;;  %v126_v7 = vld [vmem:[%s1808_s1 + $0x20] sm:$0xff]  ;;  %v127_v8 = vld [vmem:[%s1808_s1 + $0x28] sm:$0xff] }
   0x3   :  { %v984_v6 = vpack.c.bf16 %v125_v5, %v124_v3  ;;  %v987_v9 = vpack.c.bf16 %v127_v8, %v126_v7  ;;  %v128_v10 = vld [vmem:[%s1808_s1 + $0x30] sm:$0xff]  ;;  %v129_v11 = vld [vmem:[%s1808_s1 + $0x38] sm:$0xff]  ;;  %v15_v12 = vld [vmem:[%s1809_s0 + $0x8] sm:$0xff] }
   0x4   :  { %982 = vmatpush1.bf16.msra.mxu0 %v981_v4  ;;  %1052 = vmatpush1.bf16.msra.mxu1 %v981_v4  ;;  %v990_v13 = vpack.c.bf16 %v129_v11, %v128_v10  ;;  %v96_v14 = vld [vmem:[%s1809_s0 + $0x290] sm:$0xff]  ;;  %v130_v15 = vld [vmem:[%s1808_s1 + $0x40] sm:$0xff]  ;;  %v131_v16 = vld [vmem:[%s1808_s1 + $0x48] sm:$0xff] }
   0x5   :  { %983 = vmatprep.subr.bf16.mxu0 %v1069_v0  ;;  %1037 = vmatprep.subr.bf16.mxu1 %v1069_v0  ;;  %v993_v17 = vpack.c.bf16 %v131_v16, %v130_v15  ;;  %v132_v18 = vld [vmem:[%s1808_s1 + $0x50] sm:$0xff]  ;;  %v133_v19 = vld [vmem:[%s1808_s1 + $0x58] sm:$0xff]  ;;  %v134_v21 = vld [vmem:[%s1808_s1 + $0x60] sm:$0xff] }
   0x6   :  { %338 = vmatprep.mubr.f32.mxu0 %v15_v12  ;;  %473 = vmatprep.mubr.f32.mxu1 %v96_v14  ;;  %v996_v20 = vpack.c.bf16 %v133_v19, %v132_v18  ;;  %v135_v22 = vld [vmem:[%s1808_s1 + $0x68] sm:$0xff]  ;;  %v136_v24 = vld [vmem:[%s1808_s1 + $0x70] sm:$0xff]  ;;  %v137_v25 = vld [vmem:[%s1808_s1 + $0x78] sm:$0xff] }
   0x7   :  { %v999_v23 = vpack.c.bf16 %v135_v22, %v134_v21  ;;  %v1002_v26 = vpack.c.bf16 %v137_v25, %v136_v24  ;;  %v138_v27 = vld [vmem:[%s1808_s1 + $0x80] sm:$0xff]  ;;  %v139_v28 = vld [vmem:[%s1808_s1 + $0x88] sm:$0xff]  ;;  %v140_v30 = vld [vmem:[%s1808_s1 + $0x90] sm:$0xff] }
   0x8   :  { %985 = vmatpush1.bf16.msra.mxu0 %v984_v6  ;;  %1053 = vmatpush1.bf16.msra.mxu1 %v984_v6  ;;  %v1005_v29 = vpack.c.bf16 %v139_v28, %v138_v27  ;;  %v141_v31 = vld [vmem:[%s1808_s1 + $0x98] sm:$0xff]  ;;  %v142_v33 = vld [vmem:[%s1808_s1 + $0xa0] sm:$0xff]  ;;  %v143_v34 = vld [vmem:[%s1808_s1 + $0xa8] sm:$0xff] }
   0x9   :  { %986 = vmatprep.subr.bf16.mxu0 %v1069_v0  ;;  %1038 = vmatprep.subr.bf16.mxu1 %v1069_v0  ;;  %v1008_v32 = vpack.c.bf16 %v141_v31, %v140_v30  ;;  %v1011_v35 = vpack.c.bf16 %v143_v34, %v142_v33  ;;  %v144_v36 = vld [vmem:[%s1808_s1 + $0xb0] sm:$0xff]  ;;  %v145_v37 = vld [vmem:[%s1808_s1 + $0xb8] sm:$0xff]  ;;  %v146_v39 = vld [vmem:[%s1808_s1 + $0xc0] sm:$0xff] }
   0xa   :  { %v1014_v38 = vpack.c.bf16 %v145_v37, %v144_v36  ;;  %v147_v40 = vld [vmem:[%s1808_s1 + $0xc8] sm:$0xff]  ;;  %v148_v42 = vld [vmem:[%s1808_s1 + $0xd0] sm:$0xff]  ;;  %v149_v43 = vld [vmem:[%s1808_s1 + $0xd8] sm:$0xff] }
   0xb   :  { %v1017_v41 = vpack.c.bf16 %v147_v40, %v146_v39  ;;  %v1020_v44 = vpack.c.bf16 %v149_v43, %v148_v42  ;;  %v150_v45 = vld [vmem:[%s1808_s1 + $0xe0] sm:$0xff]  ;;  %v151_v46 = vld [vmem:[%s1808_s1 + $0xe8] sm:$0xff]  ;;  %v152_v48 = vld [vmem:[%s1808_s1 + $0xf0] sm:$0xff] }
   0xc   :  { %988 = vmatpush1.bf16.msra.mxu0 %v987_v9  ;;  %1054 = vmatpush1.bf16.msra.mxu1 %v987_v9  ;;  %v1023_v47 = vpack.c.bf16 %v151_v46, %v150_v45  ;;  %v153_v49 = vld [vmem:[%s1808_s1 + $0xf8] sm:$0xff]  ;;  %v154_v50 = vld [vmem:[%s1808_s1 + $0x100] sm:$0xff]  ;;  %v155_v51 = vld [vmem:[%s1808_s1 + $0x108] sm:$0xff] }
   0xd   :  { %989 = vmatprep.subr.bf16.mxu0 %v1069_v0  ;;  %1039 = vmatprep.subr.bf16.mxu1 %v1069_v0  ;;  %v1026_v52 = vpack.c.bf16 %v153_v49, %v152_v48  ;;  %v1028_v53 = vpack.c.bf16 %v155_v51, %v154_v50  ;;  %v156_v54 = vld [vmem:[%s1808_s1 + $0x110] sm:$0xff]  ;;  %v157_v55 = vld [vmem:[%s1808_s1 + $0x118] sm:$0xff]  ;;  %v14_v56 = vld [vmem:[%s1809_s0] sm:$0xff] }
   0xe   :  { %v95_v57 = vld [vmem:[%s1809_s0 + $0x288] sm:$0xff]  ;;  %v18_v58 = vld [vmem:[%s1809_s0 + $0x20] sm:$0xff]  ;;  %v1032_v59 = vpack.c.bf16 %v157_v55, %v156_v54  ;;  %v17_v61 = vld [vmem:[%s1809_s0 + $0x18] sm:$0xff] }
   0xf   :  { %v99_v60 = vld [vmem:[%s1809_s0 + $0x2a8] sm:$0xff]  ;;  %v98_v62 = vld [vmem:[%s1809_s0 + $0x2a0] sm:$0xff]  ;;  %v21_v63 = vld [vmem:[%s1809_s0 + $0x38] sm:$0xff] }
  0x10   :  { %991 = vmatpush1.bf16.msra.mxu0 %v990_v13  ;;  %1055 = vmatpush1.bf16.msra.mxu1 %v990_v13  ;;  %v20_v1 = vld [vmem:[%s1809_s0 + $0x30] sm:$0xff]  ;;  %v101_v2 = vld [vmem:[%s1809_s0 + $0x2b8] sm:$0xff]  ;;  %v23_v5 = vld [vmem:[%s1809_s0 + $0x48] sm:$0xff] }
  0x11   :  { %992 = vmatprep.subr.bf16.mxu0 %v1069_v0  ;;  %1040 = vmatprep.subr.bf16.mxu1 %v1069_v0  ;;  %v24_v3 = vld [vmem:[%s1809_s0 + $0x50] sm:$0xff]  ;;  %v105_v4 = vld [vmem:[%s1809_s0 + $0x2d8] sm:$0xff]  ;;  %v27_v7 = vld [vmem:[%s1809_s0 + $0x68] sm:$0xff] }
  0x12   :  { %v104_v6 = vld [vmem:[%s1809_s0 + $0x2d0] sm:$0xff]  ;;  %v26_v9 = vld [vmem:[%s1809_s0 + $0x60] sm:$0xff]  ;;  %v107_v10 = vld [vmem:[%s1809_s0 + $0x2e8] sm:$0xff] }
  0x13   :  { %v108_v8 = vld [vmem:[%s1809_s0 + $0x2f0] sm:$0xff]  ;;  %v30_v11 = vld [vmem:[%s1809_s0 + $0x80] sm:$0xff]  ;;  %v111_v12 = vld [vmem:[%s1809_s0 + $0x308] sm:$0xff] }
  0x14   :  { %994 = vmatpush1.bf16.msra.mxu0 %v993_v17  ;;  %1056 = vmatpush1.bf16.msra.mxu1 %v993_v17  ;;  %v29_v13 = vld [vmem:[%s1809_s0 + $0x78] sm:$0xff]  ;;  %v110_v14 = vld [vmem:[%s1809_s0 + $0x300] sm:$0xff]  ;;  %v32_v17 = vld [vmem:[%s1809_s0 + $0x90] sm:$0xff] }
  0x15   :  { %995 = vmatprep.subr.bf16.mxu0 %v1069_v0  ;;  %1041 = vmatprep.subr.bf16.mxu1 %v1069_v0  ;;  %v33_v15 = vld [vmem:[%s1809_s0 + $0x98] sm:$0xff]  ;;  %v114_v16 = vld [vmem:[%s1809_s0 + $0x320] sm:$0xff]  ;;  %v36_v19 = vld [vmem:[%s1809_s0 + $0xb0] sm:$0xff] }
  0x16   :  { %v113_v18 = vld [vmem:[%s1809_s0 + $0x318] sm:$0xff]  ;;  %v35_v21 = vld [vmem:[%s1809_s0 + $0xa8] sm:$0xff]  ;;  %v116_v22 = vld [vmem:[%s1809_s0 + $0x330] sm:$0xff] }
  0x17   :  { %v120_v24 = vld [vmem:[%s1809_s0 + $0x350] sm:$0xff]  ;;  %v38_v25 = vld [vmem:[%s1809_s0 + $0xc0] sm:$0xff]  ;;  %v19_v30 = vld [vmem:[%s1809_s0 + $0x28] sm:$0xff] }
  0x18   :  { %997 = vmatpush1.bf16.msra.mxu0 %v996_v20  ;;  %1057 = vmatpush1.bf16.msra.mxu1 %v996_v20  ;;  %v117_v20 = vld [vmem:[%s1809_s0 + $0x338] sm:$0xff]  ;;  %v42_v27 = vld [vmem:[%s1809_s0 + $0xe0] sm:$0xff]  ;;  %v16_v28 = vld [vmem:[%s1809_s0 + $0x10] sm:$0xff] }
  0x19   :  { %998 = vmatprep.subr.bf16.mxu0 %v1069_v0  ;;  %1042 = vmatprep.subr.bf16.mxu1 %v1069_v0  ;;  %v45_v31 = vld [vmem:[%s1809_s0 + $0xf8] sm:$0xff]  ;;  %v44_v33 = vld [vmem:[%s1809_s0 + $0xf0] sm:$0xff]  ;;  %v47_v37 = vld [vmem:[%s1809_s0 + $0x108] sm:$0xff] }
  0x1a   :  { %v25_v34 = vld [vmem:[%s1809_s0 + $0x58] sm:$0xff]  ;;  %v28_v36 = vld [vmem:[%s1809_s0 + $0x70] sm:$0xff]  ;;  %v51_v39 = vld [vmem:[%s1809_s0 + $0x128] sm:$0xff] }
  0x1b   :  { %v34_v40 = vld [vmem:[%s1809_s0 + $0xa0] sm:$0xff]  ;;  %v37_v42 = vld [vmem:[%s1809_s0 + $0xb8] sm:$0xff]  ;;  %v43_v46 = vld [vmem:[%s1809_s0 + $0xe8] sm:$0xff] }
  0x1c   :  { %1000 = vmatpush1.bf16.msra.mxu0 %v999_v23  ;;  %1058 = vmatpush1.bf16.msra.mxu1 %v999_v23  ;;  %v39_v23 = vld [vmem:[%s1809_s0 + $0xc8] sm:$0xff]  ;;  %v54_v43 = vld [vmem:[%s1809_s0 + $0x140] sm:$0xff]  ;;  %v53_v45 = vld [vmem:[%s1809_s0 + $0x138] sm:$0xff] }
  0x1d   :  { %1001 = vmatprep.subr.bf16.mxu0 %v1069_v0  ;;  %1043 = vmatprep.subr.bf16.mxu1 %v1069_v0  ;;  %v46_v48 = vld [vmem:[%s1809_s0 + $0x100] sm:$0xff]  ;;  %v56_v49 = vld [vmem:[%s1809_s0 + $0x150] sm:$0xff]  ;;  %v49_v50 = vld [vmem:[%s1809_s0 + $0x118] sm:$0xff] }
  0x1e   :  { %v60_v51 = vld [vmem:[%s1809_s0 + $0x170] sm:$0xff]  ;;  %v55_v54 = vld [vmem:[%s1809_s0 + $0x148] sm:$0xff] }
  0x1f   :  { %v63_v55 = vld [vmem:[%s1809_s0 + $0x188] sm:$0xff] }
  0x20   :  { %1003 = vmatpush1.bf16.msra.mxu0 %v1002_v26  ;;  %1059 = vmatpush1.bf16.msra.mxu1 %v1002_v26  ;;  %v119_v26 = vld [vmem:[%s1809_s0 + $0x348] sm:$0xff] }
  0x21   :  { %1004 = vmatprep.subr.bf16.mxu0 %v1069_v0  ;;  %1044 = vmatprep.subr.bf16.mxu1 %v1069_v0 }
  0x24   :  { %1006 = vmatpush1.bf16.msra.mxu0 %v1005_v29  ;;  %1060 = vmatpush1.bf16.msra.mxu1 %v1005_v29  ;;  %v41_v29 = vld [vmem:[%s1809_s0 + $0xd8] sm:$0xff] }
  0x25   :  { %1007 = vmatprep.subr.bf16.mxu0 %v1069_v0  ;;  %1045 = vmatprep.subr.bf16.mxu1 %v1069_v0 }
  0x28   :  { %1009 = vmatpush1.bf16.msra.mxu0 %v1008_v32  ;;  %1061 = vmatpush1.bf16.msra.mxu1 %v1008_v32  ;;  %v22_v32 = vld [vmem:[%s1809_s0 + $0x40] sm:$0xff] }
  0x29   :  { %1010 = vmatprep.subr.bf16.mxu0 %v1069_v0  ;;  %1046 = vmatprep.subr.bf16.mxu1 %v1069_v0 }
  0x2c   :  { %1012 = vmatpush1.bf16.msra.mxu0 %v1011_v35  ;;  %1062 = vmatpush1.bf16.msra.mxu1 %v1011_v35  ;;  %v48_v35 = vld [vmem:[%s1809_s0 + $0x110] sm:$0xff] }
  0x2d   :  { %1013 = vmatprep.subr.bf16.mxu0 %v1069_v0  ;;  %1047 = vmatprep.subr.bf16.mxu1 %v1069_v0 }
  0x30   :  { %1015 = vmatpush1.bf16.msra.mxu0 %v1014_v38  ;;  %1063 = vmatpush1.bf16.msra.mxu1 %v1014_v38  ;;  %v31_v38 = vld [vmem:[%s1809_s0 + $0x88] sm:$0xff] }
  0x31   :  { %1016 = vmatprep.subr.bf16.mxu0 %v1069_v0  ;;  %1048 = vmatprep.subr.bf16.mxu1 %v1069_v0 }
  0x34   :  { %1018 = vmatpush1.bf16.msra.mxu0 %v1017_v41  ;;  %1064 = vmatpush1.bf16.msra.mxu1 %v1017_v41  ;;  %v50_v41 = vld [vmem:[%s1809_s0 + $0x120] sm:$0xff] }
  0x35   :  { %1019 = vmatprep.subr.bf16.mxu0 %v1069_v0  ;;  %1049 = vmatprep.subr.bf16.mxu1 %v1069_v0 }
  0x38   :  { %1021 = vmatpush1.bf16.msra.mxu0 %v1020_v44  ;;  %1065 = vmatpush1.bf16.msra.mxu1 %v1020_v44  ;;  %v40_v44 = vld [vmem:[%s1809_s0 + $0xd0] sm:$0xff] }
  0x39   :  { %1022 = vmatprep.subr.bf16.mxu0 %v1069_v0  ;;  %1050 = vmatprep.subr.bf16.mxu1 %v1069_v0 }
  0x3c   :  { %1024 = vmatpush1.bf16.msra.mxu0 %v1023_v47  ;;  %1066 = vmatpush1.bf16.msra.mxu1 %v1023_v47  ;;  %v57_v47 = vld [vmem:[%s1809_s0 + $0x158] sm:$0xff] }
  0x3d   :  { %1025 = vmatprep.subr.bf16.mxu0 %v1069_v0  ;;  %1051 = vmatprep.subr.bf16.mxu1 %v1069_v0  ;;  %v102_v0 = vld [vmem:[%s1809_s0 + $0x2c0] sm:$0xff] }
  0x40   :  { %1027 = vmatpush1.bf16.msra.mxu0 %v1026_v52  ;;  %1067 = vmatpush1.bf16.msra.mxu1 %v1026_v52  ;;  %v52_v52 = vld [vmem:[%s1809_s0 + $0x130] sm:$0xff] }
  0x41   :  { %1029 = vmatprep.subr.bf16.mxu1 %v1028_v53 }
  0x43   :  { %339 = vmatmul.mubr.f32.vlgmr.msra.gmra.mrb[0].mxu0 %v14_v56  ;;  %474 = vmatmul.mubr.f32.vlgmr.msra.gmra.mrb[0].mxu1 %v95_v57  ;;  %v58_v56 = vld [vmem:[%s1809_s0 + $0x160] sm:$0xff] }
  0x44   :  { %1031 = vmatpush3.bf16.msra.mxu1 %v1028_v53  ;;  %343 = vmatprep.mubr.f32.mxu0 %v18_v58  ;;  %v59_v53 = vld [vmem:[%s1809_s0 + $0x168] sm:$0xff]  ;;  %v62_v57 = vld [vmem:[%s1809_s0 + $0x180] sm:$0xff]  ;;  %v61_v58 = vld [vmem:[%s1809_s0 + $0x178] sm:$0xff] }
  0x45   :  { %478 = vmatprep.mubr.f32.mxu1 %v99_v60  ;;  %1033 = vmatprep.subr.bf16.mxu1 %v1032_v59  ;;  %v64_v60 = vld [vmem:[%s1809_s0 + $0x190] sm:$0xff] }
  0x47   :  { %344 = vmatmul.mubr.f32.gmra.mrb[2].mxu0 %v17_v61  ;;  %479 = vmatmul.mubr.f32.gmra.mrb[2].mxu1 %v98_v62  ;;  %v65_v61 = vld [vmem:[%s1809_s0 + $0x198] sm:$0xff]  ;;  %v67_v62 = vld [vmem:[%s1809_s0 + $0x1a8] sm:$0xff] }
  0x48   :  { %348 = vmatprep.mubr.f32.mxu0 %v21_v63  ;;  %483 = vmatprep.mubr.f32.mxu1 %v102_v0  ;;  %v69_v63 = vld [vmem:[%s1809_s0 + $0x1b8] sm:$0xff]  ;;  %v70_v0 = vld [vmem:[%s1809_s0 + $0x1c0] sm:$0xff] }
  0x49   :  { %1035 = vmatpush3.bf16.msra.mxu1 %v1032_v59  ;;  %v66_v59 = vld [vmem:[%s1809_s0 + $0x1a0] sm:$0xff] }
  0x4b   :  { %349 = vmatmul.mubr.f32.gmra.mrb[4].mxu0 %v20_v1  ;;  %484 = vmatmul.mubr.f32.gmra.mrb[4].mxu1 %v101_v2  ;;  %v68_v1 = vld [vmem:[%s1809_s0 + $0x1b0] sm:$0xff]  ;;  %v73_v2 = vld [vmem:[%s1809_s0 + $0x1d8] sm:$0xff] }
  0x4c   :  { %353 = vmatprep.mubr.f32.mxu0 %v24_v3  ;;  %488 = vmatprep.mubr.f32.mxu1 %v105_v4  ;;  %v72_v3 = vld [vmem:[%s1809_s0 + $0x1d0] sm:$0xff] }
  0x4d   :  { %v76_v4 = vld [vmem:[%s1809_s0 + $0x1f0] sm:$0xff] }
  0x4f   :  { %354 = vmatmul.mubr.f32.gmra.mrb[6].mxu0 %v23_v5  ;;  %489 = vmatmul.mubr.f32.gmra.mrb[6].mxu1 %v104_v6  ;;  %v71_v5 = vld [vmem:[%s1809_s0 + $0x1c8] sm:$0xff] }
  0x50   :  { %358 = vmatprep.mubr.f32.mxu0 %v27_v7  ;;  %493 = vmatprep.mubr.f32.mxu1 %v108_v8  ;;  %v79_v6 = vld [vmem:[%s1809_s0 + $0x208] sm:$0xff]  ;;  %v82_v8 = vld [vmem:[%s1809_s0 + $0x220] sm:$0xff] }
  0x51   :  { %v75_v7 = vld [vmem:[%s1809_s0 + $0x1e8] sm:$0xff] }
  0x53   :  { %359 = vmatmul.mubr.f32.gmra.mrb[8].mxu0 %v26_v9  ;;  %494 = vmatmul.mubr.f32.gmra.mrb[8].mxu1 %v107_v10  ;;  %v74_v9 = vld [vmem:[%s1809_s0 + $0x1e0] sm:$0xff]  ;;  %v85_v10 = vld [vmem:[%s1809_s0 + $0x238] sm:$0xff] }
  0x54   :  { %363 = vmatprep.mubr.f32.mxu0 %v30_v11  ;;  %498 = vmatprep.mubr.f32.mxu1 %v111_v12  ;;  %v78_v11 = vld [vmem:[%s1809_s0 + $0x200] sm:$0xff]  ;;  %v88_v12 = vld [vmem:[%s1809_s0 + $0x250] sm:$0xff] }
  0x57   :  { %364 = vmatmul.mubr.f32.gmra.mrb[10].mxu0 %v29_v13  ;;  %499 = vmatmul.mubr.f32.gmra.mrb[10].mxu1 %v110_v14  ;;  %v77_v13 = vld [vmem:[%s1809_s0 + $0x1f8] sm:$0xff]  ;;  %v91_v14 = vld [vmem:[%s1809_s0 + $0x268] sm:$0xff] }
  0x58   :  { %368 = vmatprep.mubr.f32.mxu0 %v33_v15  ;;  %503 = vmatprep.mubr.f32.mxu1 %v114_v16  ;;  %v81_v15 = vld [vmem:[%s1809_s0 + $0x218] sm:$0xff]  ;;  %v94_v16 = vld [vmem:[%s1809_s0 + $0x280] sm:$0xff] }
  0x5b   :  { %369 = vmatmul.mubr.f32.gmra.mrb[12].mxu0 %v32_v17  ;;  %504 = vmatmul.mubr.f32.gmra.mrb[12].mxu1 %v113_v18  ;;  %v80_v17 = vld [vmem:[%s1809_s0 + $0x210] sm:$0xff]  ;;  %v97_v18 = vld [vmem:[%s1809_s0 + $0x298] sm:$0xff] }
  0x5c   :  { %373 = vmatprep.mubr.f32.mxu0 %v36_v19  ;;  %508 = vmatprep.mubr.f32.mxu1 %v117_v20  ;;  %v84_v19 = vld [vmem:[%s1809_s0 + $0x230] sm:$0xff] }
  0x5d   :  { %v100_v20 = vld [vmem:[%s1809_s0 + $0x2b0] sm:$0xff] }
  0x5f   :  { %374 = vmatmul.mubr.f32.gmra.mrb[14].mxu0 %v35_v21  ;;  %509 = vmatmul.mubr.f32.gmra.mrb[14].mxu1 %v116_v22  ;;  %v83_v21 = vld [vmem:[%s1809_s0 + $0x228] sm:$0xff] }
  0x60   :  { %378 = vmatprep.mubr.f32.mxu0 %v39_v23  ;;  %513 = vmatprep.mubr.f32.mxu1 %v120_v24  ;;  %v103_v22 = vld [vmem:[%s1809_s0 + $0x2c8] sm:$0xff]  ;;  %v106_v24 = vld [vmem:[%s1809_s0 + $0x2e0] sm:$0xff] }
  0x61   :  { %v87_v23 = vld [vmem:[%s1809_s0 + $0x248] sm:$0xff] }
  0x63   :  { %379 = vmatmul.mubr.f32.gmra.mrb[16].mxu0 %v38_v25  ;;  %514 = vmatmul.mubr.f32.gmra.mrb[16].mxu1 %v119_v26  ;;  %v86_v25 = vld [vmem:[%s1809_s0 + $0x240] sm:$0xff]  ;;  %v109_v26 = vld [vmem:[%s1809_s0 + $0x2f8] sm:$0xff] }
  0x64   :  { %383 = vmatprep.mubr.f32.mxu0 %v42_v27  ;;  %926 = vmatprep.mubr.msk.f32.mxu1 %vm165_vm0, %v16_v28  ;;  %v90_v27 = vld [vmem:[%s1809_s0 + $0x260] sm:$0xff]  ;;  %v112_v28 = vld [vmem:[%s1809_s0 + $0x310] sm:$0xff] }
  0x67   :  { %384 = vmatmul.mubr.f32.gmra.mrb[18].mxu0 %v41_v29  ;;  %927 = vmatmul.mubr.msk.f32.vlgmr.msra.gmra.mrb[18].mxu1 %vm165_vm0, %v19_v30  ;;  %v89_v29 = vld [vmem:[%s1809_s0 + $0x258] sm:$0xff]  ;;  %v115_v30 = vld [vmem:[%s1809_s0 + $0x328] sm:$0xff] }
  0x68   :  { %388 = vmatprep.mubr.f32.mxu0 %v45_v31  ;;  %929 = vmatprep.mubr.msk.f32.mxu1 %vm165_vm0, %v22_v32  ;;  %v93_v31 = vld [vmem:[%s1809_s0 + $0x278] sm:$0xff]  ;;  %v118_v32 = vld [vmem:[%s1809_s0 + $0x340] sm:$0xff] }
  0x6b   :  { %389 = vmatmul.mubr.f32.gmra.mrb[20].mxu0 %v44_v33  ;;  %930 = vmatmul.mubr.msk.f32.gmra.mrb[20].mxu1 %vm165_vm0, %v25_v34  ;;  %v92_v33 = vld [vmem:[%s1809_s0 + $0x270] sm:$0xff]  ;;  %v121_v34 = vld [vmem:[%s1809_s0 + $0x358] sm:$0xff] }
  0x6c   :  { %393 = vmatprep.mubr.f32.mxu0 %v48_v35  ;;  %932 = vmatprep.mubr.msk.f32.mxu1 %vm165_vm0, %v28_v36 }
  0x6f   :  { %394 = vmatmul.mubr.f32.gmra.mrb[22].mxu0 %v47_v37  ;;  %933 = vmatmul.mubr.msk.f32.gmra.mrb[22].mxu1 %vm165_vm0, %v31_v38 }
  0x70   :  { %398 = vmatprep.mubr.f32.mxu0 %v51_v39  ;;  %935 = vmatprep.mubr.msk.f32.mxu1 %vm165_vm0, %v34_v40 }
  0x73   :  { %399 = vmatmul.mubr.f32.gmra.mrb[24].mxu0 %v50_v41  ;;  %936 = vmatmul.mubr.msk.f32.gmra.mrb[24].mxu1 %vm165_vm0, %v37_v42 }
  0x74   :  { %403 = vmatprep.mubr.f32.mxu0 %v54_v43  ;;  %938 = vmatprep.mubr.msk.f32.mxu1 %vm165_vm0, %v40_v44 }
  0x77   :  { %404 = vmatmul.mubr.f32.gmra.mrb[26].mxu0 %v53_v45  ;;  %939 = vmatmul.mubr.msk.f32.gmra.mrb[26].mxu1 %vm165_vm0, %v43_v46 }
  0x78   :  { %408 = vmatprep.mubr.f32.mxu0 %v57_v47  ;;  %941 = vmatprep.mubr.msk.f32.mxu1 %vm165_vm0, %v46_v48 }
  0x7b   :  { %409 = vmatmul.mubr.f32.gmra.mrb[28].mxu0 %v56_v49  ;;  %942 = vmatmul.mubr.msk.f32.gmra.mrb[28].mxu1 %vm165_vm0, %v49_v50 }
  0x7c   :  { %413 = vmatprep.mubr.f32.mxu0 %v60_v51  ;;  %944 = vmatprep.mubr.msk.f32.mxu1 %vm165_vm0, %v52_v52 }
  0x7f   :  { %414 = vmatmul.mubr.f32.gmra.mrb[30].mxu0 %v59_v53  ;;  %945 = vmatmul.mubr.msk.f32.gmra.mrb[30].mxu1 %vm165_vm0, %v55_v54 }
  0x80   :  { %418 = vmatprep.mubr.f32.mxu0 %v63_v55  ;;  %947 = vmatprep.mubr.msk.f32.mxu1 %vm165_vm0, %v58_v56 }
  0x83   :  { %419 = vmatmul.mubr.f32.gmra.mrb[32].mxu0 %v62_v57  ;;  %948 = vmatmul.mubr.msk.f32.gmra.mrb[32].mxu1 %vm165_vm0, %v61_v58 }
  0x84   :  { %423 = vmatprep.mubr.f32.mxu0 %v66_v59  ;;  %950 = vmatprep.mubr.msk.f32.mxu1 %vm165_vm0, %v64_v60 }
  0x87   :  { %424 = vmatmul.mubr.f32.gmra.mrb[34].mxu0 %v65_v61  ;;  %951 = vmatmul.mubr.msk.f32.gmra.mrb[34].mxu1 %vm165_vm0, %v67_v62 }
  0x88   :  { %428 = vmatprep.mubr.f32.mxu0 %v69_v63  ;;  %953 = vmatprep.mubr.msk.f32.mxu1 %vm165_vm0, %v70_v0 }
  0x8b   :  { %429 = vmatmul.mubr.f32.gmra.mrb[36].mxu0 %v68_v1  ;;  %954 = vmatmul.mubr.msk.f32.gmra.mrb[36].mxu1 %vm165_vm0, %v73_v2 }
  0x8c   :  { %433 = vmatprep.mubr.f32.mxu0 %v72_v3  ;;  %956 = vmatprep.mubr.msk.f32.mxu1 %vm165_vm0, %v76_v4 }
  0x8f   :  { %434 = vmatmul.mubr.f32.gmra.mrb[38].mxu0 %v71_v5  ;;  %957 = vmatmul.mubr.msk.f32.gmra.mrb[38].mxu1 %vm165_vm0, %v79_v6  ;;  %v1611_v5 = vld [vmem:[%s1810_s2] ss:$0 sm:$0xff] }
  0x90   :  { %438 = vmatprep.mubr.f32.mxu0 %v75_v7  ;;  %959 = vmatprep.mubr.msk.f32.mxu1 %vm165_vm0, %v82_v8 }
  0x93   :  { %439 = vmatmul.mubr.f32.gmra.mrb[40].mxu0 %v74_v9  ;;  %960 = vmatmul.mubr.msk.f32.gmra.mrb[40].mxu1 %vm165_vm0, %v85_v10 }
  0x94   :  { %443 = vmatprep.mubr.f32.mxu0 %v78_v11  ;;  %962 = vmatprep.mubr.msk.f32.mxu1 %vm165_vm0, %v88_v12 }
  0x97   :  { %444 = vmatmul.mubr.f32.gmra.mrb[42].mxu0 %v77_v13  ;;  %963 = vmatmul.mubr.msk.f32.gmra.mrb[42].mxu1 %vm165_vm0, %v91_v14 }
  0x98   :  { %448 = vmatprep.mubr.f32.mxu0 %v81_v15  ;;  %965 = vmatprep.mubr.msk.f32.mxu1 %vm165_vm0, %v94_v16 }
  0x9b   :  { %449 = vmatmul.mubr.f32.gmra.mrb[44].mxu0 %v80_v17  ;;  %966 = vmatmul.mubr.msk.f32.gmra.mrb[44].mxu1 %vm165_vm0, %v97_v18 }
  0x9c   :  { %453 = vmatprep.mubr.f32.mxu0 %v84_v19  ;;  %968 = vmatprep.mubr.msk.f32.mxu1 %vm165_vm0, %v100_v20 }
  0x9f   :  { %454 = vmatmul.mubr.f32.gmra.mrb[46].mxu0 %v83_v21  ;;  %969 = vmatmul.mubr.msk.f32.gmra.mrb[46].mxu1 %vm165_vm0, %v103_v22 }
  0xa0   :  { %458 = vmatprep.mubr.f32.mxu0 %v87_v23  ;;  %971 = vmatprep.mubr.msk.f32.mxu1 %vm165_vm0, %v106_v24 }
  0xa3   :  { %459 = vmatmul.mubr.f32.gmra.mrb[48].mxu0 %v86_v25  ;;  %972 = vmatmul.mubr.msk.f32.gmra.mrb[48].mxu1 %vm165_vm0, %v109_v26 }
  0xa4   :  { %463 = vmatprep.mubr.f32.mxu0 %v90_v27  ;;  %974 = vmatprep.mubr.msk.f32.mxu1 %vm165_vm0, %v112_v28 }
  0xa7   :  { %464 = vmatmul.mubr.f32.gmra.mrb[50].mxu0 %v89_v29  ;;  %975 = vmatmul.mubr.msk.f32.gmra.mrb[50].mxu1 %vm165_vm0, %v115_v30 }
  0xa8   :  { %468 = vmatprep.mubr.f32.mxu0 %v93_v31  ;;  %977 = vmatprep.mubr.msk.f32.mxu1 %vm165_vm0, %v118_v32 }
  0xab   :  { %469 = vmatmul.mubr.f32.gmra.mrb[52].mxu0 %v92_v33  ;;  %978 = vmatmul.mubr.msk.f32.gmra.mrb[52].mxu1 %vm165_vm0, %v121_v34 }
 0x116   :  { %v340_v35 = vpop.f32.mrb[0].mxu0  ;;  %v1590_v36 = vpop.f32.mrb[0].mxu1 }
 0x117   :  { %v342_v37 = vpop.f32.mrb[1].mxu0  ;;  %v477_v38 = vpop.f32.mrb[1].mxu1  ;;  %v341_v9 = vadd.f32 %v1611_v5, %v340_v35 }
 0x11a   :  { %v345_v39 = vpop.f32.mrb[2].mxu0  ;;  %v1592_v40 = vpop.f32.mrb[2].mxu1 }
 0x11b   :  { %v347_v41 = vpop.f32.mrb[3].mxu0  ;;  %v482_v42 = vpop.f32.mrb[3].mxu1  ;;  %v346_v8 = vadd.f32 %v1611_v5, %v345_v39 }
 0x11e   :  { %v350_v43 = vpop.f32.mrb[4].mxu0  ;;  %v1594_v44 = vpop.f32.mrb[4].mxu1 }
 0x11f   :  { %v352_v45 = vpop.f32.mrb[5].mxu0  ;;  %v487_v46 = vpop.f32.mrb[5].mxu1  ;;  %v351_v18 = vadd.f32 %v1611_v5, %v350_v43 }
 0x122   :  { %v355_v47 = vpop.f32.mrb[6].mxu0  ;;  %v1596_v48 = vpop.f32.mrb[6].mxu1 }
 0x123   :  { %v357_v49 = vpop.f32.mrb[7].mxu0  ;;  %v492_v50 = vpop.f32.mrb[7].mxu1  ;;  %v356_v16 = vadd.f32 %v1611_v5, %v355_v47 }
 0x126   :  { %v360_v51 = vpop.f32.mrb[8].mxu0  ;;  %v1598_v52 = vpop.f32.mrb[8].mxu1 }
 0x127   :  { %v362_v53 = vpop.f32.mrb[9].mxu0  ;;  %v497_v54 = vpop.f32.mrb[9].mxu1  ;;  %v361_v28 = vadd.f32 %v1611_v5, %v360_v51 }
 0x12a   :  { %v365_v55 = vpop.f32.mrb[10].mxu0  ;;  %v1600_v56 = vpop.f32.mrb[10].mxu1 }
 0x12b   :  { %v367_v57 = vpop.f32.mrb[11].mxu0  ;;  %v502_v58 = vpop.f32.mrb[11].mxu1  ;;  %v366_v26 = vadd.f32 %v1611_v5, %v365_v55 }
 0x12e   :  { %v370_v59 = vpop.f32.mrb[12].mxu0  ;;  %v1602_v60 = vpop.f32.mrb[12].mxu1 }
 0x12f   :  { %v372_v61 = vpop.f32.mrb[13].mxu0  ;;  %v507_v62 = vpop.f32.mrb[13].mxu1  ;;  %v371_v39 = vadd.f32 %v1611_v5, %v370_v59 }
 0x132   :  { %v375_v63 = vpop.f32.mrb[14].mxu0  ;;  %v1604_v0 = vpop.f32.mrb[14].mxu1 }
 0x133   :  { %v377_v1 = vpop.f32.mrb[15].mxu0  ;;  %v512_v2 = vpop.f32.mrb[15].mxu1  ;;  %v376_v37 = vadd.f32 %v1611_v5, %v375_v63 }
 0x136   :  { %v380_v3 = vpop.f32.mrb[16].mxu0  ;;  %v1606_v4 = vpop.f32.mrb[16].mxu1 }
 0x137   :  { %v382_v6 = vpop.f32.mrb[17].mxu0  ;;  %v517_v7 = vpop.f32.mrb[17].mxu1  ;;  %v381_v53 = vadd.f32 %v1611_v5, %v380_v3 }
 0x13a   :  { %v385_v10 = vpop.f32.mrb[18].mxu0  ;;  %v928_v11 = vpop.f32.mrb[18].mxu1 }
 0x13b   :  { %v591_v12 = vadd.f32 %v928_v11, %v346_v8  ;;  %v387_v13 = vpop.f32.mrb[19].mxu0  ;;  %v585_v14 = vpop.f32.mrb[19].mxu1  ;;  %v386_v50 = vadd.f32 %v1611_v5, %v385_v10 }
 0x13c   :  { %v586_v15 = vadd.f32 %v585_v14, %v341_v9 }
 0x13d   :  { %v765_v17 = vmax.f32 %v591_v12, 0.0 }
 0x13e   :  { %v764_v19 = vmax.f32 %v586_v15, 0.0  ;;  %v390_v20 = vpop.f32.mrb[20].mxu0  ;;  %v931_v21 = vpop.f32.mrb[20].mxu1 }
 0x13f   :  { %802 = vst.msk [vmem:[%s1811_s3 + $0x8] sm:$0xff] %vm800_vm1, %v765_v17  ;;  %v601_v22 = vadd.f32 %v931_v21, %v356_v16  ;;  %v392_v23 = vpop.f32.mrb[21].mxu0  ;;  %v595_v24 = vpop.f32.mrb[21].mxu1  ;;  %v391_v2 = vadd.f32 %v1611_v5, %v390_v20 }
 0x140   :  { %801 = vst.msk [vmem:[%s1811_s3] sm:$0xff] %vm800_vm1, %v764_v19  ;;  %v596_v25 = vadd.f32 %v595_v24, %v351_v18 }
 0x141   :  { %v767_v27 = vmax.f32 %v601_v22, 0.0 }
 0x142   :  { %v766_v29 = vmax.f32 %v596_v25, 0.0  ;;  %v395_v30 = vpop.f32.mrb[22].mxu0  ;;  %v934_v31 = vpop.f32.mrb[22].mxu1 }
 0x143   :  { %804 = vst.msk [vmem:[%s1811_s3 + $0x18] sm:$0xff] %vm800_vm1, %v767_v27  ;;  %v611_v32 = vadd.f32 %v934_v31, %v366_v26  ;;  %v397_v33 = vpop.f32.mrb[23].mxu0  ;;  %v605_v34 = vpop.f32.mrb[23].mxu1  ;;  %v396_v63 = vadd.f32 %v1611_v5, %v395_v30 }
 0x144   :  { %803 = vst.msk [vmem:[%s1811_s3 + $0x10] sm:$0xff] %vm800_vm1, %v766_v29  ;;  %v606_v35 = vadd.f32 %v605_v34, %v361_v28 }
 0x145   :  { %v769_v38 = vmax.f32 %v611_v32, 0.0 }
 0x146   :  { %v768_v41 = vmax.f32 %v606_v35, 0.0  ;;  %v400_v42 = vpop.f32.mrb[24].mxu0  ;;  %v937_v43 = vpop.f32.mrb[24].mxu1 }
 0x147   :  { %806 = vst.msk [vmem:[%s1811_s3 + $0x28] sm:$0xff] %vm800_vm1, %v769_v38  ;;  %v621_v45 = vadd.f32 %v937_v43, %v376_v37  ;;  %v402_v46 = vpop.f32.mrb[25].mxu0  ;;  %v615_v47 = vpop.f32.mrb[25].mxu1  ;;  %v401_v14 = vadd.f32 %v1611_v5, %v400_v42 }
 0x148   :  { %805 = vst.msk [vmem:[%s1811_s3 + $0x20] sm:$0xff] %vm800_vm1, %v768_v41  ;;  %v616_v49 = vadd.f32 %v615_v47, %v371_v39 }
 0x149   :  { %v771_v51 = vmax.f32 %v621_v45, 0.0 }
 0x14a   :  { %v770_v54 = vmax.f32 %v616_v49, 0.0  ;;  %v405_v55 = vpop.f32.mrb[26].mxu0  ;;  %v940_v57 = vpop.f32.mrb[26].mxu1 }
 0x14b   :  { %808 = vst.msk [vmem:[%s1811_s3 + $0x38] sm:$0xff] %vm800_vm1, %v771_v51  ;;  %v631_v58 = vadd.f32 %v940_v57, %v386_v50  ;;  %v407_v59 = vpop.f32.mrb[27].mxu0  ;;  %v625_v61 = vpop.f32.mrb[27].mxu1  ;;  %v406_v12 = vadd.f32 %v1611_v5, %v405_v55 }
 0x14c   :  { %807 = vst.msk [vmem:[%s1811_s3 + $0x30] sm:$0xff] %vm800_vm1, %v770_v54  ;;  %v626_v62 = vadd.f32 %v625_v61, %v381_v53 }
 0x14d   :  { %v773_v1 = vmax.f32 %v631_v58, 0.0 }
 0x14e   :  { %v772_v3 = vmax.f32 %v626_v62, 0.0  ;;  %v410_v6 = vpop.f32.mrb[28].mxu0  ;;  %v943_v7 = vpop.f32.mrb[28].mxu1 }
 0x14f   :  { %810 = vst.msk [vmem:[%s1811_s3 + $0x48] sm:$0xff] %vm800_vm1, %v773_v1  ;;  %v641_v8 = vadd.f32 %v943_v7, %v396_v63  ;;  %v412_v9 = vpop.f32.mrb[29].mxu0  ;;  %v635_v10 = vpop.f32.mrb[29].mxu1  ;;  %v411_v24 = vadd.f32 %v1611_v5, %v410_v6 }
 0x150   :  { %809 = vst.msk [vmem:[%s1811_s3 + $0x40] sm:$0xff] %vm800_vm1, %v772_v3  ;;  %v636_v11 = vadd.f32 %v635_v10, %v391_v2 }
 0x151   :  { %v775_v13 = vmax.f32 %v641_v8, 0.0 }
 0x152   :  { %v774_v15 = vmax.f32 %v636_v11, 0.0  ;;  %v415_v16 = vpop.f32.mrb[30].mxu0  ;;  %v946_v17 = vpop.f32.mrb[30].mxu1 }
 0x153   :  { %812 = vst.msk [vmem:[%s1811_s3 + $0x58] sm:$0xff] %vm800_vm1, %v775_v13  ;;  %v651_v18 = vadd.f32 %v946_v17, %v406_v12  ;;  %v417_v19 = vpop.f32.mrb[31].mxu0  ;;  %v645_v20 = vpop.f32.mrb[31].mxu1  ;;  %v416_v22 = vadd.f32 %v1611_v5, %v415_v16  ;;  %v476_v16 = vadd.f32 %v1611_v5, %v1590_v36 }
 0x154   :  { %811 = vst.msk [vmem:[%s1811_s3 + $0x50] sm:$0xff] %vm800_vm1, %v774_v15  ;;  %v646_v21 = vadd.f32 %v645_v20, %v401_v14 }
 0x155   :  { %v777_v23 = vmax.f32 %v651_v18, 0.0 }
 0x156   :  { %v776_v25 = vmax.f32 %v646_v21, 0.0  ;;  %v420_v26 = vpop.f32.mrb[32].mxu0  ;;  %v949_v27 = vpop.f32.mrb[32].mxu1 }
 0x157   :  { %814 = vst.msk [vmem:[%s1811_s3 + $0x68] sm:$0xff] %vm800_vm1, %v777_v23  ;;  %v661_v28 = vadd.f32 %v949_v27, %v416_v22  ;;  %v422_v29 = vpop.f32.mrb[33].mxu0  ;;  %v655_v30 = vpop.f32.mrb[33].mxu1  ;;  %v421_v33 = vadd.f32 %v1611_v5, %v420_v26  ;;  %v481_v27 = vadd.f32 %v1611_v5, %v1592_v40 }
 0x158   :  { %813 = vst.msk [vmem:[%s1811_s3 + $0x60] sm:$0xff] %vm800_vm1, %v776_v25  ;;  %v656_v31 = vadd.f32 %v655_v30, %v411_v24  ;;  %v486_v25 = vadd.f32 %v1611_v5, %v1594_v44 }
 0x159   :  { %v779_v32 = vmax.f32 %v661_v28, 0.0 }
 0x15a   :  { %v778_v34 = vmax.f32 %v656_v31, 0.0  ;;  %v425_v35 = vpop.f32.mrb[34].mxu0  ;;  %v952_v37 = vpop.f32.mrb[34].mxu1 }
 0x15b   :  { %816 = vst.msk [vmem:[%s1811_s3 + $0x78] sm:$0xff] %vm800_vm1, %v779_v32  ;;  %v426_v38 = vadd.f32 %v1611_v5, %v425_v35  ;;  %v427_v39 = vpop.f32.mrb[35].mxu0  ;;  %v665_v41 = vpop.f32.mrb[35].mxu1  ;;  %v496_v35 = vadd.f32 %v1611_v5, %v1598_v52 }
 0x15c   :  { %815 = vst.msk [vmem:[%s1811_s3 + $0x70] sm:$0xff] %vm800_vm1, %v778_v34  ;;  %v666_v42 = vadd.f32 %v665_v41, %v421_v33 }
 0x15d   :  { %v671_v43 = vadd.f32 %v952_v37, %v426_v38  ;;  %v491_v38 = vadd.f32 %v1611_v5, %v1596_v48 }
 0x15e   :  { %v780_v45 = vmax.f32 %v666_v42, 0.0  ;;  %v430_v46 = vpop.f32.mrb[36].mxu0  ;;  %v955_v47 = vpop.f32.mrb[36].mxu1 }
 0x15f   :  { %v781_v49 = vmax.f32 %v671_v43, 0.0  ;;  %v431_v50 = vadd.f32 %v1611_v5, %v430_v46  ;;  %v432_v51 = vpop.f32.mrb[37].mxu0  ;;  %v675_v53 = vpop.f32.mrb[37].mxu1 }
 0x160   :  { %817 = vst.msk [vmem:[%s1811_s3 + $0x80] sm:$0xff] %vm800_vm1, %v780_v45 }
 0x161   :  { %818 = vst.msk [vmem:[%s1811_s3 + $0x88] sm:$0xff] %vm800_vm1, %v781_v49  ;;  %v676_v54 = vadd.f32 %v675_v53, %v431_v50  ;;  %v506_v49 = vadd.f32 %v1611_v5, %v1602_v60  ;;  %v501_v53 = vadd.f32 %v1611_v5, %v1600_v56 }
 0x162   :  { %v435_v55 = vpop.f32.mrb[38].mxu0  ;;  %v958_v57 = vpop.f32.mrb[38].mxu1 }
 0x163   :  { %v782_v58 = vmax.f32 %v676_v54, 0.0  ;;  %v436_v59 = vadd.f32 %v1611_v5, %v435_v55  ;;  %v437_v61 = vpop.f32.mrb[39].mxu0  ;;  %v685_v62 = vpop.f32.mrb[39].mxu1 }
 0x165   :  { %819 = vst.msk [vmem:[%s1811_s3 + $0x90] sm:$0xff] %vm800_vm1, %v782_v58  ;;  %v681_v63 = vadd.f32 %v955_v47, %v436_v59 }
 0x166   :  { %v440_v1 = vpop.f32.mrb[40].mxu0  ;;  %v961_v2 = vpop.f32.mrb[40].mxu1 }
 0x167   :  { %v783_v3 = vmax.f32 %v681_v63, 0.0  ;;  %v441_v6 = vadd.f32 %v1611_v5, %v440_v1  ;;  %v442_v7 = vpop.f32.mrb[41].mxu0  ;;  %v695_v8 = vpop.f32.mrb[41].mxu1  ;;  %v516_v63 = vadd.f32 %v1611_v5, %v1606_v4 }
 0x169   :  { %820 = vst.msk [vmem:[%s1811_s3 + $0x98] sm:$0xff] %vm800_vm1, %v783_v3  ;;  %v686_v9 = vadd.f32 %v685_v62, %v441_v6  ;;  %v511_v3 = vadd.f32 %v1611_v5, %v1604_v0 }
 0x16a   :  { %v445_v10 = vpop.f32.mrb[42].mxu0  ;;  %v1714_v11 = vpop.f32.mrb[42].mxu1 }
 0x16b   :  { %v784_v12 = vmax.f32 %v686_v9, 0.0  ;;  %v446_v13 = vadd.f32 %v1611_v5, %v445_v10  ;;  %v447_v14 = vpop.f32.mrb[43].mxu0  ;;  %v705_v15 = vpop.f32.mrb[43].mxu1 }
 0x16d   :  { %821 = vst.msk [vmem:[%s1811_s3 + $0xa0] sm:$0xff] %vm800_vm1, %v784_v12  ;;  %v691_v17 = vadd.f32 %v958_v57, %v446_v13 }
 0x16e   :  { %v450_v18 = vpop.f32.mrb[44].mxu0  ;;  %v967_v19 = vpop.f32.mrb[44].mxu1 }
 0x16f   :  { %v785_v20 = vmax.f32 %v691_v17, 0.0  ;;  %v451_v21 = vadd.f32 %v1611_v5, %v450_v18  ;;  %v721_v22 = vadd.f32 %v967_v19, %v476_v16  ;;  %v452_v23 = vpop.f32.mrb[45].mxu0  ;;  %v1724_v24 = vpop.f32.mrb[45].mxu1 }
 0x171   :  { %822 = vst.msk [vmem:[%s1811_s3 + $0xa8] sm:$0xff] %vm800_vm1, %v785_v20  ;;  %v696_v36 = vadd.f32 %v695_v8, %v451_v21  ;;  %v791_v26 = vmax.f32 %v721_v22, 0.0 }
 0x172   :  { %v455_v28 = vpop.f32.mrb[46].mxu0  ;;  %v970_v29 = vpop.f32.mrb[46].mxu1 }
 0x173   :  { %v786_v30 = vmax.f32 %v696_v36, 0.0  ;;  %828 = vst.msk [vmem:[%s1811_s3 + $0xd8] sm:$0xff] %vm800_vm1, %v791_v26  ;;  %v456_v44 = vadd.f32 %v1611_v5, %v455_v28  ;;  %v731_v31 = vadd.f32 %v970_v29, %v486_v25  ;;  %v457_v32 = vpop.f32.mrb[47].mxu0  ;;  %v725_v33 = vpop.f32.mrb[47].mxu1 }
 0x174   :  { %v726_v34 = vadd.f32 %v725_v33, %v481_v27 }
 0x175   :  { %823 = vst.msk [vmem:[%s1811_s3 + $0xb0] sm:$0xff] %vm800_vm1, %v786_v30  ;;  %v701_v40 = vadd.f32 %v961_v2, %v456_v44  ;;  %v793_v37 = vmax.f32 %v731_v31, 0.0 }
 0x176   :  { %v792_v39 = vmax.f32 %v726_v34, 0.0  ;;  %v460_v41 = vpop.f32.mrb[48].mxu0  ;;  %v973_v42 = vpop.f32.mrb[48].mxu1 }
 0x177   :  { %v787_v43 = vmax.f32 %v701_v40, 0.0  ;;  %830 = vst.msk [vmem:[%s1811_s3 + $0xe8] sm:$0xff] %vm800_vm1, %v793_v37  ;;  %v461_v52 = vadd.f32 %v1611_v5, %v460_v41  ;;  %v741_v45 = vadd.f32 %v973_v42, %v496_v35  ;;  %v462_v46 = vpop.f32.mrb[49].mxu0  ;;  %v735_v47 = vpop.f32.mrb[49].mxu1 }
 0x178   :  { %829 = vst.msk [vmem:[%s1811_s3 + $0xe0] sm:$0xff] %vm800_vm1, %v792_v39  ;;  %v736_v48 = vadd.f32 %v735_v47, %v491_v38 }
 0x179   :  { %824 = vst.msk [vmem:[%s1811_s3 + $0xb8] sm:$0xff] %vm800_vm1, %v787_v43  ;;  %v706_v50 = vadd.f32 %v705_v15, %v461_v52  ;;  %v795_v51 = vmax.f32 %v741_v45, 0.0 }
 0x17a   :  { %v794_v54 = vmax.f32 %v736_v48, 0.0  ;;  %v465_v55 = vpop.f32.mrb[50].mxu0  ;;  %v976_v57 = vpop.f32.mrb[50].mxu1 }
 0x17b   :  { %v788_v58 = vmax.f32 %v706_v50, 0.0  ;;  %832 = vst.msk [vmem:[%s1811_s3 + $0xf8] sm:$0xff] %vm800_vm1, %v795_v51  ;;  %v466_v60 = vadd.f32 %v1611_v5, %v465_v55  ;;  %v751_v59 = vadd.f32 %v976_v57, %v506_v49  ;;  %v467_v61 = vpop.f32.mrb[51].mxu0  ;;  %v745_v62 = vpop.f32.mrb[51].mxu1 }
 0x17c   :  { %831 = vst.msk [vmem:[%s1811_s3 + $0xf0] sm:$0xff] %vm800_vm1, %v794_v54  ;;  %v746_v56 = vadd.f32 %v745_v62, %v501_v53 }
 0x17d   :  { %825 = vst.msk [vmem:[%s1811_s3 + $0xc0] sm:$0xff] %vm800_vm1, %v788_v58  ;;  %v711_v1 = vadd.f32 %v1714_v11, %v466_v60  ;;  %v797_v2 = vmax.f32 %v751_v59, 0.0 }
 0x17e   :  { %v796_v6 = vmax.f32 %v746_v56, 0.0  ;;  %v470_v7 = vpop.f32.mrb[52].mxu0  ;;  %v979_v8 = vpop.f32.mrb[52].mxu1 }
 0x17f   :  { %v789_v9 = vmax.f32 %v711_v1, 0.0  ;;  %834 = vst.msk [vmem:[%s1811_s3 + $0x108] sm:$0xff] %vm800_vm1, %v797_v2  ;;  %v471_v4 = vadd.f32 %v1611_v5, %v470_v7  ;;  %v761_v10 = vadd.f32 %v979_v8, %v516_v63  ;;  %v472_v12 = vpop.f32.mrb[53].mxu0  ;;  %v755_v13 = vpop.f32.mrb[53].mxu1 }
 0x180   :  { %833 = vst.msk [vmem:[%s1811_s3 + $0x100] sm:$0xff] %vm800_vm1, %v796_v6  ;;  %v756_v0 = vadd.f32 %v755_v13, %v511_v3 }
 0x181   :  { %826 = vst.msk [vmem:[%s1811_s3 + $0xc8] sm:$0xff] %vm800_vm1, %v789_v9  ;;  %v716_v11 = vadd.f32 %v1724_v24, %v471_v4  ;;  %v799_v14 = vmax.f32 %v761_v10, 0.0 }
 0x182   :  { %v798_v15 = vmax.f32 %v756_v0, 0.0 }
 0x183   :  { %v790_v16 = vmax.f32 %v716_v11, 0.0  ;;  %836 = vst.msk [vmem:[%s1811_s3 + $0x118] sm:$0xff] %vm800_vm1, %v799_v14 }
 0x184   :  { %835 = vst.msk [vmem:[%s1811_s3 + $0x110] sm:$0xff] %vm800_vm1, %v798_v15 }
 0x185   :  { %827 = vst.msk [vmem:[%s1811_s3 + $0xd0] sm:$0xff] %vm800_vm1, %v790_v16 }

// kernel: cnn_forward.5
= control target key start
LH: loop header
LB: loop body
LE: loop exit
PB: predicated region body
PF: predicated region fallthrough
CT: control target
= control target key end

     0   :  { %17 = vsyncpa [#allocation3], 0  ;;  %v2356_v43 = vmov 1983009808   ;;  %v346_v45 = vlaneseq  ;;  %s3628_s0 = inlined_call_operand.vmem [shape: f32[2,2304], index: 0, kind: input, shape index: {}]   ;;  %s3629_s1 = inlined_call_operand.vmem [shape: f32[2304,128], index: 1, kind: input, shape index: {}]   ;;  %s3630_s2 = inlined_call_operand.vmem [shape: f32[1,128], index: 2, kind: input, shape index: {}]   ;;  %s3631_s3 = inlined_call_operand.vmem [shape: f32[128,168], index: 3, kind: input, shape index: {}]   ;;  %s3632_s4 = inlined_call_operand.vmem [shape: f32[1,168], index: 4, kind: input, shape index: {}]   ;;  %s3633_s5 = inlined_call_operand.vmem [shape: f32[128,11], index: 5, kind: input, shape index: {}]   ;;  %s3634_s6 = inlined_call_operand.vmem [shape: f32[1,11], index: 6, kind: input, shape index: {}]   ;;  %s3635_s7 = inlined_call_operand.vmem [shape: f32[128,7], index: 7, kind: input, shape index: {}]   ;;  %s3636_s8 = inlined_call_operand.vmem [shape: f32[1,7], index: 8, kind: input, shape index: {}]   ;;  %s3637_s9 = inlined_call_operand.hbm [shape: f32[2,168], index: 9, kind: output, shape index: {0}]   ;;  %s3638_s10 = inlined_call_operand.hbm [shape: f32[2,11], index: 10, kind: output, shape index: {1}]   ;;  %s3639_s11 = inlined_call_operand.hbm [shape: f32[2,7], index: 11, kind: output, shape index: {2}]  }
   0x1   :  { %v58_v0 = vld [vmem:[%s3629_s1 + $0x80] sm:$0xff]  ;;  %v59_v1 = vld [vmem:[%s3629_s1 + $0x88] sm:$0xff]  ;;  %v60_v11 = vld [vmem:[%s3629_s1 + $0x90] sm:$0xff]  ;;  %v344_v44 = vunpack.c.l.s4 %v2356_v43 }
   0x2   :  { %v42_v2 = vld [vmem:[%s3629_s1] sm:$0xff]  ;;  %v1893_v3 = vpack.c.bf16 %v59_v1, %v58_v0  ;;  %v43_v4 = vld [vmem:[%s3629_s1 + $0x8] sm:$0xff]  ;;  %v61_v13 = vld [vmem:[%s3629_s1 + $0x98] sm:$0xff]  ;;  %v2540_v60 = vshrl.u32 %v346_v45, 7 }
   0x3   :  { %v90_v5 = vld [vmem:[%s3629_s1 + $0x180] sm:$0xff]  ;;  %v91_v6 = vld [vmem:[%s3629_s1 + $0x188] sm:$0xff]  ;;  %v1895_v7 = vpack.c.bf16 %v43_v4, %v42_v2  ;;  %v44_v14 = vld [vmem:[%s3629_s1 + $0x10] sm:$0xff]  ;;  %v1897_v16 = vpack.c.bf16 %v61_v13, %v60_v11  ;;  %v345_v59 = vunpack.c.0.s8 %v344_v44 }
   0x4   :  { %v1925_v8 = vpack.c.bf16 %v91_v6, %v90_v5  ;;  %v74_v9 = vld [vmem:[%s3629_s1 + $0x100] sm:$0xff]  ;;  %v75_v10 = vld [vmem:[%s3629_s1 + $0x108] sm:$0xff]  ;;  %1894 = vmatprep.subr.bf16.mxu0 %v1893_v3  ;;  %v45_v15 = vld [vmem:[%s3629_s1 + $0x18] sm:$0xff] }
   0x5   :  { %v1927_v12 = vpack.c.bf16 %v75_v10, %v74_v9  ;;  %1896 = vmatpush3.bf16.msra.mxu0 %v1895_v7  ;;  %v1899_v17 = vpack.c.bf16 %v45_v15, %v44_v14  ;;  %v92_v18 = vld [vmem:[%s3629_s1 + $0x190] sm:$0xff]  ;;  %v93_v19 = vld [vmem:[%s3629_s1 + $0x198] sm:$0xff]  ;;  %v62_v23 = vld [vmem:[%s3629_s1 + $0xa0] sm:$0xff]  ;;  %v2570_v10 = vsub.s32 %v345_v59, %v2540_v60 }
   0x6   :  { %1926 = vmatprep.subr.bf16.mxu1 %v1925_v8  ;;  %v76_v20 = vld [vmem:[%s3629_s1 + $0x110] sm:$0xff]  ;;  %v1929_v21 = vpack.c.bf16 %v93_v19, %v92_v18  ;;  %v77_v22 = vld [vmem:[%s3629_s1 + $0x118] sm:$0xff]  ;;  %v63_v24 = vld [vmem:[%s3629_s1 + $0xa8] sm:$0xff]  ;;  %1898 = vmatprep.subr.bf16.mxu0 %v1897_v16 }
   0x7   :  { %1928 = vmatpush3.bf16.msra.mxu1 %v1927_v12  ;;  %v1931_v25 = vpack.c.bf16 %v77_v22, %v76_v20  ;;  %v1901_v26 = vpack.c.bf16 %v63_v24, %v62_v23  ;;  %v46_v27 = vld [vmem:[%s3629_s1 + $0x20] sm:$0xff]  ;;  %v47_v28 = vld [vmem:[%s3629_s1 + $0x28] sm:$0xff]  ;;  %v64_v35 = vld [vmem:[%s3629_s1 + $0xb0] sm:$0xff] }
   0x8   :  { %v94_v29 = vld [vmem:[%s3629_s1 + $0x1a0] sm:$0xff]  ;;  %1930 = vmatprep.subr.bf16.mxu1 %v1929_v21  ;;  %v95_v30 = vld [vmem:[%s3629_s1 + $0x1a8] sm:$0xff]  ;;  %v1903_v33 = vpack.c.bf16 %v47_v28, %v46_v27  ;;  %v65_v36 = vld [vmem:[%s3629_s1 + $0xb8] sm:$0xff] }
   0x9   :  { %v78_v31 = vld [vmem:[%s3629_s1 + $0x120] sm:$0xff]  ;;  %v79_v32 = vld [vmem:[%s3629_s1 + $0x128] sm:$0xff]  ;;  %1900 = vmatpush3.bf16.msra.mxu0 %v1899_v17  ;;  %v1933_v34 = vpack.c.bf16 %v95_v30, %v94_v29  ;;  %v48_v37 = vld [vmem:[%s3629_s1 + $0x30] sm:$0xff]  ;;  %v1905_v39 = vpack.c.bf16 %v65_v36, %v64_v35 }
   0xa   :  { %1902 = vmatprep.subr.bf16.mxu0 %v1901_v26  ;;  %v1935_v38 = vpack.c.bf16 %v79_v32, %v78_v31  ;;  %v49_v40 = vld [vmem:[%s3629_s1 + $0x38] sm:$0xff]  ;;  %v96_v41 = vld [vmem:[%s3629_s1 + $0x1b0] sm:$0xff]  ;;  %v66_v49 = vld [vmem:[%s3629_s1 + $0xc0] sm:$0xff] }
   0xb   :  { %1932 = vmatpush3.bf16.msra.mxu1 %v1931_v25  ;;  %v97_v42 = vld [vmem:[%s3629_s1 + $0x1b8] sm:$0xff]  ;;  %v80_v47 = vld [vmem:[%s3629_s1 + $0x130] sm:$0xff]  ;;  %v67_v50 = vld [vmem:[%s3629_s1 + $0xc8] sm:$0xff]  ;;  %v1907_v51 = vpack.c.bf16 %v49_v40, %v48_v37 }
   0xc   :  { %1934 = vmatprep.subr.bf16.mxu1 %v1933_v34  ;;  %v1937_v46 = vpack.c.bf16 %v97_v42, %v96_v41  ;;  %v81_v48 = vld [vmem:[%s3629_s1 + $0x138] sm:$0xff]  ;;  %v98_v52 = vld [vmem:[%s3629_s1 + $0x1c0] sm:$0xff]  ;;  %v99_v53 = vld [vmem:[%s3629_s1 + $0x1c8] sm:$0xff]  ;;  %v1909_v55 = vpack.c.bf16 %v67_v50, %v66_v49 }
   0xd   :  { %1904 = vmatpush3.bf16.msra.mxu0 %v1903_v33  ;;  %v1939_v54 = vpack.c.bf16 %v81_v48, %v80_v47  ;;  %v50_v56 = vld [vmem:[%s3629_s1 + $0x40] sm:$0xff]  ;;  %v51_v57 = vld [vmem:[%s3629_s1 + $0x48] sm:$0xff]  ;;  %v1941_v61 = vpack.c.bf16 %v99_v53, %v98_v52  ;;  %v68_v63 = vld [vmem:[%s3629_s1 + $0xd0] sm:$0xff] }
   0xe   :  { %1906 = vmatprep.subr.bf16.mxu0 %v1905_v39  ;;  %v82_v58 = vld [vmem:[%s3629_s1 + $0x140] sm:$0xff]  ;;  %v83_v62 = vld [vmem:[%s3629_s1 + $0x148] sm:$0xff]  ;;  %v69_v0 = vld [vmem:[%s3629_s1 + $0xd8] sm:$0xff]  ;;  %v1911_v3 = vpack.c.bf16 %v51_v57, %v50_v56 }
   0xf   :  { %1936 = vmatpush3.bf16.msra.mxu1 %v1935_v38  ;;  %v100_v1 = vld [vmem:[%s3629_s1 + $0x1d0] sm:$0xff]  ;;  %v101_v2 = vld [vmem:[%s3629_s1 + $0x1d8] sm:$0xff]  ;;  %v1943_v5 = vpack.c.bf16 %v83_v62, %v82_v58  ;;  %v1913_v6 = vpack.c.bf16 %v69_v0, %v68_v63  ;;  %v70_v12 = vld [vmem:[%s3629_s1 + $0xe0] sm:$0xff] }
  0x10   :  { %1938 = vmatprep.subr.bf16.mxu1 %v1937_v46  ;;  %v52_v4 = vld [vmem:[%s3629_s1 + $0x50] sm:$0xff]  ;;  %v53_v7 = vld [vmem:[%s3629_s1 + $0x58] sm:$0xff]  ;;  %v1945_v11 = vpack.c.bf16 %v101_v2, %v100_v1  ;;  %v71_v13 = vld [vmem:[%s3629_s1 + $0xe8] sm:$0xff] }
  0x11   :  { %1908 = vmatpush3.bf16.msra.mxu0 %v1907_v51  ;;  %v84_v8 = vld [vmem:[%s3629_s1 + $0x150] sm:$0xff]  ;;  %v85_v9 = vld [vmem:[%s3629_s1 + $0x158] sm:$0xff]  ;;  %v102_v14 = vld [vmem:[%s3629_s1 + $0x1e0] sm:$0xff]  ;;  %v1915_v16 = vpack.c.bf16 %v53_v7, %v52_v4  ;;  %v1917_v19 = vpack.c.bf16 %v71_v13, %v70_v12 }
  0x12   :  { %1910 = vmatprep.subr.bf16.mxu0 %v1909_v55  ;;  %v103_v15 = vld [vmem:[%s3629_s1 + $0x1e8] sm:$0xff]  ;;  %v1947_v17 = vpack.c.bf16 %v85_v9, %v84_v8  ;;  %v37_v18 = vld [vmem:[%s3628_s0] sm:$0xff]  ;;  %v72_v27 = vld [vmem:[%s3629_s1 + $0xf0] sm:$0xff] }
  0x13   :  { %1940 = vmatpush3.bf16.msra.mxu1 %v1939_v54  ;;  %v54_v20 = vld [vmem:[%s3629_s1 + $0x60] sm:$0xff]  ;;  %v55_v21 = vld [vmem:[%s3629_s1 + $0x68] sm:$0xff]  ;;  %v349_v23 = vrot.slane %v37_v18, %v2570_v10  ;;  %v342_v24 = vcombine.high %v37_v18, %v37_v18  ;;  %v1949_v25 = vpack.c.bf16 %v103_v15, %v102_v14  ;;  %v73_v28 = vld [vmem:[%s3629_s1 + $0xf8] sm:$0xff] }
  0x14   :  { %1942 = vmatprep.subr.bf16.mxu1 %v1941_v61  ;;  %v86_v22 = vld [vmem:[%s3629_s1 + $0x160] sm:$0xff]  ;;  %v87_v26 = vld [vmem:[%s3629_s1 + $0x168] sm:$0xff]  ;;  %v104_v29 = vld [vmem:[%s3629_s1 + $0x1f0] sm:$0xff]  ;;  %v1919_v33 = vpack.c.bf16 %v55_v21, %v54_v20  ;;  %v1921_v35 = vpack.c.bf16 %v73_v28, %v72_v27 }
  0x15   :  { %1912 = vmatpush3.bf16.msra.mxu0 %v1911_v3  ;;  %v105_v30 = vld [vmem:[%s3629_s1 + $0x1f8] sm:$0xff]  ;;  %v357_v31 = vcombine.high %v349_v23, %v349_v23  ;;  %v356_v32 = vrot.slane %v342_v24, %v2570_v10  ;;  %v1951_v34 = vpack.c.bf16 %v87_v26, %v86_v22  ;;  %v56_v36 = vld [vmem:[%s3629_s1 + $0x70] sm:$0xff]  ;;  %v122_v42 = vld [vmem:[%s3629_s1 + $0x280] sm:$0xff] }
  0x16   :  { %1914 = vmatprep.subr.bf16.mxu0 %v1913_v6  ;;  %v57_v37 = vld [vmem:[%s3629_s1 + $0x78] sm:$0xff]  ;;  %v88_v38 = vld [vmem:[%s3629_s1 + $0x170] sm:$0xff]  ;;  %v1953_v40 = vpack.c.bf16 %v105_v30, %v104_v29  ;;  %v123_v43 = vld [vmem:[%s3629_s1 + $0x288] sm:$0xff] }
  0x17   :  { %1944 = vmatpush3.bf16.msra.mxu1 %v1943_v5  ;;  %v358_v39 = vcombine.high %v356_v32, %v356_v32  ;;  %500 = vmatprep.mubr.f32.mxu0 %v357_v31  ;;  %v89_v41 = vld [vmem:[%s3629_s1 + $0x178] sm:$0xff]  ;;  %v154_v44 = vld [vmem:[%s3629_s1 + $0x380] sm:$0xff]  ;;  %v155_v45 = vld [vmem:[%s3629_s1 + $0x388] sm:$0xff]  ;;  %v1923_v46 = vpack.c.bf16 %v57_v37, %v56_v36  ;;  %v1957_v48 = vpack.c.bf16 %v123_v43, %v122_v42 }
  0x18   :  { %1946 = vmatprep.subr.bf16.mxu1 %v1945_v11  ;;  %v1955_v47 = vpack.c.bf16 %v89_v41, %v88_v38  ;;  %v106_v49 = vld [vmem:[%s3629_s1 + $0x200] sm:$0xff]  ;;  %v107_v50 = vld [vmem:[%s3629_s1 + $0x208] sm:$0xff]  ;;  %v1989_v52 = vpack.c.bf16 %v155_v45, %v154_v44  ;;  %v124_v54 = vld [vmem:[%s3629_s1 + $0x290] sm:$0xff] }
  0x19   :  { %1916 = vmatpush3.bf16.msra.mxu0 %v1915_v16  ;;  %570 = vmatprep.mubr.f32.mxu1 %v358_v39  ;;  %v138_v51 = vld [vmem:[%s3629_s1 + $0x300] sm:$0xff]  ;;  %v139_v53 = vld [vmem:[%s3629_s1 + $0x308] sm:$0xff]  ;;  %v125_v55 = vld [vmem:[%s3629_s1 + $0x298] sm:$0xff]  ;;  %v1959_v58 = vpack.c.bf16 %v107_v50, %v106_v49 }
  0x1a   :  { %1918 = vmatprep.subr.bf16.mxu0 %v1917_v19  ;;  %v156_v56 = vld [vmem:[%s3629_s1 + $0x390] sm:$0xff]  ;;  %v157_v57 = vld [vmem:[%s3629_s1 + $0x398] sm:$0xff]  ;;  %v1991_v59 = vpack.c.bf16 %v139_v53, %v138_v51  ;;  %v1961_v61 = vpack.c.bf16 %v125_v55, %v124_v54  ;;  %v126_v3 = vld [vmem:[%s3629_s1 + $0x2a0] sm:$0xff] }
  0x1b   :  { %1948 = vmatpush3.bf16.msra.mxu1 %v1947_v17  ;;  %v108_v62 = vld [vmem:[%s3629_s1 + $0x210] sm:$0xff]  ;;  %v109_v63 = vld [vmem:[%s3629_s1 + $0x218] sm:$0xff]  ;;  %v1993_v1 = vpack.c.bf16 %v157_v57, %v156_v56  ;;  %v127_v4 = vld [vmem:[%s3629_s1 + $0x2a8] sm:$0xff] }
  0x1c   :  { %1950 = vmatprep.subr.bf16.mxu1 %v1949_v25  ;;  %v140_v0 = vld [vmem:[%s3629_s1 + $0x310] sm:$0xff]  ;;  %v141_v2 = vld [vmem:[%s3629_s1 + $0x318] sm:$0xff]  ;;  %v158_v5 = vld [vmem:[%s3629_s1 + $0x3a0] sm:$0xff]  ;;  %v1963_v7 = vpack.c.bf16 %v109_v63, %v108_v62  ;;  %v1965_v9 = vpack.c.bf16 %v127_v4, %v126_v3 }
  0x1d   :  { %1920 = vmatpush3.bf16.msra.mxu0 %v1919_v33  ;;  %v159_v6 = vld [vmem:[%s3629_s1 + $0x3a8] sm:$0xff]  ;;  %v1995_v8 = vpack.c.bf16 %v141_v2, %v140_v0  ;;  %v110_v11 = vld [vmem:[%s3629_s1 + $0x220] sm:$0xff]  ;;  %v128_v16 = vld [vmem:[%s3629_s1 + $0x2b0] sm:$0xff] }
  0x1e   :  { %1922 = vmatprep.subr.bf16.mxu0 %v1921_v35  ;;  %v111_v12 = vld [vmem:[%s3629_s1 + $0x228] sm:$0xff]  ;;  %v142_v13 = vld [vmem:[%s3629_s1 + $0x320] sm:$0xff]  ;;  %v1997_v14 = vpack.c.bf16 %v159_v6, %v158_v5  ;;  %v129_v17 = vld [vmem:[%s3629_s1 + $0x2b8] sm:$0xff] }
  0x1f   :  { %1952 = vmatpush3.bf16.msra.mxu1 %v1951_v34  ;;  %v143_v15 = vld [vmem:[%s3629_s1 + $0x328] sm:$0xff]  ;;  %v160_v18 = vld [vmem:[%s3629_s1 + $0x3b0] sm:$0xff]  ;;  %v161_v19 = vld [vmem:[%s3629_s1 + $0x3b8] sm:$0xff]  ;;  %v1967_v20 = vpack.c.bf16 %v111_v12, %v110_v11 }
  0x20   :  { %1954 = vmatprep.subr.bf16.mxu1 %v1953_v40  ;;  %v112_v21 = vld [vmem:[%s3629_s1 + $0x230] sm:$0xff]  ;;  %v1999_v22 = vpack.c.bf16 %v143_v15, %v142_v13  ;;  %v113_v24 = vld [vmem:[%s3629_s1 + $0x238] sm:$0xff]  ;;  %v2001_v27 = vpack.c.bf16 %v161_v19, %v160_v18  ;;  %v130_v28 = vld [vmem:[%s3629_s1 + $0x2c0] sm:$0xff] }
  0x21   :  { %1924 = vmatpush3.bf16.msra.mxu0 %v1923_v46  ;;  %v144_v25 = vld [vmem:[%s3629_s1 + $0x330] sm:$0xff]  ;;  %v145_v26 = vld [vmem:[%s3629_s1 + $0x338] sm:$0xff]  ;;  %v131_v29 = vld [vmem:[%s3629_s1 + $0x2c8] sm:$0xff]  ;;  %v1971_v35 = vpack.c.bf16 %v113_v24, %v112_v21 }
  0x22   :  { %1958 = vmatprep.subr.bf16.mxu0 %v1957_v48  ;;  %v38_v30 = vld [vmem:[%s3628_s0 + $0x8] sm:$0xff]  ;;  %v162_v31 = vld [vmem:[%s3629_s1 + $0x3c0] sm:$0xff]  ;;  %v2003_v36 = vpack.c.bf16 %v145_v26, %v144_v25  ;;  %v1973_v37 = vpack.c.bf16 %v131_v29, %v130_v28  ;;  %v132_v45 = vld [vmem:[%s3629_s1 + $0x2d0] sm:$0xff] }
  0x23   :  { %1956 = vmatpush3.bf16.msra.mxu1 %v1955_v47  ;;  %v2737_v33 = vrot.slane %v38_v30, %v2570_v10  ;;  %v359_v34 = vcombine.high %v38_v30, %v38_v30  ;;  %v114_v38 = vld [vmem:[%s3629_s1 + $0x240] sm:$0xff]  ;;  %v115_v39 = vld [vmem:[%s3629_s1 + $0x248] sm:$0xff]  ;;  %v133_v46 = vld [vmem:[%s3629_s1 + $0x2d8] sm:$0xff] }
  0x24   :  { %1990 = vmatprep.subr.bf16.mxu1 %v1989_v52  ;;  %501 = vmatmul.mubr.f32.vlgmr.msra.gmra.mrb[0].mxu0 %v349_v23  ;;  %v1969_v23 = vpack.c.bf16 %v129_v17, %v128_v16  ;;  %v146_v40 = vld [vmem:[%s3629_s1 + $0x340] sm:$0xff]  ;;  %v147_v44 = vld [vmem:[%s3629_s1 + $0x348] sm:$0xff]  ;;  %v164_v47 = vld [vmem:[%s3629_s1 + $0x3d0] sm:$0xff]  ;;  %v1975_v50 = vpack.c.bf16 %v115_v39, %v114_v38  ;;  %v1977_v52 = vpack.c.bf16 %v133_v46, %v132_v45 }
  0x25   :  { %1960 = vmatpush3.bf16.msra.mxu0 %v1959_v58  ;;  %v374_v41 = vcombine.high %v2737_v33, %v2737_v33  ;;  %v2751_v42 = vrot.slane %v359_v34, %v2570_v10  ;;  %v165_v48 = vld [vmem:[%s3629_s1 + $0x3d8] sm:$0xff]  ;;  %v2007_v51 = vpack.c.bf16 %v147_v44, %v146_v40  ;;  %v116_v53 = vld [vmem:[%s3629_s1 + $0x250] sm:$0xff]  ;;  %v134_v58 = vld [vmem:[%s3629_s1 + $0x2e0] sm:$0xff] }
  0x26   :  { %571 = vmatmul.mubr.f32.vlgmr.msra.gmra.mrb[0].mxu1 %v356_v32  ;;  %1962 = vmatprep.subr.bf16.mxu0 %v1961_v61  ;;  %v163_v32 = vld [vmem:[%s3629_s1 + $0x3c8] sm:$0xff]  ;;  %v117_v54 = vld [vmem:[%s3629_s1 + $0x258] sm:$0xff]  ;;  %v148_v55 = vld [vmem:[%s3629_s1 + $0x350] sm:$0xff]  ;;  %v2009_v56 = vpack.c.bf16 %v165_v48, %v164_v47 }
  0x27   :  { %1992 = vmatpush3.bf16.msra.mxu1 %v1991_v59  ;;  %v2005_v43 = vpack.c.bf16 %v163_v32, %v162_v31  ;;  %640 = vmatprep.mubr.f32.mxu0 %v374_v41  ;;  %v375_v49 = vcombine.high %v2751_v42, %v2751_v42  ;;  %v149_v57 = vld [vmem:[%s3629_s1 + $0x358] sm:$0xff]  ;;  %v135_v59 = vld [vmem:[%s3629_s1 + $0x2e8] sm:$0xff]  ;;  %v166_v61 = vld [vmem:[%s3629_s1 + $0x3e0] sm:$0xff]  ;;  %v1979_v63 = vpack.c.bf16 %v117_v54, %v116_v53 }
  0x28   :  { %1994 = vmatprep.subr.bf16.mxu1 %v1993_v1  ;;  %v167_v62 = vld [vmem:[%s3629_s1 + $0x3e8] sm:$0xff]  ;;  %v2011_v0 = vpack.c.bf16 %v149_v57, %v148_v55  ;;  %v1981_v1 = vpack.c.bf16 %v135_v59, %v134_v58  ;;  %v118_v2 = vld [vmem:[%s3629_s1 + $0x260] sm:$0xff]  ;;  %v169_v11 = vld [vmem:[%s3629_s1 + $0x3f8] sm:$0xff] }
  0x29   :  { %1964 = vmatpush3.bf16.msra.mxu0 %v1963_v7  ;;  %710 = vmatprep.mubr.f32.mxu1 %v375_v49  ;;  %v119_v3 = vld [vmem:[%s3629_s1 + $0x268] sm:$0xff]  ;;  %v150_v4 = vld [vmem:[%s3629_s1 + $0x360] sm:$0xff]  ;;  %v2013_v5 = vpack.c.bf16 %v167_v62, %v166_v61  ;;  %v136_v7 = vld [vmem:[%s3629_s1 + $0x2f0] sm:$0xff] }
  0x2a   :  { %1966 = vmatprep.subr.bf16.mxu0 %v1965_v9  ;;  %v151_v6 = vld [vmem:[%s3629_s1 + $0x368] sm:$0xff]  ;;  %v168_v9 = vld [vmem:[%s3629_s1 + $0x3f0] sm:$0xff]  ;;  %v1983_v12 = vpack.c.bf16 %v119_v3, %v118_v2  ;;  %v121_v16 = vld [vmem:[%s3629_s1 + $0x278] sm:$0xff] }
  0x2b   :  { %1996 = vmatpush3.bf16.msra.mxu1 %v1995_v8  ;;  %v137_v8 = vld [vmem:[%s3629_s1 + $0x2f8] sm:$0xff]  ;;  %v2015_v13 = vpack.c.bf16 %v151_v6, %v150_v4  ;;  %v120_v15 = vld [vmem:[%s3629_s1 + $0x270] sm:$0xff]  ;;  %v2017_v18 = vpack.c.bf16 %v169_v11, %v168_v9  ;;  %v187_v21 = vld [vmem:[%s3629_s1 + $0x488] sm:$0xff] }
  0x2c   :  { %1998 = vmatprep.subr.bf16.mxu1 %v1997_v14  ;;  %v1985_v14 = vpack.c.bf16 %v137_v8, %v136_v7  ;;  %v152_v17 = vld [vmem:[%s3629_s1 + $0x370] sm:$0xff]  ;;  %v153_v19 = vld [vmem:[%s3629_s1 + $0x378] sm:$0xff]  ;;  %v1987_v24 = vpack.c.bf16 %v121_v16, %v120_v15  ;;  %v170_v25 = vld [vmem:[%s3629_s1 + $0x400] sm:$0xff] }
  0x2d   :  { %1968 = vmatpush3.bf16.msra.mxu0 %v1967_v20  ;;  %v186_v20 = vld [vmem:[%s3629_s1 + $0x480] sm:$0xff]  ;;  %v2019_v26 = vpack.c.bf16 %v153_v19, %v152_v17  ;;  %v171_v28 = vld [vmem:[%s3629_s1 + $0x408] sm:$0xff]  ;;  %v188_v32 = vld [vmem:[%s3629_s1 + $0x490] sm:$0xff] }
  0x2e   :  { %1970 = vmatprep.subr.bf16.mxu0 %v1969_v23  ;;  %v219_v23 = vld [vmem:[%s3629_s1 + $0x588] sm:$0xff]  ;;  %v202_v29 = vld [vmem:[%s3629_s1 + $0x500] sm:$0xff]  ;;  %v189_v34 = vld [vmem:[%s3629_s1 + $0x498] sm:$0xff] }
  0x2f   :  { %2000 = vmatpush3.bf16.msra.mxu1 %v1999_v22  ;;  %v218_v22 = vld [vmem:[%s3629_s1 + $0x580] sm:$0xff]  ;;  %v203_v30 = vld [vmem:[%s3629_s1 + $0x508] sm:$0xff]  ;;  %v39_v39 = vld [vmem:[%s3628_s0 + $0x10] sm:$0xff]  ;;  %v2025_v40 = vpack.c.bf16 %v189_v34, %v188_v32 }
  0x30   :  { %2002 = vmatprep.subr.bf16.mxu1 %v2001_v27  ;;  %v2021_v27 = vpack.c.bf16 %v187_v21, %v186_v20  ;;  %v2053_v31 = vpack.c.bf16 %v219_v23, %v218_v22  ;;  %v2055_v38 = vpack.c.bf16 %v203_v30, %v202_v29  ;;  %v172_v41 = vld [vmem:[%s3629_s1 + $0x410] sm:$0xff]  ;;  %v2879_v45 = vrot.slane %v39_v39, %v2570_v10  ;;  %v205_v48 = vld [vmem:[%s3629_s1 + $0x518] sm:$0xff]  ;;  %v190_v49 = vld [vmem:[%s3629_s1 + $0x4a0] sm:$0xff] }
  0x31   :  { %1972 = vmatpush3.bf16.msra.mxu0 %v1971_v35  ;;  %v220_v35 = vld [vmem:[%s3629_s1 + $0x590] sm:$0xff]  ;;  %v376_v46 = vcombine.high %v39_v39, %v39_v39  ;;  %v174_v57 = vld [vmem:[%s3629_s1 + $0x420] sm:$0xff]  ;;  %v175_v58 = vld [vmem:[%s3629_s1 + $0x428] sm:$0xff] }
  0x32   :  { %1974 = vmatprep.subr.bf16.mxu0 %v1973_v37  ;;  %v2023_v37 = vpack.c.bf16 %v171_v28, %v170_v25  ;;  %v204_v44 = vld [vmem:[%s3629_s1 + $0x510] sm:$0xff]  ;;  %v391_v53 = vcombine.high %v2879_v45, %v2879_v45  ;;  %v206_v59 = vld [vmem:[%s3629_s1 + $0x520] sm:$0xff]  ;;  %v207_v62 = vld [vmem:[%s3629_s1 + $0x528] sm:$0xff]  ;;  %v2031_v3 = vpack.c.bf16 %v175_v58, %v174_v57 }
  0x33   :  { %2004 = vmatpush3.bf16.msra.mxu1 %v2003_v36  ;;  %v221_v36 = vld [vmem:[%s3629_s1 + $0x598] sm:$0xff]  ;;  %v2900_v54 = vrot.slane %v376_v46, %v2570_v10  ;;  %v2063_v4 = vpack.c.bf16 %v207_v62, %v206_v59  ;;  %v176_v6 = vld [vmem:[%s3629_s1 + $0x430] sm:$0xff]  ;;  %v227_v15 = vld [vmem:[%s3629_s1 + $0x5c8] sm:$0xff] }
  0x34   :  { %2006 = vmatprep.subr.bf16.mxu1 %v2005_v43  ;;  %v173_v43 = vld [vmem:[%s3629_s1 + $0x418] sm:$0xff]  ;;  %v2057_v47 = vpack.c.bf16 %v221_v36, %v220_v35  ;;  %v208_v8 = vld [vmem:[%s3629_s1 + $0x530] sm:$0xff]  ;;  %v178_v19 = vld [vmem:[%s3629_s1 + $0x440] sm:$0xff] }
  0x35   :  { %1976 = vmatpush3.bf16.msra.mxu0 %v1975_v50  ;;  %v191_v50 = vld [vmem:[%s3629_s1 + $0x4a8] sm:$0xff]  ;;  %v2027_v55 = vpack.c.bf16 %v173_v43, %v172_v41  ;;  %v225_v2 = vld [vmem:[%s3629_s1 + $0x5b8] sm:$0xff]  ;;  %v210_v21 = vld [vmem:[%s3629_s1 + $0x540] sm:$0xff] }
  0x36   :  { %1978 = vmatprep.subr.bf16.mxu0 %v1977_v52  ;;  %v223_v52 = vld [vmem:[%s3629_s1 + $0x5a8] sm:$0xff]  ;;  %v177_v7 = vld [vmem:[%s3629_s1 + $0x438] sm:$0xff]  ;;  %v212_v34 = vld [vmem:[%s3629_s1 + $0x550] sm:$0xff] }
  0x37   :  { %2008 = vmatpush3.bf16.msra.mxu1 %v2007_v51  ;;  %v222_v51 = vld [vmem:[%s3629_s1 + $0x5a0] sm:$0xff]  ;;  %v209_v11 = vld [vmem:[%s3629_s1 + $0x538] sm:$0xff]  ;;  %v2035_v16 = vpack.c.bf16 %v177_v7, %v176_v6  ;;  %v179_v20 = vld [vmem:[%s3629_s1 + $0x448] sm:$0xff] }
  0x38   :  { %2010 = vmatprep.subr.bf16.mxu1 %v2009_v56  ;;  %v2029_v56 = vpack.c.bf16 %v191_v50, %v190_v49  ;;  %v2061_v61 = vpack.c.bf16 %v223_v52, %v222_v51  ;;  %v2067_v17 = vpack.c.bf16 %v209_v11, %v208_v8  ;;  %v211_v23 = vld [vmem:[%s3629_s1 + $0x548] sm:$0xff]  ;;  %v197_v25 = vld [vmem:[%s3629_s1 + $0x4d8] sm:$0xff]  ;;  %v2039_v28 = vpack.c.bf16 %v179_v20, %v178_v19  ;;  %v230_v39 = vld [vmem:[%s3629_s1 + $0x5e0] sm:$0xff] }
  0x39   :  { %1980 = vmatpush3.bf16.msra.mxu0 %v1979_v63  ;;  %v192_v63 = vld [vmem:[%s3629_s1 + $0x4b0] sm:$0xff]  ;;  %v2071_v29 = vpack.c.bf16 %v211_v23, %v210_v21  ;;  %v181_v32 = vld [vmem:[%s3629_s1 + $0x458] sm:$0xff]  ;;  %v182_v46 = vld [vmem:[%s3629_s1 + $0x460] sm:$0xff] }
  0x3a   :  { %1982 = vmatprep.subr.bf16.mxu0 %v1981_v1  ;;  %v224_v1 = vld [vmem:[%s3629_s1 + $0x5b0] sm:$0xff]  ;;  %v213_v36 = vld [vmem:[%s3629_s1 + $0x558] sm:$0xff]  ;;  %v215_v50 = vld [vmem:[%s3629_s1 + $0x568] sm:$0xff] }
  0x3b   :  { %2012 = vmatpush3.bf16.msra.mxu1 %v2011_v0  ;;  %v193_v0 = vld [vmem:[%s3629_s1 + $0x4b8] sm:$0xff]  ;;  %v2065_v9 = vpack.c.bf16 %v225_v2, %v224_v1  ;;  %v2075_v43 = vpack.c.bf16 %v213_v36, %v212_v34  ;;  %v200_v51 = vld [vmem:[%s3629_s1 + $0x4f0] sm:$0xff]  ;;  %v251_v1 = vld [vmem:[%s3629_s1 + $0x688] sm:$0xff] }
  0x3c   :  { %2014 = vmatprep.subr.bf16.mxu1 %v2013_v5  ;;  %v2033_v5 = vpack.c.bf16 %v193_v0, %v192_v63  ;;  %v201_v52 = vld [vmem:[%s3629_s1 + $0x4f8] sm:$0xff]  ;;  %v184_v59 = vld [vmem:[%s3629_s1 + $0x470] sm:$0xff]  ;;  %v250_v0 = vld [vmem:[%s3629_s1 + $0x680] sm:$0xff] }
  0x3d   :  { %1984 = vmatpush3.bf16.msra.mxu0 %v1983_v12  ;;  %v194_v12 = vld [vmem:[%s3629_s1 + $0x4c0] sm:$0xff]  ;;  %v2049_v58 = vpack.c.bf16 %v201_v52, %v200_v51  ;;  %v217_v63 = vld [vmem:[%s3629_s1 + $0x578] sm:$0xff]  ;;  %v2085_v7 = vpack.c.bf16 %v251_v1, %v250_v0  ;;  %v236_v21 = vld [vmem:[%s3629_s1 + $0x610] sm:$0xff] }
  0x3e   :  { %1986 = vmatprep.subr.bf16.mxu0 %v1985_v14  ;;  %v226_v14 = vld [vmem:[%s3629_s1 + $0x5c0] sm:$0xff] }
  0x3f   :  { %2016 = vmatpush3.bf16.msra.mxu1 %v2015_v13  ;;  %v195_v13 = vld [vmem:[%s3629_s1 + $0x4c8] sm:$0xff]  ;;  %v2069_v22 = vpack.c.bf16 %v227_v15, %v226_v14  ;;  %v282_v2 = vld [vmem:[%s3629_s1 + $0x780] sm:$0xff]  ;;  %v252_v14 = vld [vmem:[%s3629_s1 + $0x690] sm:$0xff] }
  0x40   :  { %2018 = vmatprep.subr.bf16.mxu1 %v2017_v18  ;;  %v2037_v18 = vpack.c.bf16 %v195_v13, %v194_v12  ;;  %v234_v8 = vld [vmem:[%s3629_s1 + $0x600] sm:$0xff]  ;;  %v267_v13 = vld [vmem:[%s3629_s1 + $0x708] sm:$0xff]  ;;  %v253_v15 = vld [vmem:[%s3629_s1 + $0x698] sm:$0xff] }
  0x41   :  { %1988 = vmatpush3.bf16.msra.mxu0 %v1987_v24  ;;  %v196_v24 = vld [vmem:[%s3629_s1 + $0x4d0] sm:$0xff]  ;;  %v266_v11 = vld [vmem:[%s3629_s1 + $0x700] sm:$0xff]  ;;  %v2089_v23 = vpack.c.bf16 %v253_v15, %v252_v14 }
  0x42   :  { %2022 = vmatprep.subr.bf16.mxu0 %v2021_v27  ;;  %v229_v27 = vld [vmem:[%s3629_s1 + $0x5d8] sm:$0xff]  ;;  %v2041_v30 = vpack.c.bf16 %v197_v25, %v196_v24  ;;  %v268_v25 = vld [vmem:[%s3629_s1 + $0x710] sm:$0xff] }
  0x43   :  { %2020 = vmatpush3.bf16.msra.mxu1 %v2019_v26  ;;  %v228_v26 = vld [vmem:[%s3629_s1 + $0x5d0] sm:$0xff]  ;;  %v237_v24 = vld [vmem:[%s3629_s1 + $0x618] sm:$0xff] }
  0x44   :  { %2054 = vmatprep.subr.bf16.mxu1 %v2053_v31  ;;  %641 = vmatmul.mubr.f32.vlgmr.msra.gmra.mrb[2].mxu0 %v2737_v33  ;;  %v2059_v33 = vpack.c.bf16 %v205_v48, %v204_v44  ;;  %v180_v31 = vld [vmem:[%s3629_s1 + $0x450] sm:$0xff]  ;;  %v2073_v35 = vpack.c.bf16 %v229_v27, %v228_v26  ;;  %v214_v48 = vld [vmem:[%s3629_s1 + $0x560] sm:$0xff]  ;;  %v269_v26 = vld [vmem:[%s3629_s1 + $0x718] sm:$0xff] }
  0x45   :  { %2024 = vmatpush3.bf16.msra.mxu0 %v2023_v37  ;;  %780 = vmatprep.mubr.f32.mxu0 %v391_v53  ;;  %v198_v37 = vld [vmem:[%s3629_s1 + $0x4e0] sm:$0xff]  ;;  %v2043_v41 = vpack.c.bf16 %v181_v32, %v180_v31  ;;  %v232_v53 = vld [vmem:[%s3629_s1 + $0x5f0] sm:$0xff]  ;;  %v2079_v57 = vpack.c.bf16 %v215_v50, %v214_v48 }
  0x46   :  { %711 = vmatmul.mubr.f32.vlgmr.msra.gmra.mrb[2].mxu1 %v2751_v42  ;;  %2026 = vmatprep.subr.bf16.mxu0 %v2025_v40  ;;  %v392_v42 = vcombine.high %v2900_v54, %v2900_v54  ;;  %v231_v40 = vld [vmem:[%s3629_s1 + $0x5e8] sm:$0xff] }
  0x47   :  { %2056 = vmatpush3.bf16.msra.mxu1 %v2055_v38  ;;  %v199_v38 = vld [vmem:[%s3629_s1 + $0x4e8] sm:$0xff]  ;;  %v2077_v49 = vpack.c.bf16 %v231_v40, %v230_v39 }
  0x48   :  { %2058 = vmatprep.subr.bf16.mxu1 %v2057_v47  ;;  %850 = vmatprep.mubr.f32.mxu1 %v392_v42  ;;  %v2045_v44 = vpack.c.bf16 %v199_v38, %v198_v37  ;;  %v183_v47 = vld [vmem:[%s3629_s1 + $0x468] sm:$0xff]  ;;  %v185_v42 = vld [vmem:[%s3629_s1 + $0x478] sm:$0xff] }
  0x49   :  { %2028 = vmatpush3.bf16.msra.mxu0 %v2027_v55  ;;  %v233_v55 = vld [vmem:[%s3629_s1 + $0x5f8] sm:$0xff] }
  0x4a   :  { %2030 = vmatprep.subr.bf16.mxu0 %v2029_v56  ;;  %v40_v56 = vld [vmem:[%s3628_s0 + $0x18] sm:$0xff]  ;;  %v2081_v62 = vpack.c.bf16 %v233_v55, %v232_v53 }
  0x4b   :  { %2060 = vmatpush3.bf16.msra.mxu1 %v2059_v33  ;;  %v2047_v33 = vpack.c.bf16 %v183_v47, %v182_v46 }
  0x4c   :  { %2062 = vmatprep.subr.bf16.mxu1 %v2061_v61  ;;  %v216_v61 = vld [vmem:[%s3629_s1 + $0x570] sm:$0xff] }
  0x4d   :  { %2032 = vmatpush3.bf16.msra.mxu0 %v2031_v3  ;;  %v283_v3 = vld [vmem:[%s3629_s1 + $0x788] sm:$0xff]  ;;  %v2083_v6 = vpack.c.bf16 %v217_v63, %v216_v61 }
  0x4e   :  { %2034 = vmatprep.subr.bf16.mxu0 %v2033_v5  ;;  %v2051_v5 = vpack.c.bf16 %v185_v42, %v184_v59  ;;  %v2117_v12 = vpack.c.bf16 %v283_v3, %v282_v2 }
  0x4f   :  { %2064 = vmatpush3.bf16.msra.mxu1 %v2063_v4  ;;  %v393_v4 = vcombine.high %v40_v56, %v40_v56 }
  0x50   :  { %2066 = vmatprep.subr.bf16.mxu1 %v2065_v9  ;;  %v235_v9 = vld [vmem:[%s3629_s1 + $0x608] sm:$0xff] }
  0x51   :  { %2036 = vmatpush3.bf16.msra.mxu0 %v2035_v16  ;;  %v3071_v16 = vrot.slane %v40_v56, %v2570_v10  ;;  %v3080_v19 = vrot.slane %v393_v4, %v2570_v10  ;;  %v2087_v20 = vpack.c.bf16 %v235_v9, %v234_v8 }
  0x52   :  { %2038 = vmatprep.subr.bf16.mxu0 %v2037_v18  ;;  %v285_v18 = vld [vmem:[%s3629_s1 + $0x798] sm:$0xff] }
  0x53   :  { %2068 = vmatpush3.bf16.msra.mxu1 %v2067_v17  ;;  %v284_v17 = vld [vmem:[%s3629_s1 + $0x790] sm:$0xff] }
  0x54   :  { %2070 = vmatprep.subr.bf16.mxu1 %v2069_v22  ;;  %v2119_v22 = vpack.c.bf16 %v267_v13, %v266_v11  ;;  %v2121_v27 = vpack.c.bf16 %v285_v18, %v284_v17 }
  0x55   :  { %2040 = vmatpush3.bf16.msra.mxu0 %v2039_v28  ;;  %v254_v28 = vld [vmem:[%s3629_s1 + $0x6a0] sm:$0xff] }
  0x56   :  { %2042 = vmatprep.subr.bf16.mxu0 %v2041_v30  ;;  %v408_v30 = vcombine.high %v3071_v16, %v3071_v16 }
  0x57   :  { %2072 = vmatpush3.bf16.msra.mxu1 %v2071_v29  ;;  %v255_v29 = vld [vmem:[%s3629_s1 + $0x6a8] sm:$0xff] }
  0x58   :  { %2074 = vmatprep.subr.bf16.mxu1 %v2073_v35 }
  0x59   :  { %2044 = vmatpush3.bf16.msra.mxu0 %v2043_v41 }
  0x5a   :  { %2046 = vmatprep.subr.bf16.mxu0 %v2045_v44 }
  0x5b   :  { %2076 = vmatpush3.bf16.msra.mxu1 %v2075_v43 }
  0x5c   :  { %2078 = vmatprep.subr.bf16.mxu1 %v2077_v49 }
  0x5d   :  { %2048 = vmatpush3.bf16.msra.mxu0 %v2047_v33 }
  0x5e   :  { %2050 = vmatprep.subr.bf16.mxu0 %v2049_v58 }
  0x5f   :  { %2080 = vmatpush3.bf16.msra.mxu1 %v2079_v57 }
  0x60   :  { %2082 = vmatprep.subr.bf16.mxu1 %v2081_v62 }
  0x61   :  { %2052 = vmatpush3.bf16.msra.mxu0 %v2051_v5 }
  0x62   :  { %2086 = vmatprep.subr.bf16.mxu0 %v2085_v7 }
  0x63   :  { %2084 = vmatpush3.bf16.msra.mxu1 %v2083_v6 }
  0x64   :  { %2118 = vmatprep.subr.bf16.mxu1 %v2117_v12 }
  0x65   :  { %18 = vsyncpa [#allocation5], 0  ;;  %781 = vmatmul.mubr.f32.vlgmr.msra.gmra.mrb[4].mxu0 %v2879_v45  ;;  %v286_v31 = vld [vmem:[%s3629_s1 + $0x7a0] sm:$0xff]  ;;  %v287_v32 = vld [vmem:[%s3629_s1 + $0x7a8] sm:$0xff]  ;;  %v409_v34 = vcombine.high %v3080_v19, %v3080_v19  ;;  %v2091_v35 = vpack.c.bf16 %v237_v24, %v236_v21  ;;  %v2123_v36 = vpack.c.bf16 %v269_v26, %v268_v25  ;;  %v2093_v37 = vpack.c.bf16 %v255_v29, %v254_v28  ;;  %s2361_s13 = smov [#allocation2]  }
  0x66   :  { %2088 = vmatpush3.bf16.msra.mxu0 %v2087_v20  ;;  %851 = vmatmul.mubr.f32.vlgmr.msra.gmra.mrb[4].mxu1 %v2900_v54  ;;  %v238_v45 = vld [vmem:[%s3629_s1 + $0x620] sm:$0xff]  ;;  %v239_v38 = vld [vmem:[%s3629_s1 + $0x628] sm:$0xff]  ;;  %v2125_v40 = vpack.c.bf16 %v287_v32, %v286_v31  ;;  %v256_v41 = vld [vmem:[%s3629_s1 + $0x6b0] sm:$0xff]  ;;  %vm2359_vm0 = vmmov 0   ;;  %vm1182_vm1 = vcmask 1041408   ;;  %vm1184_vm2 = vcmask 320512  }
  0x67   :  { %2120 = vmatpush3.bf16.msra.mxu1 %v2119_v22  ;;  %2090 = vmatprep.subr.bf16.mxu0 %v2089_v23  ;;  %v270_v39 = vld [vmem:[%s3629_s1 + $0x720] sm:$0xff]  ;;  %v271_v54 = vld [vmem:[%s3629_s1 + $0x728] sm:$0xff]  ;;  %v257_v43 = vld [vmem:[%s3629_s1 + $0x6b8] sm:$0xff]  ;;  %v2095_v47 = vpack.c.bf16 %v239_v38, %v238_v45  ;;  %vm1310_vm3 = vcmask 82944   ;;  %vm1416_vm4 = vcmask 50176   ;;  %vm1214_vm5 = vcmask 322562  }
  0x68   :  { %2122 = vmatprep.subr.bf16.mxu1 %v2121_v27  ;;  %920 = vmatprep.mubr.f32.mxu0 %v408_v30  ;;  %v288_v44 = vld [vmem:[%s3629_s1 + $0x7b0] sm:$0xff]  ;;  %v289_v46 = vld [vmem:[%s3629_s1 + $0x7b8] sm:$0xff]  ;;  %v2127_v48 = vpack.c.bf16 %v271_v54, %v270_v39  ;;  %v2097_v49 = vpack.c.bf16 %v257_v43, %v256_v41  ;;  %v258_v33 = vld [vmem:[%s3629_s1 + $0x6c0] sm:$0xff]  ;;  %s1435_s14 = sshll.u32 %s2361_s13, 4  ;;  %s1436_s14 = int_to_ptr.vmem [resolvable:$true] %s1435_s14 }
  0x69   :  { %990 = vmatprep.mubr.f32.mxu1 %v409_v34  ;;  %v240_v50 = vld [vmem:[%s3629_s1 + $0x630] sm:$0xff]  ;;  %v241_v51 = vld [vmem:[%s3629_s1 + $0x638] sm:$0xff]  ;;  %v2129_v53 = vpack.c.bf16 %v289_v46, %v288_v44  ;;  %v259_v56 = vld [vmem:[%s3629_s1 + $0x6c8] sm:$0xff] }
  0x6a   :  { %2092 = vmatpush3.bf16.msra.mxu0 %v2091_v35  ;;  %v272_v52 = vld [vmem:[%s3629_s1 + $0x730] sm:$0xff]  ;;  %v273_v55 = vld [vmem:[%s3629_s1 + $0x738] sm:$0xff]  ;;  %v290_v57 = vld [vmem:[%s3629_s1 + $0x7c0] sm:$0xff]  ;;  %v2099_v59 = vpack.c.bf16 %v241_v51, %v240_v50  ;;  %v2101_v61 = vpack.c.bf16 %v259_v56, %v258_v33 }
  0x6b   :  { %2124 = vmatpush3.bf16.msra.mxu1 %v2123_v36  ;;  %2094 = vmatprep.subr.bf16.mxu0 %v2093_v37  ;;  %v291_v58 = vld [vmem:[%s3629_s1 + $0x7c8] sm:$0xff]  ;;  %v2131_v42 = vpack.c.bf16 %v273_v55, %v272_v52  ;;  %v242_v62 = vld [vmem:[%s3629_s1 + $0x640] sm:$0xff]  ;;  %v260_v3 = vld [vmem:[%s3629_s1 + $0x6d0] sm:$0xff] }
  0x6c   :  { %2126 = vmatprep.subr.bf16.mxu1 %v2125_v40  ;;  %v243_v63 = vld [vmem:[%s3629_s1 + $0x648] sm:$0xff]  ;;  %v274_v0 = vld [vmem:[%s3629_s1 + $0x740] sm:$0xff]  ;;  %v2133_v1 = vpack.c.bf16 %v291_v58, %v290_v57  ;;  %v261_v4 = vld [vmem:[%s3629_s1 + $0x6d8] sm:$0xff] }
  0x6d   :  { %v275_v2 = vld [vmem:[%s3629_s1 + $0x748] sm:$0xff]  ;;  %v292_v5 = vld [vmem:[%s3629_s1 + $0x7d0] sm:$0xff]  ;;  %v293_v6 = vld [vmem:[%s3629_s1 + $0x7d8] sm:$0xff]  ;;  %v2103_v7 = vpack.c.bf16 %v243_v63, %v242_v62  ;;  %v2105_v9 = vpack.c.bf16 %v261_v4, %v260_v3 }
  0x6e   :  { %2096 = vmatpush3.bf16.msra.mxu0 %v2095_v47  ;;  %v2135_v8 = vpack.c.bf16 %v275_v2, %v274_v0  ;;  %v244_v11 = vld [vmem:[%s3629_s1 + $0x650] sm:$0xff]  ;;  %v245_v12 = vld [vmem:[%s3629_s1 + $0x658] sm:$0xff]  ;;  %v2137_v14 = vpack.c.bf16 %v293_v6, %v292_v5  ;;  %v262_v17 = vld [vmem:[%s3629_s1 + $0x6e0] sm:$0xff] }
  0x6f   :  { %2128 = vmatpush3.bf16.msra.mxu1 %v2127_v48  ;;  %2098 = vmatprep.subr.bf16.mxu0 %v2097_v49  ;;  %v276_v13 = vld [vmem:[%s3629_s1 + $0x750] sm:$0xff]  ;;  %v277_v15 = vld [vmem:[%s3629_s1 + $0x758] sm:$0xff]  ;;  %v263_v18 = vld [vmem:[%s3629_s1 + $0x6e8] sm:$0xff]  ;;  %v2107_v22 = vpack.c.bf16 %v245_v12, %v244_v11 }
  0x70   :  { %2130 = vmatprep.subr.bf16.mxu1 %v2129_v53  ;;  %v294_v20 = vld [vmem:[%s3629_s1 + $0x7e0] sm:$0xff]  ;;  %v295_v21 = vld [vmem:[%s3629_s1 + $0x7e8] sm:$0xff]  ;;  %v2139_v23 = vpack.c.bf16 %v277_v15, %v276_v13  ;;  %v2109_v24 = vpack.c.bf16 %v263_v18, %v262_v17  ;;  %v264_v30 = vld [vmem:[%s3629_s1 + $0x6f0] sm:$0xff] }
  0x71   :  { %v246_v25 = vld [vmem:[%s3629_s1 + $0x660] sm:$0xff]  ;;  %v247_v26 = vld [vmem:[%s3629_s1 + $0x668] sm:$0xff]  ;;  %v2141_v28 = vpack.c.bf16 %v295_v21, %v294_v20  ;;  %v265_v31 = vld [vmem:[%s3629_s1 + $0x6f8] sm:$0xff] }
  0x72   :  { %2100 = vmatpush3.bf16.msra.mxu0 %v2099_v59  ;;  %v278_v27 = vld [vmem:[%s3629_s1 + $0x760] sm:$0xff]  ;;  %v279_v29 = vld [vmem:[%s3629_s1 + $0x768] sm:$0xff]  ;;  %v296_v32 = vld [vmem:[%s3629_s1 + $0x7f0] sm:$0xff]  ;;  %v2111_v35 = vpack.c.bf16 %v247_v26, %v246_v25  ;;  %v2113_v37 = vpack.c.bf16 %v265_v31, %v264_v30 }
  0x73   :  { %2132 = vmatpush3.bf16.msra.mxu1 %v2131_v42  ;;  %2102 = vmatprep.subr.bf16.mxu0 %v2101_v61  ;;  %v297_v34 = vld [vmem:[%s3629_s1 + $0x7f8] sm:$0xff]  ;;  %v2143_v36 = vpack.c.bf16 %v279_v29, %v278_v27  ;;  %v248_v45 = vld [vmem:[%s3629_s1 + $0x670] sm:$0xff]  ;;  %v314_v41 = vld [vmem:[%s3629_s1 + $0x880] sm:$0xff] }
  0x74   :  { %2134 = vmatprep.subr.bf16.mxu1 %v2133_v1  ;;  %v249_v38 = vld [vmem:[%s3629_s1 + $0x678] sm:$0xff]  ;;  %v280_v39 = vld [vmem:[%s3629_s1 + $0x770] sm:$0xff]  ;;  %v2145_v40 = vpack.c.bf16 %v297_v34, %v296_v32  ;;  %v315_v43 = vld [vmem:[%s3629_s1 + $0x888] sm:$0xff] }
  0x75   :  { %v281_v54 = vld [vmem:[%s3629_s1 + $0x778] sm:$0xff]  ;;  %v2115_v44 = vpack.c.bf16 %v249_v38, %v248_v45  ;;  %v2149_v47 = vpack.c.bf16 %v315_v43, %v314_v41  ;;  %v298_v48 = vld [vmem:[%s3629_s1 + $0x800] sm:$0xff]  ;;  %v299_v49 = vld [vmem:[%s3629_s1 + $0x808] sm:$0xff] }
  0x76   :  { %2104 = vmatpush3.bf16.msra.mxu0 %v2103_v7  ;;  %v2147_v46 = vpack.c.bf16 %v281_v54, %v280_v39  ;;  %v316_v50 = vld [vmem:[%s3629_s1 + $0x890] sm:$0xff]  ;;  %v317_v51 = vld [vmem:[%s3629_s1 + $0x898] sm:$0xff]  ;;  %v3265_v52 = vld.sshfl [vmem:[%s3628_s0 + $0x20] sm:$0x33 pattern:$0x76325410]  ;;  %v2151_v53 = vpack.c.bf16 %v299_v49, %v298_v48 }
  0x77   :  { %2136 = vmatpush3.bf16.msra.mxu1 %v2135_v8  ;;  %2106 = vmatprep.subr.bf16.mxu0 %v2105_v9  ;;  %v2153_v55 = vpack.c.bf16 %v317_v51, %v316_v50  ;;  %v300_v33 = vld [vmem:[%s3629_s1 + $0x810] sm:$0xff]  ;;  %v301_v56 = vld [vmem:[%s3629_s1 + $0x818] sm:$0xff]  ;;  %v417_v57 = vcombine.high %v3265_v52, %v3265_v52  ;;  %v318_v58 = vld [vmem:[%s3629_s1 + $0x8a0] sm:$0xff]  ;;  %v2357_v54 = vmov 0.0|0.0  }
  0x78   :  { %2138 = vmatprep.subr.bf16.mxu1 %v2137_v14  ;;  %v319_v59 = vld [vmem:[%s3629_s1 + $0x8a8] sm:$0xff]  ;;  %v2155_v42 = vpack.c.bf16 %v301_v56, %v300_v33  ;;  %v302_v62 = vld [vmem:[%s3629_s1 + $0x820] sm:$0xff]  ;;  %v320_v0 = vld [vmem:[%s3629_s1 + $0x8b0] sm:$0xff] }
  0x79   :  { %v2157_v61 = vpack.c.bf16 %v319_v59, %v318_v58  ;;  %v303_v63 = vld [vmem:[%s3629_s1 + $0x828] sm:$0xff]  ;;  %v304_v2 = vld [vmem:[%s3629_s1 + $0x830] sm:$0xff]  ;;  %v305_v3 = vld [vmem:[%s3629_s1 + $0x838] sm:$0xff] }
  0x7a   :  { %2108 = vmatpush3.bf16.msra.mxu0 %v2107_v22  ;;  %v322_v4 = vld [vmem:[%s3629_s1 + $0x8c0] sm:$0xff]  ;;  %v323_v5 = vld [vmem:[%s3629_s1 + $0x8c8] sm:$0xff]  ;;  %v2163_v6 = vpack.c.bf16 %v305_v3, %v304_v2  ;;  %v324_v11 = vld [vmem:[%s3629_s1 + $0x8d0] sm:$0xff] }
  0x7b   :  { %2140 = vmatpush3.bf16.msra.mxu1 %v2139_v23  ;;  %2110 = vmatprep.subr.bf16.mxu0 %v2109_v24  ;;  %v2165_v7 = vpack.c.bf16 %v323_v5, %v322_v4  ;;  %v306_v8 = vld [vmem:[%s3629_s1 + $0x840] sm:$0xff]  ;;  %v307_v9 = vld [vmem:[%s3629_s1 + $0x848] sm:$0xff]  ;;  %v325_v12 = vld [vmem:[%s3629_s1 + $0x8d8] sm:$0xff] }
  0x7c   :  { %2142 = vmatprep.subr.bf16.mxu1 %v2141_v28  ;;  %v2167_v13 = vpack.c.bf16 %v307_v9, %v306_v8  ;;  %v2169_v14 = vpack.c.bf16 %v325_v12, %v324_v11  ;;  %v308_v15 = vld [vmem:[%s3629_s1 + $0x850] sm:$0xff]  ;;  %v309_v17 = vld [vmem:[%s3629_s1 + $0x858] sm:$0xff]  ;;  %v326_v18 = vld [vmem:[%s3629_s1 + $0x8e0] sm:$0xff] }
  0x7d   :  { %v327_v20 = vld [vmem:[%s3629_s1 + $0x8e8] sm:$0xff]  ;;  %v2171_v21 = vpack.c.bf16 %v309_v17, %v308_v15  ;;  %v310_v23 = vld [vmem:[%s3629_s1 + $0x860] sm:$0xff]  ;;  %v328_v25 = vld [vmem:[%s3629_s1 + $0x8f0] sm:$0xff] }
  0x7e   :  { %2112 = vmatpush3.bf16.msra.mxu0 %v2111_v35  ;;  %v2173_v22 = vpack.c.bf16 %v327_v20, %v326_v18  ;;  %v311_v24 = vld [vmem:[%s3629_s1 + $0x868] sm:$0xff]  ;;  %v329_v26 = vld [vmem:[%s3629_s1 + $0x8f8] sm:$0xff]  ;;  %v312_v29 = vld [vmem:[%s3629_s1 + $0x870] sm:$0xff] }
  0x7f   :  { %2144 = vmatpush3.bf16.msra.mxu1 %v2143_v36  ;;  %2114 = vmatprep.subr.bf16.mxu0 %v2113_v37  ;;  %v2175_v27 = vpack.c.bf16 %v311_v24, %v310_v23  ;;  %v2177_v28 = vpack.c.bf16 %v329_v26, %v328_v25  ;;  %v313_v30 = vld [vmem:[%s3629_s1 + $0x878] sm:$0xff]  ;;  %v1068_v32 = vld [vmem:[%s3631_s3 + $0x8] sm:$0xff]  ;;  %v1067_v36 = vld [vmem:[%s3631_s3] sm:$0xff] }
  0x80   :  { %2146 = vmatprep.subr.bf16.mxu1 %v2145_v40  ;;  %v2179_v31 = vpack.c.bf16 %v313_v30, %v312_v29  ;;  %v1070_v34 = vld [vmem:[%s3631_s3 + $0x18] sm:$0xff]  ;;  %v1069_v37 = vld [vmem:[%s3631_s3 + $0x10] sm:$0xff]  ;;  %v1217_v38 = vld [vmem:[%s3633_s5] sm:$0xff] }
  0x81   :  { %v2181_v35 = vpack.c.bf16 %v1070_v34, %v1068_v32  ;;  %v2183_v45 = vpack.c.bf16 %v1069_v37, %v1067_v36  ;;  %v1218_v39 = vld [vmem:[%s3633_s5 + $0x8] sm:$0xff]  ;;  %v1074_v43 = vld [vmem:[%s3631_s3 + $0x38] sm:$0xff]  ;;  %v1219_v49 = vld [vmem:[%s3633_s5 + $0x10] sm:$0xff] }
  0x82   :  { %2116 = vmatpush3.bf16.msra.mxu0 %v2115_v44  ;;  %v1072_v40 = vld [vmem:[%s3631_s3 + $0x28] sm:$0xff]  ;;  %v2214_v41 = vpack.c.bf16 %v1218_v39, %v1217_v38  ;;  %v1071_v44 = vld [vmem:[%s3631_s3 + $0x20] sm:$0xff]  ;;  %v1220_v50 = vld [vmem:[%s3633_s5 + $0x18] sm:$0xff] }
  0x83   :  { %2148 = vmatpush3.bf16.msra.mxu1 %v2147_v46  ;;  %2150 = vmatprep.subr.bf16.mxu0 %v2149_v47  ;;  %v1073_v46 = vld [vmem:[%s3631_s3 + $0x30] sm:$0xff]  ;;  %v2185_v47 = vpack.c.bf16 %v1074_v43, %v1072_v40  ;;  %v1076_v51 = vld [vmem:[%s3631_s3 + $0x48] sm:$0xff]  ;;  %v1086_v3 = vld [vmem:[%s3631_s3 + $0x98] sm:$0xff] }
  0x84   :  { %2182 = vmatprep.subr.bf16.mxu1 %v2181_v35  ;;  %v2187_v48 = vpack.c.bf16 %v1073_v46, %v1071_v44  ;;  %v1077_v33 = vld [vmem:[%s3631_s3 + $0x50] sm:$0xff]  ;;  %v1222_v58 = vld [vmem:[%s3633_s5 + $0x28] sm:$0xff]  ;;  %v1225_v9 = vld [vmem:[%s3633_s5 + $0x40] sm:$0xff] }
  0x85   :  { %921 = vmatmul.mubr.f32.vlgmr.msra.gmra.mrb[6].mxu0 %v3071_v16  ;;  %v321_v16 = vld [vmem:[%s3629_s1 + $0x8b8] sm:$0xff]  ;;  %v1080_v59 = vld [vmem:[%s3631_s3 + $0x68] sm:$0xff]  ;;  %v1085_v8 = vld [vmem:[%s3631_s3 + $0x90] sm:$0xff] }
  0x86   :  { %2152 = vmatpush3.bf16.msra.mxu0 %v2151_v53  ;;  %991 = vmatmul.mubr.f32.vlgmr.msra.gmra.mrb[6].mxu1 %v3080_v19  ;;  %v2159_v19 = vpack.c.bf16 %v303_v63, %v302_v62  ;;  %v2161_v1 = vpack.c.bf16 %v321_v16, %v320_v0  ;;  %v1078_v53 = vld [vmem:[%s3631_s3 + $0x58] sm:$0xff]  ;;  %v1079_v0 = vld [vmem:[%s3631_s3 + $0x60] sm:$0xff]  ;;  %v1081_v16 = vld [vmem:[%s3631_s3 + $0x70] sm:$0xff] }
  0x87   :  { %2154 = vmatprep.subr.bf16.mxu0 %v2153_v55  ;;  %1060 = vmatprep.mubr.f32.mxu0 %v417_v57  ;;  %v1075_v55 = vld [vmem:[%s3631_s3 + $0x40] sm:$0xff]  ;;  %v2189_v56 = vpack.c.bf16 %v1078_v53, %v1076_v51  ;;  %v1084_v2 = vld [vmem:[%s3631_s3 + $0x88] sm:$0xff]  ;;  %v2195_v4 = vpack.c.bf16 %v1081_v16, %v1079_v0  ;;  %v1089_v20 = vld [vmem:[%s3631_s3 + $0xb0] sm:$0xff] }
  0x88   :  { %2184 = vmatpush1.bf16.msra.mxu1 %v2183_v45  ;;  %v1221_v57 = vld [vmem:[%s3633_s5 + $0x20] sm:$0xff]  ;;  %v1226_v11 = vld [vmem:[%s3633_s5 + $0x48] sm:$0xff]  ;;  %v1094_v24 = vld [vmem:[%s3631_s3 + $0xd8] sm:$0xff] }
  0x89   :  { %2186 = vmatprep.subr.bf16.mxu1 %v2185_v47  ;;  %v2220_v62 = vpack.c.bf16 %v1222_v58, %v1221_v57  ;;  %v1088_v12 = vld [vmem:[%s3631_s3 + $0xa8] sm:$0xff]  ;;  %v2226_v15 = vpack.c.bf16 %v1226_v11, %v1225_v9  ;;  %v1087_v18 = vld [vmem:[%s3631_s3 + $0xa0] sm:$0xff]  ;;  %v1093_v29 = vld [vmem:[%s3631_s3 + $0xd0] sm:$0xff] }
  0x8a   :  { %2156 = vmatpush3.bf16.msra.mxu0 %v2155_v42  ;;  %v1082_v42 = vld [vmem:[%s3631_s3 + $0x78] sm:$0xff]  ;;  %v1092_v23 = vld [vmem:[%s3631_s3 + $0xc8] sm:$0xff]  ;;  %v2203_v25 = vpack.c.bf16 %v1089_v20, %v1087_v18  ;;  %v1470_v45 = vld [vmem:[%s3630_s2] ss:$0 sm:$0xff] }
  0x8b   :  { %2158 = vmatprep.subr.bf16.mxu0 %v2157_v61  ;;  %v2191_v61 = vpack.c.bf16 %v1077_v33, %v1075_v55  ;;  %v2193_v63 = vpack.c.bf16 %v1082_v42, %v1080_v59  ;;  %v1230_v32 = vld [vmem:[%s3633_s5 + $0x68] sm:$0xff]  ;;  %v1098_v37 = vld [vmem:[%s3631_s3 + $0xf8] sm:$0xff]  ;;  %v1097_v43 = vld [vmem:[%s3631_s3 + $0xf0] sm:$0xff]  ;;  %v2358_v55 = vmov 0.0  }
  0x8c   :  { %2188 = vmatpush1.bf16.msra.mxu1 %v2187_v48  ;;  %v1096_v36 = vld [vmem:[%s3631_s3 + $0xe8] sm:$0xff]  ;;  %v1231_v48 = vld [vmem:[%s3633_s5 + $0x70] sm:$0xff]  ;;  %1175 = vmatprep.mubr.f32.mxu1 %v2358_v55  ;;  %v1323_v18 = vld [vmem:[%s3635_s7] sm:$0xff] }
  0x8d   :  { %2190 = vmatprep.subr.bf16.mxu1 %v2189_v56  ;;  %v2209_v40 = vpack.c.bf16 %v1098_v37, %v1096_v36  ;;  %v1324_v20 = vld [vmem:[%s3635_s7 + $0x8] sm:$0xff]  ;;  %v1333_v37 = vld [vmem:[%s3635_s7 + $0x50] sm:$0xff]  ;;  %vm3584_vm6 = vmor %vm1214_vm5, %vm1182_vm1 }
  0x8e   :  { %2160 = vmatpush3.bf16.msra.mxu0 %v2159_v19  ;;  %v1223_v19 = vld [vmem:[%s3633_s5 + $0x30] sm:$0xff] }
  0x8f   :  { %2162 = vmatprep.subr.bf16.mxu0 %v2161_v1  ;;  %v1224_v1 = vld [vmem:[%s3633_s5 + $0x38] sm:$0xff] }
  0x90   :  { %2192 = vmatpush1.bf16.msra.mxu1 %v2191_v61  ;;  %v2223_v5 = vpack.c.bf16 %v1224_v1, %v1223_v19 }
  0x91   :  { %2194 = vmatprep.subr.bf16.mxu1 %v2193_v63 }
  0x92   :  { %2164 = vmatpush3.bf16.msra.mxu0 %v2163_v6  ;;  %v2197_v6 = vpack.c.bf16 %v1086_v3, %v1084_v2 }
  0x93   :  { %2166 = vmatprep.subr.bf16.mxu0 %v2165_v7  ;;  %v1083_v7 = vld [vmem:[%s3631_s3 + $0x80] sm:$0xff] }
  0x94   :  { %2196 = vmatpush1.bf16.msra.mxu1 %v2195_v4 }
  0x95   :  { %2198 = vmatprep.subr.bf16.mxu1 %v2197_v6 }
  0x96   :  { %2168 = vmatpush3.bf16.msra.mxu0 %v2167_v13  ;;  %v1090_v13 = vld [vmem:[%s3631_s3 + $0xb8] sm:$0xff] }
  0x97   :  { %2170 = vmatprep.subr.bf16.mxu0 %v2169_v14  ;;  %v2199_v14 = vpack.c.bf16 %v1085_v8, %v1083_v7  ;;  %v2201_v17 = vpack.c.bf16 %v1090_v13, %v1088_v12 }
  0x99   :  { %2200 = vmatpush1.bf16.msra.mxu1 %v2199_v14 }
  0x9a   :  { %2172 = vmatpush3.bf16.msra.mxu0 %v2171_v21  ;;  %v1227_v21 = vld [vmem:[%s3633_s5 + $0x50] sm:$0xff]  ;;  %2202 = vmatprep.subr.bf16.mxu1 %v2201_v17 }
  0x9b   :  { %2174 = vmatprep.subr.bf16.mxu0 %v2173_v22  ;;  %v1228_v22 = vld [vmem:[%s3633_s5 + $0x58] sm:$0xff] }
  0x9c   :  { %v2229_v26 = vpack.c.bf16 %v1228_v22, %v1227_v21  ;;  %v2238_v22 = vpack.c.bf16 %v1324_v20, %v1323_v18 }
  0x9d   :  { %2204 = vmatpush1.bf16.msra.mxu1 %v2203_v25  ;;  %v1326_v25 = vld [vmem:[%s3635_s7 + $0x18] sm:$0xff] }
  0x9e   :  { %2176 = vmatpush3.bf16.msra.mxu0 %v2175_v27  ;;  %v2205_v27 = vpack.c.bf16 %v1094_v24, %v1092_v23  ;;  %v1325_v24 = vld [vmem:[%s3635_s7 + $0x10] sm:$0xff] }
  0x9f   :  { %2178 = vmatprep.subr.bf16.mxu0 %v2177_v28  ;;  %v1091_v28 = vld [vmem:[%s3631_s3 + $0xc0] sm:$0xff] }
  0xa0   :  { %2206 = vmatprep.subr.bf16.mxu1 %v2205_v27  ;;  %v2207_v30 = vpack.c.bf16 %v1093_v29, %v1091_v28  ;;  %v1327_v27 = vld [vmem:[%s3635_s7 + $0x20] sm:$0xff]  ;;  %v1328_v28 = vld [vmem:[%s3635_s7 + $0x28] sm:$0xff] }
  0xa1   :  { %v2244_v29 = vpack.c.bf16 %v1328_v28, %v1327_v27 }
  0xa2   :  { %2180 = vmatpush3.bf16.msra.mxu0 %v2179_v31  ;;  %v1229_v31 = vld [vmem:[%s3633_s5 + $0x60] sm:$0xff]  ;;  %2208 = vmatpush1.bf16.msra.mxu1 %v2207_v30  ;;  %v1329_v30 = vld [vmem:[%s3635_s7 + $0x30] sm:$0xff] }
  0xa3   :  { %2213 = vmatprep.subr.bf16.mxu0 %v2357_v54  ;;  %v2232_v34 = vpack.c.bf16 %v1230_v32, %v1229_v31  ;;  %2210 = vmatprep.subr.bf16.mxu1 %v2209_v40  ;;  %v1330_v31 = vld [vmem:[%s3635_s7 + $0x38] sm:$0xff]  ;;  %v1336_v40 = vld [vmem:[%s3635_s7 + $0x68] sm:$0xff] }
  0xa4   :  { %v2247_v32 = vpack.c.bf16 %v1330_v31, %v1329_v30 }
  0xa5   :  { %1061 = vmatmul.mubr.f32.vlgmr.msra.gmra.mrb[8].mxu0 %v3265_v52  ;;  %v2217_v52 = vpack.c.bf16 %v1220_v50, %v1219_v49  ;;  %v1232_v49 = vld [vmem:[%s3633_s5 + $0x78] sm:$0xff] }
  0xa6   :  { %2215 = vmatpush3.bf16.msra.mxu0 %v2214_v41  ;;  %v1095_v41 = vld [vmem:[%s3631_s3 + $0xe0] sm:$0xff]  ;;  %v2235_v51 = vpack.c.bf16 %v1232_v49, %v1231_v48  ;;  %1855 = vmatprep.mubr.msk.f32.mxu0 %vm2359_vm0, %v2358_v55  ;;  %v1107_v49 = vsub.s32 1, %v2540_v60 }
  0xa7   :  { %2216 = vmatprep.subr.bf16.mxu0 %v2357_v54  ;;  %v2211_v47 = vpack.c.bf16 %v1097_v43, %v1095_v41  ;;  %v1337_v43 = vld [vmem:[%s3635_s7 + $0x70] sm:$0xff]  ;;  %v1099_v48 = vld [vmem:[%s3632_s4] sm:$0x3] }
  0xa9   :  { %2212 = vmatpush1.bf16.msra.mxu1 %v2211_v47  ;;  %v1103_v47 = vsub.s32 0, %v2540_v60 }
  0xaa   :  { %2218 = vmatpush3.bf16.msra.mxu0 %v2217_v52  ;;  %2237 = vmatprep.subr.bf16.mxu1 %v2357_v54 }
  0xab   :  { %2219 = vmatprep.subr.bf16.mxu0 %v2357_v54 }
  0xae   :  { %2221 = vmatpush3.bf16.msra.mxu0 %v2220_v62 }
  0xaf   :  { %2222 = vmatprep.subr.bf16.mxu0 %v2357_v54 }
  0xb2   :  { %2224 = vmatpush3.bf16.msra.mxu0 %v2223_v5 }
  0xb3   :  { %2225 = vmatprep.subr.bf16.mxu0 %v2357_v54 }
  0xb6   :  { %2227 = vmatpush3.bf16.msra.mxu0 %v2226_v15 }
  0xb7   :  { %2228 = vmatprep.subr.bf16.mxu0 %v2357_v54 }
  0xba   :  { %2230 = vmatpush3.bf16.msra.mxu0 %v2229_v26  ;;  %v2241_v26 = vpack.c.bf16 %v1326_v25, %v1325_v24 }
  0xbb   :  { %2231 = vmatprep.subr.bf16.mxu0 %v2357_v54 }
  0xbe   :  { %2233 = vmatpush3.bf16.msra.mxu0 %v2232_v34  ;;  %v1331_v34 = vld [vmem:[%s3635_s7 + $0x40] sm:$0xff] }
  0xbf   :  { %2234 = vmatprep.subr.bf16.mxu0 %v2357_v54 }
  0xc2   :  { %2236 = vmatpush3.bf16.msra.mxu0 %v2235_v51  ;;  %v1108_v51 = vrot.slane %v1099_v48, %v1107_v49 }
  0xf7   :  { %v1506_v35 = vpop.f32.mrb[0].mxu0 }
  0xf8   :  { %v1507_v38 = vpop.f32.mrb[1].mxu0 }
  0xf9   :  { %v1541_v39 = vpop.f32.mrb[0].mxu1  ;;  %v1508_v44 = vadd.f32 %v1507_v38, %v1506_v35  ;;  %v1332_v35 = vld [vmem:[%s3635_s7 + $0x48] sm:$0xff] }
  0xfa   :  { %v1542_v46 = vpop.f32.mrb[1].mxu1  ;;  %v2250_v36 = vpack.c.bf16 %v1332_v35, %v1331_v34 }
  0xfb   :  { %v1543_v50 = vadd.f32 %v1542_v46, %v1541_v39  ;;  %v503_v52 = vadd.f32 %v1508_v44, %v1470_v45  ;;  %v1334_v45 = vld [vmem:[%s3635_s7 + $0x58] sm:$0xff]  ;;  %v1335_v39 = vld [vmem:[%s3635_s7 + $0x60] sm:$0xff] }
  0xfc   :  { %v2253_v38 = vpack.c.bf16 %v1334_v45, %v1333_v37  ;;  %v2256_v41 = vpack.c.bf16 %v1336_v40, %v1335_v39  ;;  %v1338_v44 = vld [vmem:[%s3635_s7 + $0x78] sm:$0xff] }
  0xfd   :  { %v573_v53 = vadd.f32 %v1543_v50, %v503_v52  ;;  %v2259_v46 = vpack.c.bf16 %v1338_v44, %v1337_v43  ;;  %v1104_v50 = vrot.slane %v1099_v48, %v1103_v47 }
 0x117   :  { %v1576_v33 = vpop.f32.mrb[2].mxu0 }
 0x118   :  { %v1577_v56 = vpop.f32.mrb[3].mxu0 }
 0x119   :  { %v1611_v57 = vpop.f32.mrb[2].mxu1  ;;  %v1578_v58 = vadd.f32 %v1577_v56, %v1576_v33 }
 0x11a   :  { %v1612_v59 = vpop.f32.mrb[3].mxu1 }
 0x11b   :  { %v1613_v42 = vadd.f32 %v1612_v59, %v1611_v57  ;;  %v643_v61 = vadd.f32 %v1578_v58, %v573_v53  ;;  %v1472_v57 = vld [vmem:[%s3634_s6] ss:$0 sm:$0xff]  ;;  %s2360_s6 = smov [#allocation4]  }
 0x11d   :  { %v713_v62 = vadd.f32 %v1613_v42, %v643_v61 }
 0x138   :  { %v1646_v63 = vpop.f32.mrb[4].mxu0 }
 0x139   :  { %v1647_v0 = vpop.f32.mrb[5].mxu0  ;;  %v1681_v16 = vpop.f32.mrb[4].mxu1 }
 0x13a   :  { %v1648_v19 = vadd.f32 %v1647_v0, %v1646_v63  ;;  %v1682_v1 = vpop.f32.mrb[5].mxu1 }
 0x13b   :  { %v1683_v2 = vadd.f32 %v1682_v1, %v1681_v16 }
 0x13c   :  { %v783_v3 = vadd.f32 %v1648_v19, %v713_v62  ;;  %v1473_v62 = vld [vmem:[%s3636_s8] ss:$0 sm:$0xff]  ;;  %s1445_s8 = sshll.u32 %s2360_s6, 4  ;;  %s1446_s8 = int_to_ptr.vmem [resolvable:$true] %s1445_s8 }
 0x13d   :  { %s2286_s15 = scalar_lea.vmem %s1446_s8, 32  ;;  %p2291_p1 = scmp.lt.s32.totalorder %s1446_s8, %s1446_s8 }
 0x13e   :  { %v853_v4 = vadd.f32 %v1683_v2, %v783_v3  ;;  %p2287_p0 = scmp.ne.s32.totalorder %s1446_s8, %s2286_s15  ;;  %p2292_p2 = scmp.lt.s32.totalorder %s2286_s15, %s2286_s15 }
 0x140   :  { %p2293_p3 = por %p2292_p2, %p2291_p1 }
 0x142   :  { %p2294_p4 = pnand %p2293_p3, %p2287_p0 }
 0x158   :  { %v1716_v5 = vpop.f32.mrb[6].mxu0 }
 0x159   :  { %v1717_v6 = vpop.f32.mrb[7].mxu0  ;;  %v1751_v7 = vpop.f32.mrb[6].mxu1 }
 0x15a   :  { %v1718_v8 = vadd.f32 %v1717_v6, %v1716_v5  ;;  %v1752_v9 = vpop.f32.mrb[7].mxu1 }
 0x15b   :  { %v1753_v11 = vadd.f32 %v1752_v9, %v1751_v7 }
 0x15c   :  { %v923_v12 = vadd.f32 %v1718_v8, %v853_v4 }
 0x15e   :  { %v993_v13 = vadd.f32 %v1753_v11, %v923_v12 }
 0x178   :  { %v1786_v14 = vpop.f32.mrb[8].mxu0 }
 0x179   :  { %v1787_v15 = vpop.f32.mrb[9].mxu0 }
 0x17a   :  { %v1788_v17 = vadd.f32 %v1787_v15, %v1786_v14 }
 0x17c   :  { %v1063_v21 = vadd.f32 %v1788_v17, %v993_v13 }
 0x17e   :  { %v1066_v23 = vmax.f32 %v1063_v21, 0.0 }
 0x180   :  { %1176 = vmatmul.mubr.f32.vlgmr.msra.gmra.mrb[8].mxu1 %v1066_v23  ;;  %1856 = vmatmul.mubr.f32.vlgmr.msra.gmra.mrb[10].mxu0 %v1066_v23 }
 0x181   :  { %2239 = vmatpush3.bf16.msra.mxu1 %v2238_v22  ;;  %1890 = vmatprep.mubr.msk.f32.mxu1 %vm2359_vm0, %v2358_v55 }
 0x182   :  { %2240 = vmatprep.subr.bf16.mxu1 %v2357_v54 }
 0x185   :  { %2242 = vmatpush3.bf16.msra.mxu1 %v2241_v26 }
 0x186   :  { %2243 = vmatprep.subr.bf16.mxu1 %v2357_v54 }
 0x189   :  { %2245 = vmatpush3.bf16.msra.mxu1 %v2244_v29 }
 0x18a   :  { %2246 = vmatprep.subr.bf16.mxu1 %v2357_v54 }
 0x18d   :  { %2248 = vmatpush3.bf16.msra.mxu1 %v2247_v32 }
 0x18e   :  { %2249 = vmatprep.subr.bf16.mxu1 %v2357_v54 }
 0x191   :  { %2251 = vmatpush3.bf16.msra.mxu1 %v2250_v36 }
 0x192   :  { %2252 = vmatprep.subr.bf16.mxu1 %v2357_v54 }
 0x195   :  { %2254 = vmatpush3.bf16.msra.mxu1 %v2253_v38 }
 0x196   :  { %2255 = vmatprep.subr.bf16.mxu1 %v2357_v54 }
 0x199   :  { %2257 = vmatpush3.bf16.msra.mxu1 %v2256_v41 }
 0x19a   :  { %2258 = vmatprep.subr.bf16.mxu1 %v2357_v54 }
 0x19d   :  { %2260 = vmatpush3.bf16.msra.mxu1 %v2259_v46 }
 0x1a0   :  { %1891 = vmatmul.mubr.f32.vlgmr.msra.gmra.mrb[10].mxu1 %v1066_v23 }
 0x253   :  { %v1177_v52 = vpop.f32.mrb[8].mxu1  ;;  %v1306_v53 = vpop.f32.mrb[10].mxu0 }
 0x254   :  { %v1178_v55 = vadd.f32 %v1177_v52, %v1104_v50  ;;  %v1179_v33 = vpop.f32.mrb[9].mxu1  ;;  %v1857_v56 = vpop.f32.mrb[11].mxu0  ;;  %v1307_v60 = vadd.f32 %v1472_v57, %v1306_v53 }
 0x255   :  { %v1180_v54 = vadd.f32 %v1179_v33, %v1108_v51 }
 0x256   :  { %v1183_v58 = vsel %vm1182_vm1, %v1178_v55, -inf  ;;  %v1311_v61 = vsel %vm1310_vm3, %v1307_v60, -inf }
 0x257   :  { %v1185_v59 = vsel %vm1184_vm2, %v1180_v54, -inf }
 0x258   :  { %v1186_v42 = vmax.f32 %v1183_v58, %v1185_v59 }
 0x25a   :  { %1187 = vmax.xlane.f32.xlu0 %v1186_v42 }
 0x25e   :  { %1312 = vmax.xlane.f32.xlu0 %v1311_v61 }
 0x273   :  { %v1412_v63 = vpop.f32.mrb[10].mxu1 }
 0x274   :  { %v1413_v0 = vadd.f32 %v1473_v62, %v1412_v63  ;;  %v1892_v16 = vpop.f32.mrb[11].mxu1 }
 0x276   :  { %v1417_v19 = vsel %vm1416_vm4, %v1413_v0, -inf }
 0x277   :  { %1418 = vmax.xlane.f32.xlu1 %v1417_v19 }
 0x2e7   :  { %v1188_v1 = vpop.xlane.xlu0 %1187 }
 0x2e8   :  { %v1189_v2 = vsub.f32 %v1178_v55, %v1188_v1  ;;  %v1190_v3 = vsub.f32 %v1180_v54, %v1188_v1 }
 0x2ea   :  { %v1191_v4 = vmul.f32 1.442695, %v1189_v2  ;;  %v1193_v5 = vmul.f32 1.442695, %v1190_v3 }
 0x2eb   :  { %v1313_v6 = vpop.xlane.xlu0 %1312 }
 0x2ec   :  { %2272 = vpow2.f32 %v1191_v4  ;;  %v1314_v7 = vsub.f32 %v1307_v60, %v1313_v6 }
 0x2ed   :  { %2274 = vpow2.f32 %v1193_v5 }
 0x2ee   :  { %v1315_v8 = vmul.f32 1.442695, %v1314_v7 }
 0x2f0   :  { %2276 = vpow2.f32 %v1315_v8 }
 0x2f6   :  { %v2273_v9 = vpop.eup %2272 }
 0x2f7   :  { %v2275_v11 = vpop.eup %2274  ;;  %v1195_v12 = vsel %vm1182_vm1, %v2273_v9, 0.0 }
 0x2f8   :  { %v1196_v13 = vsel %vm1184_vm2, %v2275_v11, 0.0 }
 0x2f9   :  { %v1197_v14 = vadd.f32 %v1196_v13, %v1195_v12 }
 0x2fa   :  { %v2277_v15 = vpop.eup %2276 }
 0x2fb   :  { %1198 = vadd.xlane.f32.xlu1 %v1197_v14  ;;  %v1317_v17 = vsel %vm1310_vm3, %v2277_v15, 0.0 }
 0x2fc   :  { %1318 = vadd.xlane.f32.xlu0 %v1317_v17 }
 0x304   :  { %v1419_v18 = vpop.xlane.xlu1 %1418 }
 0x305   :  { %v1420_v20 = vsub.f32 %v1413_v0, %v1419_v18 }
 0x307   :  { %v1421_v21 = vmul.f32 1.442695, %v1420_v20 }
 0x309   :  { %2278 = vpow2.f32 %v1421_v21 }
 0x313   :  { %v2279_v22 = vpop.eup %2278 }
 0x314   :  { %v1423_v23 = vsel %vm1416_vm4, %v2279_v22, 0.0 }
 0x315   :  { %1424 = vadd.xlane.f32.xlu1 %v1423_v23 }
 0x388   :  { %v1199_v24 = vpop.xlane.xlu1 %1198 }
 0x389   :  { %2280 = vrcp.f32 %v1199_v24  ;;  %v1319_v25 = vpop.xlane.xlu0 %1318 }
 0x38a   :  { %2282 = vrcp.f32 %v1319_v25 }
 0x393   :  { %v2281_v26 = vpop.eup %2280 }
 0x394   :  { %v2283_v27 = vpop.eup %2282  ;;  %v1201_v28 = vmul.f32 %v2281_v26, %v2273_v9  ;;  %v1202_v29 = vmul.f32 %v2281_v26, %v2275_v11 }
 0x395   :  { %v1321_v30 = vmul.f32 %v2283_v27, %v2277_v15 }
 0x396   :  { %v1205_v31 = vcombine.low %v1201_v28, %v1202_v29 }
 0x397   :  { %1322 = vst.msk [vmem:[#allocation4] sm:$0x3] %vm1310_vm3, %v1321_v30 }
 0x398   :  { %2297 = shalt.err (!%p2294_p4)
}
 0x399   :  { %s2298_s17 = scalar_lea.hbm %s3638_s10, 32 }
 0x39a   :  { %p2299_p5 = scmp.ne.s32.totalorder %s3638_s10, %s2298_s17  ;;  %p2302_p6 = scmp.lt.u32.totalorder %s2298_s17, %s3638_s10 }
 0x39c   :  { %p2304_p7 = pnand %p2302_p6, %p2299_p5 }
 0x39e   :  { %2307 = shalt.err (!%p2304_p7)
}
 0x39f   :  { %1448 = dma.vmem_to_hbm [thread:$0]  %s1446_s8, 32, %s3638_s10, [#allocation5]   ;;  %v1212_v34 = vrot.slane %v1205_v31, %v2570_v10 }
 0x3a0   :  { %s2308_s3 = scalar_lea.vmem %s1436_s14, 64  ;;  %p2313_p9 = scmp.lt.s32.totalorder %s1436_s14, %s1436_s14 }
 0x3a1   :  { %1216 = vst.msk [vmem:[#allocation2] sm:$0xf] %vm3584_vm6, %v1212_v34  ;;  %p2309_p8 = scmp.ne.s32.totalorder %s1436_s14, %s2308_s3  ;;  %p2314_p10 = scmp.lt.s32.totalorder %s2308_s3, %s2308_s3 }
 0x3a3   :  { %p2315_p11 = por %p2314_p10, %p2313_p9 }
 0x3a5   :  { %p2316_p12 = pnand %p2315_p11, %p2309_p8 }
 0x3a7   :  { %2319 = shalt.err (!%p2316_p12)
}
 0x3a8   :  { %s2320_s24 = scalar_lea.hbm %s3637_s9, 64 }
 0x3a9   :  { %p2321_p13 = scmp.ne.s32.totalorder %s3637_s9, %s2320_s24  ;;  %p2324_p0 = scmp.lt.u32.totalorder %s2320_s24, %s3637_s9 }
 0x3ab   :  { %p2326_p1 = pnand %p2324_p0, %p2321_p13 }
 0x3ad   :  { %2329 = shalt.err (!%p2326_p1)
}
 0x3ae   :  { %1438 = dma.vmem_to_hbm [thread:$0]  %s1436_s14, 64, %s3637_s9, [#allocation3]   ;;  %v1425_v10 = vpop.xlane.xlu1 %1424 }
 0x3af   :  { %2284 = vrcp.f32 %v1425_v10  ;;  %s2362_s29 = smov [#allocation6]  }
 0x3b0   :  { %s1455_s7 = sshll.u32 %s2362_s29, 4  ;;  %s1456_s7 = int_to_ptr.vmem [resolvable:$true] %s1455_s7 }
 0x3b1   :  { %s2330_s30 = scalar_lea.vmem %s1456_s7, 32  ;;  %p2335_p3 = scmp.lt.s32.totalorder %s1456_s7, %s1456_s7 }
 0x3b2   :  { %p2331_p2 = scmp.ne.s32.totalorder %s1456_s7, %s2330_s30  ;;  %p2336_p4 = scmp.lt.s32.totalorder %s2330_s30, %s2330_s30 }
 0x3b4   :  { %p2337_p5 = por %p2336_p4, %p2335_p3 }
 0x3b6   :  { %p2338_p6 = pnand %p2337_p5, %p2331_p2 }
 0x3b9   :  { %v2285_v35 = vpop.eup %2284 }
 0x3ba   :  { %v1427_v36 = vmul.f32 %v2285_v35, %v2279_v22 }
 0x3bc   :  { %1428 = vst.msk [vmem:[#allocation6] sm:$0x3] %vm1416_vm4, %v1427_v36 }
 0x3bd   :  { %2341 = shalt.err (!%p2338_p6)
}
 0x3be   :  { %s2342_s9 = scalar_lea.hbm %s3639_s11, 32 }
 0x3bf   :  { %p2343_p7 = scmp.ne.s32.totalorder %s3639_s11, %s2342_s9  ;;  %p2346_p8 = scmp.lt.u32.totalorder %s2342_s9, %s3639_s11 }
 0x3c1   :  { %p2348_p9 = pnand %p2346_p8, %p2343_p7 }
 0x3c3   :  { %2351 = shalt.err (!%p2348_p9)
}
 0x3c4   :  { %1458 = dma.vmem_to_hbm [thread:$0]  %s1456_s7, 32, %s3639_s11, [#allocation5]  }
 0x3c5   :  { %2352 = dma.done.wait [#allocation3], 64  }
 0x3c6   :  { %2353 = vsyncadd [#allocation3], 4294967232 }
 0x3c7   :  { %2354 = dma.done.wait [#allocation5], 64  }
 0x3c8   :  { %2355 = vsyncadd [#allocation5], 4294967232 }
 0x3c9   :  { %1468 = vsyncpa [#allocation3], 1 }
 0x3ca   :  { %1469 = vsyncpa [#allocation5], 1 }

</bundles_post_ra>
